<compile_context>
chip_gen: v7x
topology: tpu7x:2x2x1
jax: 0.10.0
libtpu: 0.0.40
codegen_flags: <defaults>
</compile_context>

<pallas_src>
import functools

import jax
import jax.numpy as jnp
from jax.experimental import pallas as pl
from jax.experimental.pallas import tpu as pltpu


# ---------------------------------------------------------------------------
# Fused kernel
# ---------------------------------------------------------------------------
def _inverted_residual_kernel(*refs, stride, th_out, w_out, h_img, w_img,
                              has_expand, use_res):
    if has_expand:
        (x_ref, w_e_ref, b_e_ref,
         w_d_ref, b_d_ref,
         w_p_ref, b_p_ref,
         o_ref) = refs
    else:
        (x_ref,
         w_d_ref, b_d_ref,
         w_p_ref, b_p_ref,
         o_ref) = refs

    w_in = x_ref.shape[2]
    cin = x_ref.shape[3]
    th_in = (th_out - 1) * stride + 3

    t = pl.program_id(1)
    row0 = pl.multiple_of(t * (th_out * stride), th_out * stride)

    # Halo'd input row window, dynamic-sliced out of the VMEM-resident padded
    # image (the image block index depends only on the batch axis, so Pallas
    # fetches it once per batch item and keeps it resident across row tiles).
    x_win = x_ref[0, pl.ds(row0, th_in), :, :]          # (th_in, w_in, cin) f32

    if has_expand:
        c_hid = w_e_ref.shape[1]
        # 1x1 expand conv on the MXU (bf16 in, f32 accumulate); BN scale is
        # pre-folded into the weights, so only bias + ReLU6 remain.
        x2d = x_win.reshape(th_in * w_in, cin).astype(jnp.bfloat16)
        h2d = jnp.dot(x2d, w_e_ref[...], preferred_element_type=jnp.float32)
        h2d = jnp.clip(h2d + b_e_ref[...], 0.0, 6.0)
        hidden = h2d.reshape(th_in, w_in, c_hid)
        # The depthwise conv zero-pads its *input* (the hidden activation), so
        # positions that came from the spatial zero-padding of x must be
        # zeroed explicitly (expand(0) = relu6(bias) != 0).
        rows = jax.lax.broadcasted_iota(jnp.int32, (th_in, w_in, 1), 0) + row0
        cols = jax.lax.broadcasted_iota(jnp.int32, (th_in, w_in, 1), 1)
        interior = ((rows >= 1) & (rows <= h_img) &
                    (cols >= 1) & (cols <= w_img))
        hidden = jnp.where(interior, hidden, 0.0)
    else:
        # expand_ratio == 1: the hidden activation is the (zero-padded) input.
        c_hid = cin
        hidden = x_win

    # 3x3 depthwise conv (VPU); BN scale pre-folded into the weights.
    wd = w_d_ref[...]                                   # (3, 3, c_hid) f32
    bd = b_d_ref[...]                                   # (1, 1, c_hid) f32
    span_h = (th_out - 1) * stride + 1
    span_w = (w_out - 1) * stride + 1
    acc = jnp.zeros((th_out, w_out, c_hid), jnp.float32)
    for dx in range(3):
        hs = hidden[:, dx:dx + span_w:stride, :]        # (th_in, w_out, c_hid)
        for dy in range(3):
            tap = hs[dy:dy + span_h:stride]             # (th_out, w_out, c_hid)
            acc = acc + tap * wd[dy, dx]
    y = jnp.clip(acc + bd, 0.0, 6.0)

    # 1x1 projection on the MXU (bf16 in, f32 accumulate) + BN bias.
    y2d = y.reshape(th_out * w_out, c_hid).astype(jnp.bfloat16)
    out = jnp.dot(y2d, w_p_ref[...], preferred_element_type=jnp.float32)
    out = out + b_p_ref[...]

    if use_res:
        # stride == 1 here, so the interior of the halo window is exactly the
        # residual input of this tile.  Residual is added in f32.
        res = x_win[1:1 + th_out, 1:1 + w_out, :]
        out = out + res.reshape(th_out * w_out, cin)

    # TODO(synk): oup < 128 keeps these tile stores masked (vst.msk); a
    # lane-dense output layout would cost an in-kernel relayout at these
    # channel counts, so it is not done.
    o_ref[0] = out.reshape(th_out, w_out, out.shape[-1])


# ---------------------------------------------------------------------------
# Row-tile selection: largest divisor of h_out that keeps several grid steps
# and a bounded per-step VMEM footprint (hidden tile + shifted copies +
# accumulator, all f32).
# ---------------------------------------------------------------------------
def _pick_row_tile(h_out, w_out, w_in, c_hid, stride,
                   target_rows=8, budget_bytes=8 << 20):
    def est(th):
        th_in = (th - 1) * stride + 3
        return 4 * c_hid * (th_in * w_in + 3 * th_in * w_out + 2 * th * w_out)

    candidates = [d for d in range(1, h_out + 1)
                  if h_out % d == 0 and d <= target_rows
                  and est(d) <= budget_bytes]
    return candidates[-1] if candidates else 1


# ---------------------------------------------------------------------------
# InvertedResidual forward (Pallas)
# ---------------------------------------------------------------------------
def inverted_residual_forward(x_nchw, params, *, stride, expand_ratio, inp, oup,
                              row_tile=None):
    """x_nchw: (N, inp, H, W) f32 -> (N, oup, H_out, W_out) f32 (NCHW)."""
    assert stride in (1, 2)
    n, cin, h, w = x_nchw.shape
    assert cin == inp
    has_expand = expand_ratio != 1
    use_res = (stride == 1) and (inp == oup)
    hdim = int(inp * expand_ratio)

    h_out = (h - 1) // stride + 1
    w_out = (w - 1) // stride + 1
    w_in = w + 2

    # NCHW -> NHWC (channels on the lane axis) and 1-px zero pad for the 3x3.
    # Only the small inp-channel input is padded; the expanded hidden
    # activation never touches HBM.  Input stays f32 so the residual is exact.
    x_nhwc = jnp.transpose(x_nchw, (0, 2, 3, 1)).astype(jnp.float32)
    xp = jnp.pad(x_nhwc, ((0, 0), (1, 1), (1, 1), (0, 0)))

    th_out = row_tile or _pick_row_tile(h_out, w_out, w_in, hdim, stride)
    assert h_out % th_out == 0, (h_out, th_out)
    grid = (n, h_out // th_out)

    # Fold BN scales into the conv weights (exact: (x@W)*s == x@(W*s)).
    # bf16 for the MXU matmul weights; depthwise weights and all biases stay
    # f32 (VPU epilogue; v5e has no bf16 VALU).
    w_dw = (params["w_dw"] * params["s_dw"]).astype(jnp.float32)        # (3,3,hdim)
    b_dw = params["b_dw"].reshape(1, 1, hdim).astype(jnp.float32)
    w_pr = (params["w_proj"] * params["s_proj"][None, :]).astype(jnp.bfloat16)
    b_pr = params["b_proj"].reshape(1, oup).astype(jnp.float32)

    operands = [xp]
    # Whole padded image per batch item (block index depends only on batch):
    # auto-pipelined, stays resident across all row tiles of that item.
    in_specs = [pl.BlockSpec((1, h + 2, w + 2, inp), lambda i, t: (i, 0, 0, 0))]
    if has_expand:
        w_ex = (params["w_expand"] * params["s_expand"][None, :]).astype(jnp.bfloat16)
        b_ex = params["b_expand"].reshape(1, hdim).astype(jnp.float32)
        operands += [w_ex, b_ex]
        in_specs += [pl.BlockSpec((inp, hdim), lambda i, t: (0, 0)),
                     pl.BlockSpec((1, hdim), lambda i, t: (0, 0))]
    operands += [w_dw, b_dw, w_pr, b_pr]
    in_specs += [pl.BlockSpec((3, 3, hdim), lambda i, t: (0, 0, 0)),
                 pl.BlockSpec((1, 1, hdim), lambda i, t: (0, 0, 0)),
                 pl.BlockSpec((hdim, oup), lambda i, t: (0, 0)),
                 pl.BlockSpec((1, oup), lambda i, t: (0, 0))]

    kernel = functools.partial(
        _inverted_residual_kernel, stride=stride, th_out=th_out, w_out=w_out,
        h_img=h, w_img=w, has_expand=has_expand, use_res=use_res)

    out_nhwc = pl.pallas_call(
        kernel,
        out_shape=jax.ShapeDtypeStruct((n, h_out, w_out, oup), jnp.float32),
        grid=grid,
        in_specs=in_specs,
        out_specs=pl.BlockSpec((1, th_out, w_out, oup),
                               lambda i, t: (i, t, 0, 0)),
        compiler_params=pltpu.CompilerParams(
            dimension_semantics=("parallel", "parallel"),
            vmem_limit_bytes=64 * 1024 * 1024),
    )(*operands)

    return jnp.transpose(out_nhwc, (0, 3, 1, 2))        # back to NCHW


# ---------------------------------------------------------------------------
# Pure-JAX f32 reference (same math, no Pallas) for validation
# ---------------------------------------------------------------------------
def reference_forward(x_nchw, params, *, stride, expand_ratio, inp, oup):
    use_res = (stride == 1) and (inp == oup)
    n, _, h, w = x_nchw.shape
    x = jnp.transpose(x_nchw, (0, 2, 3, 1))

    if expand_ratio != 1:
        y = jnp.einsum("nhwc,cd->nhwd", x, params["w_expand"])
        y = jnp.clip(y * params["s_expand"] + params["b_expand"], 0.0, 6.0)
    else:
        y = x

    yp = jnp.pad(y, ((0, 0), (1, 1), (1, 1), (0, 0)))
    h_out = (h - 1) // stride + 1
    w_out = (w - 1) // stride + 1
    acc = jnp.zeros((n, h_out, w_out, y.shape[-1]), jnp.float32)
    for dy in range(3):
        for dx in range(3):
            win = yp[:, dy:dy + (h_out - 1) * stride + 1:stride,
                     dx:dx + (w_out - 1) * stride + 1:stride, :]
            acc = acc + win * params["w_dw"][dy, dx, :]
    y = jnp.clip(acc * params["s_dw"] + params["b_dw"], 0.0, 6.0)

    out = jnp.einsum("nhwc,cd->nhwd", y, params["w_proj"])
    out = out * params["s_proj"] + params["b_proj"]
    if use_res:
        out = out + x
    return jnp.transpose(out, (0, 3, 1, 2))


# ---------------------------------------------------------------------------
# Deterministic parameter construction (BN folded into scale/bias, eval mode)
# ---------------------------------------------------------------------------
def make_params(key, inp, oup, expand_ratio, grouped_conv_size=1):
    hidden = int(inp * expand_ratio)
    assert grouped_conv_size == 1, "only depthwise (grouped_conv_size=1) supported"
    # TODO(synk): general grouped conv (grouped_conv_size > 1) not implemented.
    keys = jax.random.split(key, 12)

    def fold_bn(kg, kb, km, kv, c):
        gamma = jax.random.uniform(kg, (c,), jnp.float32, 0.5, 1.5)
        beta = 0.1 * jax.random.normal(kb, (c,), jnp.float32)
        mean = 0.1 * jax.random.normal(km, (c,), jnp.float32)
        var = jax.random.uniform(kv, (c,), jnp.float32, 0.5, 1.5)
        scale = gamma / jnp.sqrt(var + 1e-5)
        bias = beta - mean * scale
        return scale, bias

    p = {}
    p["w_expand"] = 0.1 * jax.random.normal(keys[0], (inp, hidden), jnp.float32)
    p["s_expand"], p["b_expand"] = fold_bn(keys[1], keys[2], keys[3], keys[4], hidden)
    p["w_dw"] = 0.1 * jax.random.normal(keys[5], (3, 3, hidden), jnp.float32)
    p["s_dw"], p["b_dw"] = fold_bn(keys[6], keys[7], keys[8], keys[9], hidden)
    p["w_proj"] = 0.1 * jax.random.normal(keys[10], (hidden, oup), jnp.float32)
    p["s_proj"], p["b_proj"] = fold_bn(keys[11], keys[0], keys[1], keys[2], oup)
    return p


# ---------------------------------------------------------------------------
if __name__ == "__main__":
    key = jax.random.PRNGKey(0)
    N = 2
    configs = [
        # (inp, oup, H,  W,  stride, expand_ratio)
        (16, 16, 16, 16, 1, 6),   # expand + residual path
        (16, 24, 16, 16, 2, 6),   # strided, no residual
        (32, 32, 16, 16, 1, 1),   # expand_ratio == 1 (no expand conv)
    ]

    for (inp, oup, h, w, stride, expand) in configs:
        key, kx, kp = jax.random.split(key, 3)
        x = jax.random.normal(kx, (N, inp, h, w), jnp.float32)
        params = make_params(kp, inp, oup, expand)

        out = inverted_residual_forward(
            x, params, stride=stride, expand_ratio=expand, inp=inp, oup=oup)
        out = jax.block_until_ready(out)

        ref = reference_forward(
            x, params, stride=stride, expand_ratio=expand, inp=inp, oup=oup)
        ref = jax.block_until_ready(ref)

        h_out = (h - 1) // stride + 1
        w_out = (w - 1) // stride + 1
        assert out.shape == (N, oup, h_out, w_out), out.shape
        err = float(jnp.max(jnp.abs(out - ref)))
        # bf16 MXU inputs vs a pure-f32 reference -> slightly loose tolerance.
        assert jnp.allclose(out, ref, atol=3e-2, rtol=3e-2), \
            (inp, oup, stride, expand, err)

    print("KERNEL_OK")
</pallas_src>

<mosaic_0001>
module attributes {stable_mosaic.version = 11 : i64} {
  func.func @_inverted_residual_kernel(%arg0: i32, %arg1: i32, %arg2: memref<1x18x18x16xf32, #tpu.memory_space<vmem>>, %arg3: memref<16x96xbf16, #tpu.memory_space<vmem>>, %arg4: memref<1x96xf32, #tpu.memory_space<vmem>>, %arg5: memref<3x3x96xf32, #tpu.memory_space<vmem>>, %arg6: memref<1x1x96xf32, #tpu.memory_space<vmem>>, %arg7: memref<96x16xbf16, #tpu.memory_space<vmem>>, %arg8: memref<1x16xf32, #tpu.memory_space<vmem>>, %arg9: memref<1x8x16x16xf32, #tpu.memory_space<vmem>>) attributes {dimension_semantics = [#tpu.dimension_semantics<parallel>, #tpu.dimension_semantics<parallel>], iteration_bounds = array<i64: 2, 2>, scalar_prefetch = 0 : i64, scratch_operands = 0 : i64, tpu.core_type = #tpu.core_type<tc>, window_params = [{transform_indices = @transform_0, window_bounds = array<i64: 1, 18, 18, 16>}, {pipeline_mode = #tpu.pipeline_mode<synchronous>, transform_indices = @transform_1, window_bounds = array<i64: 16, 96>}, {pipeline_mode = #tpu.pipeline_mode<synchronous>, transform_indices = @transform_2, window_bounds = array<i64: 1, 96>}, {pipeline_mode = #tpu.pipeline_mode<synchronous>, transform_indices = @transform_3, window_bounds = array<i64: 3, 3, 96>}, {pipeline_mode = #tpu.pipeline_mode<synchronous>, transform_indices = @transform_4, window_bounds = array<i64: 1, 1, 96>}, {pipeline_mode = #tpu.pipeline_mode<synchronous>, transform_indices = @transform_5, window_bounds = array<i64: 96, 16>}, {pipeline_mode = #tpu.pipeline_mode<synchronous>, transform_indices = @transform_6, window_bounds = array<i64: 1, 16>}, {transform_indices = @transform_7, window_bounds = array<i64: 1, 8, 16, 16>}]} {
    %c8_i32 = arith.constant 8 : i32
    %0 = arith.muli %arg1, %c8_i32 : i32
    %1 = tpu.assume_multiple %0, 8 : i32
    %c0 = arith.constant 0 : index
    %2 = arith.index_cast %1 : i32 to index
    %c0_0 = arith.constant 0 : index
    %c0_1 = arith.constant 0 : index
    %3 = vector.load %arg2[%c0, %2, %c0_0, %c0_1] : memref<1x18x18x16xf32, #tpu.memory_space<vmem>>, vector<1x10x18x16xf32>
    %4 = vector.shape_cast %3 : vector<1x10x18x16xf32> to vector<10x18x16xf32>
    %5 = vector.shape_cast %4 : vector<10x18x16xf32> to vector<180x16xf32>
    %6 = arith.truncf %5 : vector<180x16xf32> to vector<180x16xbf16>
    %c0_2 = arith.constant 0 : index
    %c0_3 = arith.constant 0 : index
    %7 = vector.load %arg3[%c0_2, %c0_3] : memref<16x96xbf16, #tpu.memory_space<vmem>>, vector<16x96xbf16>
    %cst = arith.constant dense<0.000000e+00> : vector<180x96xf32>
    %8 = tpu.matmul %6, %7, %cst {dimension_numbers = #tpu.dot_dimension_numbers<[1], [0], [0], [1], [0, 0, 1, 1], [], []>} : vector<180x16xbf16>, vector<16x96xbf16>, vector<180x96xf32> -> vector<180x96xf32>
    %c0_4 = arith.constant 0 : index
    %c0_5 = arith.constant 0 : index
    %9 = vector.load %arg4[%c0_4, %c0_5] : memref<1x96xf32, #tpu.memory_space<vmem>>, vector<1x96xf32>
    %10 = vector.broadcast %9 : vector<1x96xf32> to vector<180x96xf32>
    %11 = arith.addf %8, %10 : vector<180x96xf32>
    %cst_6 = arith.constant 0.000000e+00 : f32
    %cst_7 = arith.constant 6.000000e+00 : f32
    %12 = vector.broadcast %cst_6 : f32 to vector<180x96xf32>
    %13 = arith.maximumf %12, %11 : vector<180x96xf32>
    %14 = vector.broadcast %cst_7 : f32 to vector<180x96xf32>
    %15 = arith.minimumf %14, %13 : vector<180x96xf32>
    %16 = vector.shape_cast %15 : vector<180x96xf32> to vector<10x18x96xf32>
    %17 = tpu.iota {dimensions = array<i32: 0>} : vector<10x18x1xi32>
    %18 = vector.broadcast %1 : i32 to vector<10x18x1xi32>
    %19 = arith.addi %17, %18 : vector<10x18x1xi32>
    %20 = tpu.iota {dimensions = array<i32: 1>} : vector<10x18x1xi32>
    %c1_i32 = arith.constant 1 : i32
    %21 = vector.broadcast %c1_i32 : i32 to vector<10x18x1xi32>
    %22 = arith.cmpi sge, %19, %21 : vector<10x18x1xi32>
    %c16_i32 = arith.constant 16 : i32
    %23 = vector.broadcast %c16_i32 : i32 to vector<10x18x1xi32>
    %24 = arith.cmpi sle, %19, %23 : vector<10x18x1xi32>
    %25 = arith.andi %22, %24 : vector<10x18x1xi1>
    %c1_i32_8 = arith.constant 1 : i32
    %26 = vector.broadcast %c1_i32_8 : i32 to vector<10x18x1xi32>
    %27 = arith.cmpi sge, %20, %26 : vector<10x18x1xi32>
    %28 = arith.andi %25, %27 : vector<10x18x1xi1>
    %c16_i32_9 = arith.constant 16 : i32
    %29 = vector.broadcast %c16_i32_9 : i32 to vector<10x18x1xi32>
    %30 = arith.cmpi sle, %20, %29 : vector<10x18x1xi32>
    %31 = arith.andi %28, %30 : vector<10x18x1xi1>
    %cst_10 = arith.constant 0.000000e+00 : f32
    %32 = vector.shape_cast %31 : vector<10x18x1xi1> to vector<10x18x1xi1>
    %33 = vector.broadcast %32 : vector<10x18x1xi1> to vector<10x18x96xi1>
    %34 = vector.broadcast %cst_10 : f32 to vector<10x18x96xf32>
    %35 = arith.select %33, %16, %34 : vector<10x18x96xi1>, vector<10x18x96xf32>
    %c0_11 = arith.constant 0 : index
    %c0_12 = arith.constant 0 : index
    %c0_13 = arith.constant 0 : index
    %36 = vector.load %arg5[%c0_11, %c0_12, %c0_13] : memref<3x3x96xf32, #tpu.memory_space<vmem>>, vector<3x3x96xf32>
    %c0_14 = arith.constant 0 : index
    %c0_15 = arith.constant 0 : index
    %c0_16 = arith.constant 0 : index
    %37 = vector.load %arg6[%c0_14, %c0_15, %c0_16] : memref<1x1x96xf32, #tpu.memory_space<vmem>>, vector<1x1x96xf32>
    %cst_17 = arith.constant 0.000000e+00 : f32
    %38 = vector.broadcast %cst_17 : f32 to vector<8x16x96xf32>
    %39 = vector.extract_strided_slice %35 {offsets = [0, 0, 0], sizes = [10, 16, 96], strides = [1, 1, 1]} : vector<10x18x96xf32> to vector<10x16x96xf32>
    %40 = vector.extract_strided_slice %39 {offsets = [0, 0, 0], sizes = [8, 16, 96], strides = [1, 1, 1]} : vector<10x16x96xf32> to vector<8x16x96xf32>
    %41 = vector.extract_strided_slice %36 {offsets = [0, 0, 0], sizes = [1, 1, 96], strides = [1, 1, 1]} : vector<3x3x96xf32> to vector<1x1x96xf32>
    %42 = vector.shape_cast %41 : vector<1x1x96xf32> to vector<96xf32>
    %43 = vector.shape_cast %42 : vector<96xf32> to vector<1x1x96xf32>
    %44 = vector.broadcast %43 : vector<1x1x96xf32> to vector<8x16x96xf32>
    %45 = arith.mulf %40, %44 : vector<8x16x96xf32>
    %46 = arith.addf %38, %45 : vector<8x16x96xf32>
    %47 = vector.extract_strided_slice %39 {offsets = [1, 0, 0], sizes = [8, 16, 96], strides = [1, 1, 1]} : vector<10x16x96xf32> to vector<8x16x96xf32>
    %48 = vector.extract_strided_slice %36 {offsets = [1, 0, 0], sizes = [1, 1, 96], strides = [1, 1, 1]} : vector<3x3x96xf32> to vector<1x1x96xf32>
    %49 = vector.shape_cast %48 : vector<1x1x96xf32> to vector<96xf32>
    %50 = vector.shape_cast %49 : vector<96xf32> to vector<1x1x96xf32>
    %51 = vector.broadcast %50 : vector<1x1x96xf32> to vector<8x16x96xf32>
    %52 = arith.mulf %47, %51 : vector<8x16x96xf32>
    %53 = arith.addf %46, %52 : vector<8x16x96xf32>
    %54 = vector.extract_strided_slice %39 {offsets = [2, 0, 0], sizes = [8, 16, 96], strides = [1, 1, 1]} : vector<10x16x96xf32> to vector<8x16x96xf32>
    %55 = vector.extract_strided_slice %36 {offsets = [2, 0, 0], sizes = [1, 1, 96], strides = [1, 1, 1]} : vector<3x3x96xf32> to vector<1x1x96xf32>
    %56 = vector.shape_cast %55 : vector<1x1x96xf32> to vector<96xf32>
    %57 = vector.shape_cast %56 : vector<96xf32> to vector<1x1x96xf32>
    %58 = vector.broadcast %57 : vector<1x1x96xf32> to vector<8x16x96xf32>
    %59 = arith.mulf %54, %58 : vector<8x16x96xf32>
    %60 = arith.addf %53, %59 : vector<8x16x96xf32>
    %61 = vector.extract_strided_slice %35 {offsets = [0, 1, 0], sizes = [10, 16, 96], strides = [1, 1, 1]} : vector<10x18x96xf32> to vector<10x16x96xf32>
    %62 = vector.extract_strided_slice %61 {offsets = [0, 0, 0], sizes = [8, 16, 96], strides = [1, 1, 1]} : vector<10x16x96xf32> to vector<8x16x96xf32>
    %63 = vector.extract_strided_slice %36 {offsets = [0, 1, 0], sizes = [1, 1, 96], strides = [1, 1, 1]} : vector<3x3x96xf32> to vector<1x1x96xf32>
    %64 = vector.shape_cast %63 : vector<1x1x96xf32> to vector<96xf32>
    %65 = vector.shape_cast %64 : vector<96xf32> to vector<1x1x96xf32>
    %66 = vector.broadcast %65 : vector<1x1x96xf32> to vector<8x16x96xf32>
    %67 = arith.mulf %62, %66 : vector<8x16x96xf32>
    %68 = arith.addf %60, %67 : vector<8x16x96xf32>
    %69 = vector.extract_strided_slice %61 {offsets = [1, 0, 0], sizes = [8, 16, 96], strides = [1, 1, 1]} : vector<10x16x96xf32> to vector<8x16x96xf32>
    %70 = vector.extract_strided_slice %36 {offsets = [1, 1, 0], sizes = [1, 1, 96], strides = [1, 1, 1]} : vector<3x3x96xf32> to vector<1x1x96xf32>
    %71 = vector.shape_cast %70 : vector<1x1x96xf32> to vector<96xf32>
    %72 = vector.shape_cast %71 : vector<96xf32> to vector<1x1x96xf32>
    %73 = vector.broadcast %72 : vector<1x1x96xf32> to vector<8x16x96xf32>
    %74 = arith.mulf %69, %73 : vector<8x16x96xf32>
    %75 = arith.addf %68, %74 : vector<8x16x96xf32>
    %76 = vector.extract_strided_slice %61 {offsets = [2, 0, 0], sizes = [8, 16, 96], strides = [1, 1, 1]} : vector<10x16x96xf32> to vector<8x16x96xf32>
    %77 = vector.extract_strided_slice %36 {offsets = [2, 1, 0], sizes = [1, 1, 96], strides = [1, 1, 1]} : vector<3x3x96xf32> to vector<1x1x96xf32>
    %78 = vector.shape_cast %77 : vector<1x1x96xf32> to vector<96xf32>
    %79 = vector.shape_cast %78 : vector<96xf32> to vector<1x1x96xf32>
    %80 = vector.broadcast %79 : vector<1x1x96xf32> to vector<8x16x96xf32>
    %81 = arith.mulf %76, %80 : vector<8x16x96xf32>
    %82 = arith.addf %75, %81 : vector<8x16x96xf32>
    %83 = vector.extract_strided_slice %35 {offsets = [0, 2, 0], sizes = [10, 16, 96], strides = [1, 1, 1]} : vector<10x18x96xf32> to vector<10x16x96xf32>
    %84 = vector.extract_strided_slice %83 {offsets = [0, 0, 0], sizes = [8, 16, 96], strides = [1, 1, 1]} : vector<10x16x96xf32> to vector<8x16x96xf32>
    %85 = vector.extract_strided_slice %36 {offsets = [0, 2, 0], sizes = [1, 1, 96], strides = [1, 1, 1]} : vector<3x3x96xf32> to vector<1x1x96xf32>
    %86 = vector.shape_cast %85 : vector<1x1x96xf32> to vector<96xf32>
    %87 = vector.shape_cast %86 : vector<96xf32> to vector<1x1x96xf32>
    %88 = vector.broadcast %87 : vector<1x1x96xf32> to vector<8x16x96xf32>
    %89 = arith.mulf %84, %88 : vector<8x16x96xf32>
    %90 = arith.addf %82, %89 : vector<8x16x96xf32>
    %91 = vector.extract_strided_slice %83 {offsets = [1, 0, 0], sizes = [8, 16, 96], strides = [1, 1, 1]} : vector<10x16x96xf32> to vector<8x16x96xf32>
    %92 = vector.extract_strided_slice %36 {offsets = [1, 2, 0], sizes = [1, 1, 96], strides = [1, 1, 1]} : vector<3x3x96xf32> to vector<1x1x96xf32>
    %93 = vector.shape_cast %92 : vector<1x1x96xf32> to vector<96xf32>
    %94 = vector.shape_cast %93 : vector<96xf32> to vector<1x1x96xf32>
    %95 = vector.broadcast %94 : vector<1x1x96xf32> to vector<8x16x96xf32>
    %96 = arith.mulf %91, %95 : vector<8x16x96xf32>
    %97 = arith.addf %90, %96 : vector<8x16x96xf32>
    %98 = vector.extract_strided_slice %83 {offsets = [2, 0, 0], sizes = [8, 16, 96], strides = [1, 1, 1]} : vector<10x16x96xf32> to vector<8x16x96xf32>
    %99 = vector.extract_strided_slice %36 {offsets = [2, 2, 0], sizes = [1, 1, 96], strides = [1, 1, 1]} : vector<3x3x96xf32> to vector<1x1x96xf32>
    %100 = vector.shape_cast %99 : vector<1x1x96xf32> to vector<96xf32>
    %101 = vector.shape_cast %100 : vector<96xf32> to vector<1x1x96xf32>
    %102 = vector.broadcast %101 : vector<1x1x96xf32> to vector<8x16x96xf32>
    %103 = arith.mulf %98, %102 : vector<8x16x96xf32>
    %104 = arith.addf %97, %103 : vector<8x16x96xf32>
    %105 = vector.broadcast %37 : vector<1x1x96xf32> to vector<8x16x96xf32>
    %106 = arith.addf %104, %105 : vector<8x16x96xf32>
    %cst_18 = arith.constant 0.000000e+00 : f32
    %cst_19 = arith.constant 6.000000e+00 : f32
    %107 = vector.broadcast %cst_18 : f32 to vector<8x16x96xf32>
    %108 = arith.maximumf %107, %106 : vector<8x16x96xf32>
    %109 = vector.broadcast %cst_19 : f32 to vector<8x16x96xf32>
    %110 = arith.minimumf %109, %108 : vector<8x16x96xf32>
    %111 = vector.shape_cast %110 : vector<8x16x96xf32> to vector<128x96xf32>
    %112 = arith.truncf %111 : vector<128x96xf32> to vector<128x96xbf16>
    %c0_20 = arith.constant 0 : index
    %c0_21 = arith.constant 0 : index
    %113 = vector.load %arg7[%c0_20, %c0_21] : memref<96x16xbf16, #tpu.memory_space<vmem>>, vector<96x16xbf16>
    %cst_22 = arith.constant dense<0.000000e+00> : vector<128x16xf32>
    %114 = tpu.matmul %112, %113, %cst_22 {dimension_numbers = #tpu.dot_dimension_numbers<[1], [0], [0], [1], [0, 0, 1, 1], [], []>} : vector<128x96xbf16>, vector<96x16xbf16>, vector<128x16xf32> -> vector<128x16xf32>
    %c0_23 = arith.constant 0 : index
    %c0_24 = arith.constant 0 : index
    %115 = vector.load %arg8[%c0_23, %c0_24] : memref<1x16xf32, #tpu.memory_space<vmem>>, vector<1x16xf32>
    %116 = vector.broadcast %115 : vector<1x16xf32> to vector<128x16xf32>
    %117 = arith.addf %114, %116 : vector<128x16xf32>
    %118 = vector.extract_strided_slice %4 {offsets = [1, 1, 0], sizes = [8, 16, 16], strides = [1, 1, 1]} : vector<10x18x16xf32> to vector<8x16x16xf32>
    %119 = vector.shape_cast %118 : vector<8x16x16xf32> to vector<128x16xf32>
    %120 = arith.addf %117, %119 : vector<128x16xf32>
    %121 = vector.shape_cast %120 : vector<128x16xf32> to vector<8x16x16xf32>
    %c0_25 = arith.constant 0 : index
    %c0_26 = arith.constant 0 : index
    %c0_27 = arith.constant 0 : index
    %c0_28 = arith.constant 0 : index
    %122 = vector.load %arg9[%c0_25, %c0_26, %c0_27, %c0_28] : memref<1x8x16x16xf32, #tpu.memory_space<vmem>>, vector<1x8x16x16xf32>
    %123 = vector.shape_cast %122 : vector<1x8x16x16xf32> to vector<8x16x16xf32>
    %124 = vector.shape_cast %121 : vector<8x16x16xf32> to vector<1x8x16x16xf32>
    tpu.vector_store %arg9[%c0_25, %c0_26, %c0_27, %c0_28], %124 {strides = array<i32>} : memref<1x8x16x16xf32, #tpu.memory_space<vmem>>, vector<1x8x16x16xf32>,
    return
  }
  func.func @transform_0(%arg0: i32, %arg1: i32) -> (i32, i32, i32, i32) {
    %c0_i32 = arith.constant 0 : i32
    %c0_i32_0 = arith.constant 0 : i32
    %c0_i32_1 = arith.constant 0 : i32
    %c0_i32_2 = arith.constant 0 : i32
    return %arg0, %c0_i32, %c0_i32_0, %c0_i32_1 : i32, i32, i32, i32
  }
  func.func @transform_1(%arg0: i32, %arg1: i32) -> (i32, i32) {
    %c0_i32 = arith.constant 0 : i32
    %c0_i32_0 = arith.constant 0 : i32
    %c0_i32_1 = arith.constant 0 : i32
    return %c0_i32, %c0_i32_0 : i32, i32
  }
  func.func @transform_2(%arg0: i32, %arg1: i32) -> (i32, i32) {
    %c0_i32 = arith.constant 0 : i32
    %c0_i32_0 = arith.constant 0 : i32
    %c0_i32_1 = arith.constant 0 : i32
    return %c0_i32, %c0_i32_0 : i32, i32
  }
  func.func @transform_3(%arg0: i32, %arg1: i32) -> (i32, i32, i32) {
    %c0_i32 = arith.constant 0 : i32
    %c0_i32_0 = arith.constant 0 : i32
    %c0_i32_1 = arith.constant 0 : i32
    %c0_i32_2 = arith.constant 0 : i32
    return %c0_i32, %c0_i32_0, %c0_i32_1 : i32, i32, i32
  }
  func.func @transform_4(%arg0: i32, %arg1: i32) -> (i32, i32, i32) {
    %c0_i32 = arith.constant 0 : i32
    %c0_i32_0 = arith.constant 0 : i32
    %c0_i32_1 = arith.constant 0 : i32
    %c0_i32_2 = arith.constant 0 : i32
    return %c0_i32, %c0_i32_0, %c0_i32_1 : i32, i32, i32
  }
  func.func @transform_5(%arg0: i32, %arg1: i32) -> (i32, i32) {
    %c0_i32 = arith.constant 0 : i32
    %c0_i32_0 = arith.constant 0 : i32
    %c0_i32_1 = arith.constant 0 : i32
    return %c0_i32, %c0_i32_0 : i32, i32
  }
  func.func @transform_6(%arg0: i32, %arg1: i32) -> (i32, i32) {
    %c0_i32 = arith.constant 0 : i32
    %c0_i32_0 = arith.constant 0 : i32
    %c0_i32_1 = arith.constant 0 : i32
    return %c0_i32, %c0_i32_0 : i32, i32
  }
  func.func @transform_7(%arg0: i32, %arg1: i32) -> (i32, i32, i32, i32) {
    %c0_i32 = arith.constant 0 : i32
    %c0_i32_0 = arith.constant 0 : i32
    %c0_i32_1 = arith.constant 0 : i32
    return %arg0, %arg1, %c0_i32, %c0_i32_0 : i32, i32, i32, i32
  }
}

</mosaic_0001>

<bundles_post_ra>
// kernel: tpu_custom_call.1
= control target key start
LH: loop header
LB: loop body
LE: loop exit
PB: predicated region body
PF: predicated region fallthrough
CT: control target
= control target key end

     0   :  { %s6668_s0 = inlined_call_operand.hbm [shape: f32[2,18,18,16], index: 0, kind: input, shape index: {}]   ;;  %s6669_s1 = inlined_call_operand.hbm [shape: bf16[16,96], index: 1, kind: input, shape index: {}]   ;;  %s6670_s2 = inlined_call_operand.hbm [shape: f32[1,96], index: 2, kind: input, shape index: {}]   ;;  %s6671_s3 = inlined_call_operand.hbm [shape: f32[3,3,96], index: 3, kind: input, shape index: {}]   ;;  %s6672_s4 = inlined_call_operand.hbm [shape: f32[1,1,96], index: 4, kind: input, shape index: {}]   ;;  %s6673_s5 = inlined_call_operand.hbm [shape: bf16[96,16], index: 5, kind: input, shape index: {}]   ;;  %s6674_s6 = inlined_call_operand.hbm [shape: f32[1,16], index: 6, kind: input, shape index: {}]   ;;  %s6675_s7 = inlined_call_operand.hbm [shape: f32[2,16,16,16], index: 7, kind: output, shape index: {}]  }
   0x1   :  { %6740 = sst [smem:[#allocation75_spill]] %s6668_s0 }
   0x2   :  { %6741 = sst [smem:[#allocation76_spill]] %s6669_s1 }
   0x3   :  { %6742 = sst [smem:[#allocation77_spill]] %s6670_s2 }
   0x4   :  { %6743 = sst [smem:[#allocation78_spill]] %s6671_s3 }
   0x5   :  { %6744 = sst [smem:[#allocation79_spill]] %s6672_s4 }
   0x6   :  { %6745 = sst [smem:[#allocation80_spill]] %s6675_s7 }
   0x7   :  { %12 = vsyncpa [#allocation3], 0 }
   0x8   :  { %14 = vsyncpa [#allocation3 + $0x1], 0 }
   0x9   :  { %15 = vsyncpa [#allocation6], 0 }
   0xa   :  { %16 = vsyncpa [#allocation9], 0 }
   0xb   :  { %17 = vsyncpa [#allocation12], 0 }
   0xc   :  { %18 = vsyncpa [#allocation4], 0 }
   0xd   :  { %20 = vsyncpa [#allocation4 + $0x1], 0  ;;  %s4667_s24 = smov 0   ;;  %s4669_s25 = smov 0  }
   0xe   :  { %s4671_s26 = smov 0   ;;  %s4673_s27 = smov 0  }
   0xf   :  { %s4675_s28 = smov 0   ;;  %s4677_s29 = smov 0  }
  0x10   :  { %s4679_s30 = smov 0   ;;  %s4681_s8 = smov 0  }
  0x11   :  { %s4683_s9 = smov 0   ;;  %s4685_s10 = smov 0  }
  0x12   :  { %s4687_s11 = smov 0  }
  0x13 LB: > { %6746 = sst [smem:[#allocation20_spill]] %s4570_s24  ;;  %s3903_s12 = sadd.s32 4294967295, %s4610_s11   ;;  %s4610_s11 = sphi %s4687_s11, %s26_s11   ;;  %s4606_s10 = sphi %s4685_s10, %s6980_s10   ;;  %s4602_s9 = sphi %s4683_s9, %s6979_s9   ;;  %s4598_s8 = sphi %s4681_s8, %s6978_s8   ;;  %s4594_s30 = sphi %s4679_s30, %s6977_s30   ;;  %s4590_s29 = sphi %s4677_s29, %s6976_s29   ;;  %s4586_s28 = sphi %s4675_s28, %s6975_s28   ;;  %s4582_s27 = sphi %s4673_s27, %s6974_s27   ;;  %s4578_s26 = sphi %s4671_s26, %s6973_s26   ;;  %s4574_s25 = sphi %s4669_s25, %s6972_s25   ;;  %s4570_s24 = sphi %s4667_s24, %s6971_s24  }
  0x14   : > { %6747 = sst [smem:[#allocation21_spill]] %s4594_s30  ;;  %p3905_p0 = scmp.ge.s32.totalorder %s4610_s11, 1 }
  0x15   : > { %6748 = sst [smem:[#allocation22_spill]] %s4598_s8  ;;  %p4724_p1 = scmp.eq.s32.totalorder %s3903_s12, 0 }
  0x16   : > { %p4728_p2 = scmp.eq.s32.totalorder %s3903_s12, 3  ;;  %p223_p3 = scmp.lt.s32.totalorder %s4610_s11, 5 }
  0x17   : > { %s6749_s13 = scalar_select %p4724_p1, 1, 0 }
  0x18   : > { %s6750_s14 = scalar_select %p4728_p2, 1, 0 }
  0x19   : > { %p4733_p4 = pnand %p3905_p0, %p223_p3  ;;  %s4612_s16 = smov [#allocation5]  }
  0x1a   : > { %6751 = sst [smem:[#allocation23_spill]] %s6750_s14  ;;  %s235_s17 = sshll.u32 %s4612_s16, 4  ;;  %s4737_s17 = int_to_ptr.vmem [resolvable:$true] %s235_s17 }
  0x1b   : > { %s6752_s15 = scalar_select %p4733_p4, 1, 0 }
  0x1c   : > { %p4076_p5 = pneg %p4733_p4  ;;  %s4613_s19 = smov [#allocation8]  }
  0x1d   : > { %6753 = sst [smem:[#allocation24_spill]] %s6752_s15  ;;  %s259_s20 = sshll.u32 %s4613_s19, 4  ;;  %s4747_s20 = int_to_ptr.vmem [resolvable:$true] %s259_s20 }
  0x1e   : > { %p4743_p6 = pnand %p4076_p5, %p4724_p1  ;;  %s4614_s21 = smov [#allocation11]  }
  0x1f   : > { %s283_s22 = sshll.u32 %s4614_s21, 4  ;;  %s6755_s1 = sld [smem:[#allocation76_spill]]  ;;  %s4749_s22 = int_to_ptr.vmem [resolvable:$true] %s283_s22 }
  0x20   : > { %p4759_p8 = pneg %p4743_p6 }
  0x25   : > { %s4278_s16 = scalar_lea.hbm %s6755_s1, 128 }
  0x26   : > { %p4279_p7 = scmp.ne.s32.totalorder %s6755_s1, %s4278_s16  ;;  %p4285_p11 = scmp.lt.u32.totalorder %s4278_s16, %s6755_s1 }
  0x28   : > { %p4281_p9 = pnand %p4759_p8, %p4279_p7 }
  0x2a   : > { %p4282_p10 = pneg %p4281_p9 }
  0x2c   : > { %p4287_p12 = pnand %p4285_p11, %p4282_p10 }
  0x2e   : > { %4290 = shalt.err (!%p4287_p12)
}
  0x2f   : > { %s4291_s7 = scalar_lea.vmem %s4737_s17, 128  ;;  %p4299_p5 = scmp.lt.s32.totalorder %s4737_s17, %s4737_s17 }
  0x30   : > { %p4292_p13 = scmp.ne.s32.totalorder %s4737_s17, %s4291_s7  ;;  %p4300_p4 = scmp.lt.s32.totalorder %s4291_s7, %s4291_s7 }
  0x32   : > { %p4294_p0 = pnand %p4292_p13, %p4759_p8  ;;  %p4301_p7 = por %p4300_p4, %p4299_p5 }
  0x34   : > { %p4295_p3 = pneg %p4294_p0 }
  0x36   : > { %p4302_p9 = pnand %p4301_p7, %p4295_p3 }
  0x38   : > { %4305 = shalt.err (!%p4302_p9)
}
  0x39   : > { %s4615_s8 = smov 64   ;;  %s4616_s23 = smov 4  }
  0x3a   : > { %4079 = dma.hbm_to_vmem [thread:$0]  (!%p4743_p6), %s6755_s1, 128, %s4737_s17, [#allocation6], %s4615_s8, %s4615_s8, %s4616_s23  }
  0x3b   : > { %s6757_s3 = sld [smem:[#allocation78_spill]] }
  0x41   : > { %s4306_s7 = scalar_lea.hbm %s6757_s3, 192 }
  0x42   : > { %p4307_p4 = scmp.ne.s32.totalorder %s6757_s3, %s4306_s7  ;;  %p4313_p12 = scmp.lt.u32.totalorder %s4306_s7, %s6757_s3 }
  0x44   : > { %p4309_p10 = pnand %p4307_p4, %p4759_p8 }
  0x46   : > { %p4310_p11 = pneg %p4309_p10 }
  0x48   : > { %p4315_p13 = pnand %p4313_p12, %p4310_p11 }
  0x4a   : > { %4318 = shalt.err (!%p4315_p13)
}
  0x4b   : > { %s4319_s17 = scalar_lea.vmem %s4747_s20, 192  ;;  %p4327_p7 = scmp.lt.s32.totalorder %s4747_s20, %s4747_s20 }
  0x4c   : > { %p4320_p0 = scmp.ne.s32.totalorder %s4747_s20, %s4319_s17  ;;  %p4328_p9 = scmp.lt.s32.totalorder %s4319_s17, %s4319_s17 }
  0x4e   : > { %p4322_p3 = pnand %p4320_p0, %p4759_p8  ;;  %p4329_p4 = por %p4328_p9, %p4327_p7 }
  0x50   : > { %p4323_p5 = pneg %p4322_p3 }
  0x52   : > { %p4330_p10 = pnand %p4329_p4, %p4323_p5 }
  0x54   : > { %4333 = shalt.err (!%p4330_p10)
}
  0x55   : > { %4085 = dma.hbm_to_vmem [thread:$0]  (!%p4743_p6), %s6757_s3, 192, %s4747_s20, [#allocation9], %s4615_s8, %s4615_s8, %s4616_s23  }
  0x56   : > { %s4334_s12 = scalar_lea.hbm %s6673_s5, 768 }
  0x57   : > { %p4335_p11 = scmp.ne.s32.totalorder %s6673_s5, %s4334_s12  ;;  %p4341_p0 = scmp.lt.u32.totalorder %s4334_s12, %s6673_s5 }
  0x59   : > { %p4337_p12 = pnand %p4335_p11, %p4759_p8 }
  0x5b   : > { %p4338_p13 = pneg %p4337_p12 }
  0x5d   : > { %p4343_p3 = pnand %p4341_p0, %p4338_p13 }
  0x5f   : > { %4346 = shalt.err (!%p4343_p3)
}
  0x60   : > { %s4347_s20 = scalar_lea.vmem %s4749_s22, 768  ;;  %p4355_p4 = scmp.lt.s32.totalorder %s4749_s22, %s4749_s22 }
  0x61   : > { %p4348_p5 = scmp.ne.s32.totalorder %s4749_s22, %s4347_s20  ;;  %p4356_p10 = scmp.lt.s32.totalorder %s4347_s20, %s4347_s20 }
  0x63   : > { %p4350_p7 = pnand %p4348_p5, %p4759_p8  ;;  %p4357_p11 = por %p4356_p10, %p4355_p4 }
  0x65   : > { %p4351_p9 = pneg %p4350_p7 }
  0x67   : > { %p4358_p12 = pnand %p4357_p11, %p4351_p9 }
  0x69   : > { %4361 = shalt.err (!%p4358_p12)
}
  0x6a   : > { %4091 = dma.hbm_to_vmem [thread:$0]  (!%p4743_p6), %s6673_s5, 768, %s4749_s22, [#allocation12], %s4615_s8, %s4615_s8, %s4616_s23  }
  0x6b   : > { %s4617_s24 = smov [#allocation7]   ;;  %s4618_s15 = smov [#allocation10]  }
  0x6c   : > { %s249_s14 = sshll.u32 %s4617_s24, 4  ;;  %s273_s12 = sshll.u32 %s4618_s15, 4  ;;  %s250_s14 = int_to_ptr.vmem [resolvable:$true] %s249_s14  ;;  %s4835_s12 = int_to_ptr.vmem [resolvable:$true] %s273_s12 }
  0x6d   : > { %s6758_s2 = sld [smem:[#allocation77_spill]] }
  0x73   : > { %s4362_s21 = scalar_lea.hbm %s6758_s2, 16 }
  0x74   : > { %p4363_p13 = scmp.ne.s32.totalorder %s6758_s2, %s4362_s21  ;;  %p4369_p5 = scmp.lt.u32.totalorder %s4362_s21, %s6758_s2 }
  0x76   : > { %p4365_p0 = pnand %p4363_p13, %p4759_p8 }
  0x78   : > { %p4366_p3 = pneg %p4365_p0 }
  0x7a   : > { %p4371_p7 = pnand %p4369_p5, %p4366_p3 }
  0x7c   : > { %4374 = shalt.err (!%p4371_p7)
}
  0x7d   : > { %s4375_s8 = scalar_lea.vmem %s250_s14, 16  ;;  %s4382_s23 = scalar_lea.vmem %s250_s14, 32 }
  0x7e   : > { %p4376_p9 = scmp.ne.s32.totalorder %s250_s14, %s4375_s8  ;;  %p4383_p11 = scmp.lt.s32.totalorder %s250_s14, %s250_s14 }
  0x7f   : > { %p4384_p12 = scmp.lt.s32.totalorder %s4382_s23, %s4375_s8 }
  0x80   : > { %p4378_p4 = pnand %p4376_p9, %p4759_p8 }
  0x81   : > { %p4385_p2 = por %p4384_p12, %p4383_p11 }
  0x82   : > { %p4379_p10 = pneg %p4378_p4 }
  0x84   : > { %p4386_p1 = pnand %p4385_p2, %p4379_p10 }
  0x86   : > { %4389 = shalt.err (!%p4386_p1)
}
  0x87   : > { %4082 = dma.hbm_to_vmem [thread:$0]  (!%p4743_p6), %s6758_s2, 16, %s250_s14, [#allocation6]  }
  0x88   : > { %s6759_s4 = sld [smem:[#allocation79_spill]] }
  0x8e   : > { %s4390_s19 = scalar_lea.hbm %s6759_s4, 16 }
  0x8f   : > { %p4391_p13 = scmp.ne.s32.totalorder %s6759_s4, %s4390_s19  ;;  %p4397_p1 = scmp.lt.u32.totalorder %s4390_s19, %s6759_s4 }
  0x91   : > { %p4393_p0 = pnand %p4391_p13, %p4759_p8 }
  0x93   : > { %p4394_p3 = pneg %p4393_p0 }
  0x95   : > { %p4399_p2 = pnand %p4397_p1, %p4394_p3 }
  0x97   : > { %4402 = shalt.err (!%p4399_p2)
}
  0x98   : > { %s4403_s14 = scalar_lea.vmem %s4835_s12, 16  ;;  %s4410_s22 = scalar_lea.vmem %s4835_s12, 32 }
  0x99   : > { %p4404_p5 = scmp.ne.s32.totalorder %s4835_s12, %s4403_s14  ;;  %p4411_p4 = scmp.lt.s32.totalorder %s4835_s12, %s4835_s12 }
  0x9a   : > { %p4412_p10 = scmp.lt.s32.totalorder %s4410_s22, %s4403_s14 }
  0x9b   : > { %p4406_p7 = pnand %p4404_p5, %p4759_p8 }
  0x9c   : > { %p4413_p11 = por %p4412_p10, %p4411_p4 }
  0x9d   : > { %p4407_p9 = pneg %p4406_p7 }
  0x9f   : > { %p4414_p12 = pnand %p4413_p11, %p4407_p9 }
  0xa1   : > { %4417 = shalt.err (!%p4414_p12)
}
  0xa2   : > { %4088 = dma.hbm_to_vmem [thread:$0]  (!%p4743_p6), %s6759_s4, 16, %s4835_s12, [#allocation9]  }
  0xa3   : > { %s4619_s0 = smov [#allocation13]   ;;  %s4418_s19 = scalar_lea.hbm %s6674_s6, 16 }
  0xa4   : > { %s297_s24 = sshll.u32 %s4619_s0, 4  ;;  %p4419_p13 = scmp.ne.s32.totalorder %s6674_s6, %s4418_s19  ;;  %s298_s24 = int_to_ptr.vmem [resolvable:$true] %s297_s24 }
  0xa5   : > { %p4425_p1 = scmp.lt.u32.totalorder %s4418_s19, %s6674_s6 }
  0xa6   : > { %p4421_p0 = pnand %p4419_p13, %p4759_p8 }
  0xa8   : > { %p4422_p3 = pneg %p4421_p0 }
  0xaa   : > { %p4427_p2 = pnand %p4425_p1, %p4422_p3 }
  0xac   : > { %4430 = shalt.err (!%p4427_p2)
}
  0xad   : > { %s4431_s12 = scalar_lea.vmem %s298_s24, 16  ;;  %s4438_s14 = scalar_lea.vmem %s298_s24, 32 }
  0xae   : > { %p4432_p5 = scmp.ne.s32.totalorder %s298_s24, %s4431_s12  ;;  %p4439_p4 = scmp.lt.s32.totalorder %s298_s24, %s298_s24 }
  0xaf   : > { %p4440_p10 = scmp.lt.s32.totalorder %s4438_s14, %s4431_s12 }
  0xb0   : > { %p4434_p7 = pnand %p4432_p5, %p4759_p8 }
  0xb1   : > { %p4441_p11 = por %p4440_p10, %p4439_p4 }
  0xb2   : > { %p4435_p9 = pneg %p4434_p7 }
  0xb4   : > { %p4442_p12 = pnand %p4441_p11, %p4435_p9 }
  0xb6   : > { %4445 = shalt.err (!%p4442_p12)
}
  0xb7   : > { %4094 = dma.hbm_to_vmem [thread:$0]  (!%p4743_p6), %s6674_s6, 16, %s298_s24, [#allocation12]  }
  0xb8   : > { %s3904_s30 = sadd.s32 4294967294, %s4610_s11   ;;  %s35_s18 = sadd.s32 1, %s4602_s9 }
  0xb9   : > { %s6760_s23 = sld [smem:[#allocation20_spill]]  ;;  %s38_s0 = sadd.s32 1, %s4606_s10 }
  0xba   : > { %p36_p8 = scmp.ge.s32.totalorder %s35_s18, 2  ;;  %s45_s15 = sadd.s32 1, %s4590_s29 }
  0xbb   : > { %p52_p13 = scmp.ne.s32.totalorder %s4590_s29, %s4586_s28  ;;  %p53_p0 = scmp.eq.s32.totalorder %s4610_s11, 0 }
  0xbc   : > { %s6982_s18 = smov (%p36_p8, %s35_s18), 0  ;;  %s6761_s16 = sld [smem:[#allocation23_spill]] }
  0xbd   : > { %s6984_s0 = smov (!%p36_p8, %s38_s0), %s4606_s10  ;;  %p4907_p3 = por %p53_p0, %p52_p13 }
  0xbe   : > { %p58_p6 = scmp.ne.s32.totalorder %s4586_s28, %s4582_s27  ;;  %p40_p1 = scmp.ge.s32.totalorder %s6984_s0, 2 }
  0xbf   : > { %s195_s19 = ssub.s32 %s4602_s9, %s6982_s18  ;;  %p6763_p2 = scmp.ne.s32.totalorder %s6749_s13, 0 }
  0xc0   : > { %s199_s7 = sadd.s32 1, %s4578_s26  ;;  %s6986_s0 = smov (%p40_p1, %s6984_s0), 0 }
  0xc1   : > { %p4917_p5 = por %p6763_p2, %p58_p6  ;;  %p209_p7 = scmp.ne.s32.totalorder %s4578_s26, %s4574_s25 }
  0xc2   : > { %p215_p9 = scmp.ne.s32.totalorder %s4574_s25, %s6760_s23  ;;  %s42_s20 = ssub.s32 %s4606_s10, %s6986_s0 }
  0xc3   : > { %p216_p4 = scmp.eq.s32.totalorder %s3904_s30, 3  ;;  %p43_p10 = scmp.eq.s32.totalorder %s42_s20, 0 }
  0xc4   : > { %s196_s27 = sor.u32 %s195_s19, %s42_s20  ;;  %p6765_p12 = scmp.ne.s32.totalorder %s6761_s16, 0 }
  0xc5   : > { %p197_p11 = scmp.eq.s32.totalorder %s196_s27, 0  ;;  %p4942_p13 = por %p216_p4, %p215_p9 }
  0xc6   : > { %p4932_p8 = por %p6765_p12, %p209_p7  ;;  %p4109_p0 = scmp.lt.s32.totalorder %s4610_s11, 4 }
  0xc7   : > { %s4937_s12 = scalar_select %p43_p10, %s4590_s29, %s45_s15  }
  0xc8   : > { %s6766_s17 = scalar_select %p4932_p8, 1, 0 }
  0xc9   : > { %s4940_s14 = scalar_select %p197_p11, %s4578_s26, %s199_s7  }
  0xca   : > { %s6767_s22 = scalar_select %p4942_p13, 1, 0 }
  0xcb   : > { %s308_s8 = sand.u32 1, %s4590_s29   ;;  %s4046_s23 = smul.u32 6912, %s4606_s10 }
  0xcc   : > { %s4045_s30 = smul.u32 432, %s308_s8  ;;  %s6768_s20 = sld [smem:[#allocation75_spill]] }
  0xcd   : > { %p4956_p6 = pnand %p4109_p0, %p4907_p3  ;;  %s4962_s2 = scalar_lea.sflag [#allocation3], %s308_s8 }
  0xce   : > { %s312_s7 = scalar_lea.vmem [#allocation2], %s4045_s30 }
  0xcf   : > { %s319_s27 = sshll.u32 %s312_s7, 4  ;;  %p4448_p2 = pneg %p4956_p6  ;;  %s4960_s27 = int_to_ptr.vmem [resolvable:$true] %s319_s27 }
  0xd2   : > { %s4952_s16 = scalar_lea.hbm %s6768_s20, %s4046_s23  ;;  %s4451_s19 = scalar_lea.hbm %s6768_s20, 13824 }
  0xd3   : > { %s4446_s1 = scalar_lea.hbm %s4952_s16, 6912  ;;  %p4452_p3 = scmp.lt.u32.totalorder %s4952_s16, %s6768_s20 }
  0xd4   : > { %p4447_p1 = scmp.ne.s32.totalorder %s4952_s16, %s4446_s1  ;;  %p4453_p4 = scmp.lt.u32.totalorder %s4451_s19, %s4446_s1 }
  0xd5   : > { %p4455_p11 = scmp.lt.u32.totalorder %s4446_s1, %s4952_s16 }
  0xd6   : > { %p4449_p7 = pnand %p4448_p2, %p4447_p1  ;;  %p4454_p10 = por %p4453_p4, %p4452_p3 }
  0xd8   : > { %p4450_p9 = pneg %p4449_p7  ;;  %p4456_p12 = por %p4455_p11, %p4454_p10 }
  0xda   : > { %p4457_p0 = pnand %p4456_p12, %p4450_p9 }
  0xdc   : > { %4460 = shalt.err (!%p4457_p0)
}
  0xdd   : > { %s4461_s8 = scalar_lea.vmem %s4960_s27, 6912  ;;  %s4620_s30 = smov [#allocation2]  }
  0xde   : > { %p4462_p1 = scmp.ne.s32.totalorder %s4960_s27, %s4461_s8  ;;  %s4466_s7 = sshll.u32 %s4620_s30, 4  ;;  %s4467_s7 = int_to_ptr.vmem [resolvable:$false] %s4466_s7 }
  0xdf   : > { %s4468_s3 = scalar_lea.vmem %s4467_s7, 13824  ;;  %p4469_p8 = scmp.lt.s32.totalorder %s4960_s27, %s4467_s7 }
  0xe0   : > { %p4464_p7 = pnand %p4462_p1, %p4448_p2  ;;  %p4470_p3 = scmp.lt.s32.totalorder %s4468_s3, %s4461_s8 }
  0xe2   : > { %p4465_p13 = pneg %p4464_p7  ;;  %p4471_p4 = por %p4470_p3, %p4469_p8 }
  0xe4   : > { %p4472_p10 = pnand %p4471_p4, %p4465_p13 }
  0xe6   : > { %4475 = shalt.err (!%p4472_p10)
}
  0xe7   : > { %s4621_s4 = smov 128   ;;  %s4622_s1 = smov 8  }
  0xe8   : > { %4098 = dma.hbm_to_vmem [thread:$0]  (!%p4956_p6), %s4952_s16, 6912, %s4960_s27, %s4962_s2, %s4621_s4, %s4621_s4, %s4622_s1  }
  0xe9   : > { %s6770_s24 = sld [smem:[#allocation24_spill]] }
  0xef   : > { %p6771_p2 = scmp.ne.s32.totalorder %s6770_s24, 0 }
  0xf1   : > { %331 = sbr.rel (%p6771_p2) target bundleno = 985 (0x3d9), region = 48 }
  0xf8   : > { %s333_s23 = sand.u32 1, %s4586_s28  }
  0xf9   : > { %s4047_s19 = smul.u32 432, %s333_s23  ;;  %s334_s30 = scalar_lea.sflag [#allocation3], %s333_s23 }
  0xfb   : > { %s337_s8 = scalar_lea.vmem [#allocation2], %s4047_s19 }
  0xfc   : > { %4549 = dma.done.wait (%p4917_p5), %s334_s30, 6912  }
  0xfd   : > { %4551 = vsyncadd (%p4917_p5), %s334_s30, 4294960384  ;;  %p6772_p8 = scmp.ne.s32.totalorder %s6749_s13, 0 }
  0xff   : > { %4553 = dma.done.wait (%p6772_p8), [#allocation6], 144  }
 0x100   : > { %4555 = vsyncadd (%p6772_p8), [#allocation6], 4294967152 }
 0x101   : > { %4557 = dma.done.wait (%p6772_p8), [#allocation9], 208  }
 0x102   : > { %4559 = vsyncadd (%p6772_p8), [#allocation9], 4294967088 }
 0x103   : > { %4561 = dma.done.wait (%p6772_p8), [#allocation12], 784  }
 0x104   : > { %4563 = vsyncadd (%p6772_p8), [#allocation12], 4294966512  ;;  %s6773_s2 = sld [smem:[#allocation21_spill]]  ;;  %v461_v0 = vlaneseq  ;;  %v4623_v1 = vmov 1983009808   ;;  %v4218_v6 = vld [vmem:[#allocation5] sm:$0xff]  }
 0x105   : > { %v459_v2 = vunpack.c.l.s4 %v4623_v1  ;;  %3991 = vmatprep.subr.bf16.mxu0 %v4218_v6  ;;  %vm1299_vm0 = vcmask 130048   ;;  %s389_s15 = sand.u32 1, %s4574_s25   ;;  %s6966_s3 = sld [smem:[#allocation22_spill]] }
 0x106   : > { %v5010_v3 = vshrl.u32 %v461_v0, 7  ;;  %3992 = vmatpush3.bf16.msra.mxu0 %v4218_v6  ;;  %s3921_s27 = sshll.u32 %s389_s15, 7  ;;  %p6968_p13 = scmp.ne.s32.totalorder %s6766_s17, 0 }
 0x107   : > { %v460_v4 = vunpack.c.0.s8 %v459_v2  ;;  %s6519_s7 = scalar_lea.vmem [#allocation14], %s3921_s27  ;;  %s4624_s27 = smov [#allocation14]  }
 0x108   : > { %vm1959_vm7 = vcmp.ge.s32.totalorder %v5010_v3, 1  ;;  %s3757_s19 = sshll.u32 %s6519_s7, 4  ;;  %s6597_s19 = int_to_ptr.vmem [resolvable:$true] %s3757_s19 }
 0x109   : > { %v5015_v5 = vsub.s32 %v460_v4, %v5010_v3 }
 0x10a   : > { %s3923_s21 = smul.u32 192, %s6773_s2  ;;  %s3922_s13 = sshll.u32 %s6773_s2, 3 }
 0x10b   : > { %s3963_s4 = sshll.u32 %s6773_s2, 4  ;;  %s3959_s1 = sshll.u32 %s6966_s3, 5 }
 0x10c   : > { %s5012_s16 = scalar_lea.vmem %s337_s8, %s3923_s21 [#allocation2]  ;;  %s3754_s24 = sadd.s32 %s3963_s4, %s3959_s1 }
 0x10d   : > { %v397_v7 = vld [vmem:[%s5012_s16] sm:$0xff]  ;;  %v398_v8 = vld [vmem:[%s5012_s16 + $0x8] sm:$0xff]  ;;  %v400_v13 = vld [vmem:[%s5012_s16 + $0x18] sm:$0xff]  ;;  %s3960_s23 = sshll.u32 %s3754_s24, 7  ;;  %s6967_s2 = sld [smem:[#allocation80_spill]] }
 0x10e   : > { %v457_v9 = vcombine.high %v397_v7, %v397_v7  ;;  %v464_v10 = vrot.slane %v397_v7, %v5015_v5  ;;  %v474_v11 = vcombine.high %v398_v8, %v398_v8  ;;  %v481_v12 = vrot.slane %v398_v8, %v5015_v5  ;;  %v401_v14 = vld [vmem:[%s5012_s16 + $0x20] sm:$0xff]  ;;  %v3924_v23 = vld.sshfl [vmem:[%s5012_s16 + $0x10] sm:$0x3 pattern:$0x76325410]  ;;  %v404_v46 = vld [vmem:[%s5012_s16 + $0x38] sm:$0xff] }
 0x10f   : > { %v498_v15 = vcombine.high %v400_v13, %v400_v13  ;;  %v505_v16 = vrot.slane %v400_v13, %v5015_v5  ;;  %v515_v17 = vcombine.high %v401_v14, %v401_v14  ;;  %v522_v18 = vrot.slane %v401_v14, %v5015_v5  ;;  %v4270_v36 = vld.sshfl [vmem:[%s5012_s16 + $0x28] sm:$0x3 pattern:$0x76325410]  ;;  %v403_v41 = vld [vmem:[%s5012_s16 + $0x30] sm:$0xff]  ;;  %s4480_s3 = sshll.u32 %s4624_s27, 4  ;;  %s4481_s3 = int_to_ptr.vmem [resolvable:$false] %s4480_s3 }
 0x110   : > { %v471_v19 = vrot.slane %v457_v9, %v5015_v5  ;;  %v472_v20 = vcombine.high %v464_v10, %v464_v10  ;;  %v488_v21 = vrot.slane %v474_v11, %v5015_v5  ;;  %v489_v22 = vcombine.high %v481_v12, %v481_v12  ;;  %v4271_v50 = vld.sshfl [vmem:[%s5012_s16 + $0x40] sm:$0x3 pattern:$0x76325410]  ;;  %v406_v55 = vld [vmem:[%s5012_s16 + $0x48] sm:$0xff]  ;;  %v407_v56 = vld [vmem:[%s5012_s16 + $0x50] sm:$0xff]  ;;  %p4483_p11 = scmp.lt.s32.totalorder %s6597_s19, %s4481_s3 }
 0x111   : > { %v512_v24 = vrot.slane %v498_v15, %v5015_v5  ;;  %v513_v25 = vcombine.high %v505_v16, %v505_v16  ;;  %v529_v26 = vrot.slane %v515_v17, %v5015_v5  ;;  %v530_v27 = vcombine.high %v522_v18, %v522_v18  ;;  %s4482_s4 = scalar_lea.vmem %s4481_s3, 4096 }
 0x112   : > { %v473_v28 = vcombine.high %v471_v19, %v471_v19  ;;  %v490_v29 = vcombine.high %v488_v21, %v488_v21  ;;  %v867_v30 = vcombine.low %v464_v10, %v472_v20  ;;  %v884_v31 = vcombine.low %v481_v12, %v489_v22  ;;  %v4272_v22 = vld.sshfl [vmem:[%s5012_s16 + $0x58] sm:$0x3 pattern:$0x76325410] }
 0x113   : > { %v514_v32 = vcombine.high %v512_v24, %v512_v24  ;;  %v901_v33 = vcombine.low %v3924_v23, %v505_v16  ;;  %v902_v34 = vcombine.low %v513_v25, %v512_v24  ;;  %v919_v35 = vcombine.low %v530_v27, %v529_v26  ;;  %s6595_s21 = scalar_lea.hbm %s6967_s2, %s3960_s23 }
 0x114   : > { %v868_v37 = vcombine.low %v471_v19, %v473_v28  ;;  %v875_v38 = vrot.slane %v867_v30, %v5015_v5  ;;  %v885_v39 = vcombine.low %v488_v21, %v490_v29  ;;  %v892_v40 = vrot.slane %v884_v31, %v5015_v5 }
 0x115   : > { %v909_v42 = vrot.slane %v901_v33, %v5015_v5  ;;  %v916_v43 = vrot.slane %v902_v34, %v5015_v5  ;;  %v918_v44 = vcombine.low %v514_v32, %v522_v18  ;;  %v933_v45 = vrot.slane %v919_v35, %v5015_v5  ;;  %v410_v35 = vld [vmem:[%s5012_s16 + $0x68] sm:$0xff] }
 0x116   : > { %v882_v47 = vrot.slane %v868_v37, %v5015_v5  ;;  %v899_v48 = vrot.slane %v885_v39, %v5015_v5  ;;  %v531_v49 = vcombine.high %v529_v26, %v529_v26  ;;  %v539_v53 = vcombine.high %v403_v41, %v403_v41  ;;  %v409_v26 = vld [vmem:[%s5012_s16 + $0x60] sm:$0xff] }
 0x117   : > { %v917_v51 = vcombine.low %v909_v42, %v916_v43  ;;  %v926_v52 = vrot.slane %v918_v44, %v5015_v5  ;;  %v546_v54 = vrot.slane %v403_v41, %v5015_v5  ;;  %v563_v59 = vrot.slane %v404_v46, %v5015_v5 }
 0x118   : > { %v883_v57 = vcombine.low %v875_v38, %v882_v47  ;;  %v900_v58 = vcombine.low %v892_v40, %v899_v48  ;;  %v935_v60 = vcombine.low %v531_v49, %v4270_v36  ;;  %v553_v62 = vrot.slane %v539_v53, %v5015_v5  ;;  %v4273_v40 = vld.sshfl [vmem:[%s5012_s16 + $0x70] sm:$0x3 pattern:$0x76325410]  ;;  %v412_v48 = vld [vmem:[%s5012_s16 + $0x78] sm:$0xff] }
 0x119   : > { %v934_v61 = vcombine.low %v926_v52, %v933_v45  ;;  %v554_v63 = vcombine.high %v546_v54, %v546_v54  ;;  %v556_v0 = vcombine.high %v404_v46, %v404_v46  ;;  %v571_v2 = vcombine.high %v563_v59, %v563_v59 }
 0x11a   : > { %v1272_v1 = vpack.c.bf16 %v900_v58, %v883_v57  ;;  %v943_v4 = vrot.slane %v935_v60, %v5015_v5  ;;  %v555_v7 = vcombine.high %v553_v62, %v553_v62  ;;  %v580_v11 = vcombine.high %v406_v55, %v406_v55 }
 0x11b   : > { %v1273_v6 = vpack.c.bf16 %v934_v61, %v917_v51  ;;  %v936_v8 = vcombine.low %v546_v54, %v554_v63  ;;  %v570_v9 = vrot.slane %v556_v0, %v5015_v5  ;;  %v953_v10 = vcombine.low %v563_v59, %v571_v2  ;;  %v413_v61 = vld [vmem:[%s5012_s16 + $0x80] sm:$0xff] }
 0x11c   : > { %3993 = vmatprep.mubr.msk.bf16.mxu0 %vm1299_vm0, %v1272_v1  ;;  %v587_v12 = vrot.slane %v406_v55, %v5015_v5  ;;  %v604_v13 = vrot.slane %v407_v56, %v5015_v5  ;;  %v952_v15 = vcombine.low %v553_v62, %v555_v7  ;;  %v597_v17 = vcombine.high %v407_v56, %v407_v56 }
 0x11d   : > { %3994 = vmatmul.mubr.msk.bf16.vlgmr.msra.gmra.mrb[0].mxu0 %vm1299_vm0, %v1273_v6  ;;  %v950_v14 = vrot.slane %v936_v8, %v5015_v5  ;;  %v572_v16 = vcombine.high %v570_v9, %v570_v9  ;;  %v967_v18 = vrot.slane %v953_v10, %v5015_v5  ;;  %v594_v19 = vrot.slane %v580_v11, %v5015_v5  ;;  %v4274_v10 = vld.sshfl [vmem:[%s5012_s16 + $0x88] sm:$0x3 pattern:$0x76325410]  ;;  %v415_v11 = vld [vmem:[%s5012_s16 + $0x90] sm:$0xff] }
 0x11e   : > { %v595_v20 = vcombine.high %v587_v12, %v587_v12  ;;  %v970_v21 = vcombine.low %v4271_v50, %v587_v12  ;;  %v960_v24 = vrot.slane %v952_v15, %v5015_v5  ;;  %v611_v27 = vrot.slane %v597_v17, %v5015_v5 }
 0x11f   : > { %v951_v23 = vcombine.low %v943_v4, %v950_v14  ;;  %v969_v25 = vcombine.low %v570_v9, %v572_v16  ;;  %v596_v28 = vcombine.high %v594_v19, %v594_v19  ;;  %v612_v31 = vcombine.high %v604_v13, %v604_v13 }
 0x120   : > { %v984_v29 = vrot.slane %v970_v21, %v5015_v5  ;;  %v986_v30 = vcombine.low %v595_v20, %v594_v19  ;;  %v968_v32 = vcombine.low %v960_v24, %v967_v18  ;;  %v613_v34 = vcombine.high %v611_v27, %v611_v27 }
 0x121   : > { %v977_v33 = vrot.slane %v969_v25, %v5015_v5  ;;  %v987_v36 = vcombine.low %v596_v28, %v604_v13  ;;  %v621_v38 = vcombine.high %v409_v26, %v409_v26  ;;  %v628_v39 = vrot.slane %v409_v26, %v5015_v5  ;;  %v416_v25 = vld [vmem:[%s5012_s16 + $0x98] sm:$0xff] }
 0x122   : > { %v994_v37 = vrot.slane %v986_v30, %v5015_v5  ;;  %v1274_v41 = vpack.c.bf16 %v968_v32, %v951_v23  ;;  %v1003_v43 = vcombine.low %v612_v31, %v611_v27  ;;  %v1004_v44 = vcombine.low %v613_v34, %v4272_v22  ;;  %v4275_v30 = vld.sshfl [vmem:[%s5012_s16 + $0xa0] sm:$0x3 pattern:$0x76325410] }
 0x123   : > { %v985_v42 = vcombine.low %v977_v33, %v984_v29  ;;  %v1001_v45 = vrot.slane %v987_v36, %v5015_v5  ;;  %v635_v46 = vrot.slane %v621_v38, %v5015_v5  ;;  %v636_v47 = vcombine.high %v628_v39, %v628_v39 }
 0x124   : > { %v638_v49 = vcombine.high %v410_v35, %v410_v35  ;;  %3997 = vmatprep.mubr.msk.bf16.mxu0 %vm1299_vm0, %v1274_v41  ;;  %v1011_v50 = vrot.slane %v1003_v43, %v5015_v5  ;;  %v1018_v51 = vrot.slane %v1004_v44, %v5015_v5  ;;  %v645_v52 = vrot.slane %v410_v35, %v5015_v5  ;;  %v419_v43 = vld [vmem:[%s5012_s16 + $0xb0] sm:$0xff] }
 0x125   : > { %v1002_v53 = vcombine.low %v994_v37, %v1001_v45  ;;  %v637_v54 = vcombine.high %v635_v46, %v635_v46  ;;  %v1020_v55 = vcombine.low %v628_v39, %v636_v47  ;;  %v662_v59 = vcombine.high %v412_v48, %v412_v48  ;;  %v418_v37 = vld [vmem:[%s5012_s16 + $0xa8] sm:$0xff] }
 0x126   : > { %v652_v56 = vrot.slane %v638_v49, %v5015_v5  ;;  %v1019_v57 = vcombine.low %v1011_v50, %v1018_v51  ;;  %v653_v58 = vcombine.high %v645_v52, %v645_v52  ;;  %v669_v60 = vrot.slane %v412_v48, %v5015_v5 }
 0x127   : > { %v1275_v62 = vpack.c.bf16 %v1002_v53, %v985_v42  ;;  %v1021_v63 = vcombine.low %v635_v46, %v637_v54  ;;  %v1028_v0 = vrot.slane %v1020_v55, %v5015_v5  ;;  %v676_v2 = vrot.slane %v662_v59, %v5015_v5  ;;  %v4276_v59 = vld.sshfl [vmem:[%s5012_s16 + $0xb8] sm:$0x3 pattern:$0x76325410] }
 0x128   : > { %v654_v1 = vcombine.high %v652_v56, %v652_v56  ;;  %v677_v4 = vcombine.high %v669_v60, %v669_v60  ;;  %v1037_v6 = vcombine.low %v645_v52, %v653_v58  ;;  %v1054_v7 = vcombine.low %v4273_v40, %v669_v60 }
 0x129   : > { %3998 = vmatmul.mubr.msk.bf16.gmra.mrb[4].mxu0 %vm1299_vm0, %v1275_v62  ;;  %v1035_v8 = vrot.slane %v1021_v63, %v5015_v5  ;;  %v679_v12 = vcombine.high %v413_v61, %v413_v61  ;;  %v686_v13 = vrot.slane %v413_v61, %v5015_v5  ;;  %v678_v17 = vcombine.high %v676_v2, %v676_v2 }
 0x12a   : > { %v1038_v9 = vcombine.low %v652_v56, %v654_v1  ;;  %v1045_v14 = vrot.slane %v1037_v6, %v5015_v5  ;;  %v1055_v15 = vcombine.low %v677_v4, %v676_v2  ;;  %v1062_v16 = vrot.slane %v1054_v7, %v5015_v5  ;;  %v421_v1 = vld [vmem:[%s5012_s16 + $0xc0] sm:$0xff] }
 0x12b   : > { %v1036_v18 = vcombine.low %v1028_v0, %v1035_v8  ;;  %v693_v20 = vrot.slane %v679_v12, %v5015_v5  ;;  %v694_v21 = vcombine.high %v686_v13, %v686_v13  ;;  %v710_v23 = vrot.slane %v415_v11, %v5015_v5 }
 0x12c   : > { %v1052_v19 = vrot.slane %v1038_v9, %v5015_v5  ;;  %v1069_v22 = vrot.slane %v1055_v15, %v5015_v5  ;;  %v1071_v24 = vcombine.low %v678_v17, %v686_v13  ;;  %v703_v34 = vcombine.high %v415_v11, %v415_v11  ;;  %v422_v11 = vld [vmem:[%s5012_s16 + $0xc8] sm:$0xff] }
 0x12d   : > { %v1276_v26 = vpack.c.bf16 %v1036_v18, %v1019_v57  ;;  %v695_v28 = vcombine.high %v693_v20, %v693_v20  ;;  %v1072_v29 = vcombine.low %v694_v21, %v693_v20  ;;  %v718_v32 = vcombine.high %v710_v23, %v710_v23 }
 0x12e   : > { %v1053_v27 = vcombine.low %v1045_v14, %v1052_v19  ;;  %v1070_v31 = vcombine.low %v1062_v16, %v1069_v22  ;;  %v1079_v33 = vrot.slane %v1071_v24, %v5015_v5  ;;  %v720_v38 = vcombine.high %v416_v25, %v416_v25  ;;  %v4277_v24 = vld.sshfl [vmem:[%s5012_s16 + $0xd0] sm:$0x3 pattern:$0x76325410] }
 0x12f   : > { %4001 = vmatprep.mubr.msk.bf16.mxu0 %vm1299_vm0, %v1276_v26  ;;  %v1086_v35 = vrot.slane %v1072_v29, %v5015_v5  ;;  %v1088_v36 = vcombine.low %v695_v28, %v4274_v10  ;;  %v727_v39 = vrot.slane %v416_v25, %v5015_v5  ;;  %v1089_v41 = vcombine.low %v710_v23, %v718_v32  ;;  %v424_v25 = vld [vmem:[%s5012_s16 + $0xd8] sm:$0xff] }
 0x130   : > { %v1277_v40 = vpack.c.bf16 %v1070_v31, %v1053_v27  ;;  %v717_v42 = vrot.slane %v703_v34, %v5015_v5  ;;  %v734_v46 = vrot.slane %v720_v38, %v5015_v5  ;;  %v751_v50 = vrot.slane %v418_v37, %v5015_v5  ;;  %v425_v34 = vld [vmem:[%s5012_s16 + $0xe0] sm:$0xff] }
 0x131   : > { %v1087_v44 = vcombine.low %v1079_v33, %v1086_v35  ;;  %v1096_v45 = vrot.slane %v1088_v36, %v5015_v5  ;;  %v735_v47 = vcombine.high %v727_v39, %v727_v39  ;;  %v1103_v48 = vrot.slane %v1089_v41, %v5015_v5 }
 0x132   : > { %4002 = vmatmul.mubr.msk.bf16.gmra.mrb[8].mxu0 %vm1299_vm0, %v1277_v40  ;;  %v719_v49 = vcombine.high %v717_v42, %v717_v42  ;;  %v744_v51 = vcombine.high %v418_v37, %v418_v37  ;;  %v736_v52 = vcombine.high %v734_v46, %v734_v46  ;;  %v761_v54 = vcombine.high %v419_v43, %v419_v43 }
 0x133   : > { %v1106_v53 = vcombine.low %v727_v39, %v735_v47  ;;  %v768_v55 = vrot.slane %v419_v43, %v5015_v5  ;;  %v1104_v56 = vcombine.low %v1096_v45, %v1103_v48  ;;  %v1123_v58 = vcombine.low %v4275_v30, %v751_v50 }
 0x134   : > { %v1105_v57 = vcombine.low %v717_v42, %v719_v49  ;;  %v758_v60 = vrot.slane %v744_v51, %v5015_v5  ;;  %v1122_v62 = vcombine.low %v734_v46, %v736_v52  ;;  %v759_v63 = vcombine.high %v751_v50, %v751_v50 }
 0x135   : > { %v1120_v61 = vrot.slane %v1106_v53, %v5015_v5  ;;  %v775_v0 = vrot.slane %v761_v54, %v5015_v5  ;;  %v1278_v2 = vpack.c.bf16 %v1104_v56, %v1087_v44  ;;  %v1137_v6 = vrot.slane %v1123_v58, %v5015_v5  ;;  %v3925_v58 = vld.sshfl [vmem:[%s5012_s16 + $0xe8] sm:$0x3 pattern:$0x76325410] }
 0x136   : > { %v1113_v4 = vrot.slane %v1105_v57, %v5015_v5  ;;  %v760_v7 = vcombine.high %v758_v60, %v758_v60  ;;  %v1130_v8 = vrot.slane %v1122_v62, %v5015_v5  ;;  %v776_v9 = vcombine.high %v768_v55, %v768_v55 }
 0x137   : > { %v777_v10 = vcombine.high %v775_v0, %v775_v0  ;;  %4005 = vmatprep.mubr.msk.bf16.mxu0 %vm1299_vm0, %v1278_v2  ;;  %v1139_v13 = vcombine.low %v759_v63, %v758_v60  ;;  %v785_v15 = vcombine.high %v421_v1, %v421_v1  ;;  %v792_v19 = vrot.slane %v421_v1, %v5015_v5 }
 0x138   : > { %v1121_v12 = vcombine.low %v1113_v4, %v1120_v61  ;;  %v1140_v14 = vcombine.low %v760_v7, %v768_v55  ;;  %v1138_v16 = vcombine.low %v1130_v8, %v1137_v6  ;;  %v1156_v17 = vcombine.low %v776_v9, %v775_v0 }
 0x139   : > { %v1157_v18 = vcombine.low %v777_v10, %v4276_v59  ;;  %v1147_v20 = vrot.slane %v1139_v13, %v5015_v5  ;;  %v799_v22 = vrot.slane %v785_v15, %v5015_v5  ;;  %v802_v23 = vcombine.high %v422_v11, %v422_v11  ;;  %v4239_v13 = vld [vmem:[#allocation11] sm:$0xff]   ;;  %v4241_v15 = vld [vmem:[#allocation11 + $0x10] sm:$0xff]  }
 0x13a   : > { %v1154_v21 = vrot.slane %v1140_v14, %v5015_v5  ;;  %v1279_v26 = vpack.c.bf16 %v1138_v16, %v1121_v12  ;;  %v1164_v27 = vrot.slane %v1156_v17, %v5015_v5  ;;  %v800_v29 = vcombine.high %v792_v19, %v792_v19  ;;  %4017 = vmatprep.subr.bf16.mxu1 %v4239_v13  ;;  %v4240_v14 = vld [vmem:[#allocation11 + $0x8] sm:$0xff]   ;;  %v4242_v16 = vld [vmem:[#allocation11 + $0x18] sm:$0xff]   ;;  %v4243_v17 = vld [vmem:[#allocation11 + $0x20] sm:$0xff]  }
 0x13b   : > { %v1171_v28 = vrot.slane %v1157_v18, %v5015_v5  ;;  %v801_v31 = vcombine.high %v799_v22, %v799_v22  ;;  %v809_v32 = vrot.slane %v422_v11, %v5015_v5  ;;  %v816_v33 = vrot.slane %v802_v23, %v5015_v5  ;;  %4018 = vmatpush3.bf16.msra.mxu1 %v4239_v13  ;;  %v4244_v18 = vld [vmem:[#allocation11 + $0x28] sm:$0xff]  }
 0x13c   : > { %v1155_v30 = vcombine.low %v1147_v20, %v1154_v21  ;;  %4006 = vmatmul.mubr.msk.bf16.gmra.mrb[12].mxu0 %vm1299_vm0, %v1279_v26  ;;  %v1173_v36 = vcombine.low %v792_v19, %v800_v29  ;;  %v826_v37 = vcombine.high %v424_v25, %v424_v25  ;;  %v833_v41 = vrot.slane %v424_v25, %v5015_v5  ;;  %v5153_v25 = vld [vmem:[#allocation7] ss:$0 sm:$0xff] }
 0x13d   : > { %v1172_v35 = vcombine.low %v1164_v27, %v1171_v28  ;;  %v817_v38 = vcombine.high %v809_v32, %v809_v32  ;;  %v818_v39 = vcombine.high %v816_v33, %v816_v33  ;;  %v1174_v40 = vcombine.low %v799_v22, %v801_v31  ;;  %4019 = vmatprep.subr.bf16.mxu1 %v4240_v14  ;;  %v2555_v22 = vld [vmem:[#allocation8] sm:$0x7]  ;;  %v2556_v27 = vld [vmem:[#allocation8 + $0x4] sm:$0x7] }
 0x13e   : > { %v1181_v43 = vrot.slane %v1173_v36, %v5015_v5  ;;  %v840_v44 = vrot.slane %v826_v37, %v5015_v5  ;;  %v843_v45 = vcombine.high %v425_v34, %v425_v34  ;;  %v841_v49 = vcombine.high %v833_v41, %v833_v41 }
 0x13f   : > { %v1280_v42 = vpack.c.bf16 %v1172_v35, %v1155_v30  ;;  %v1188_v46 = vrot.slane %v1174_v40, %v5015_v5  ;;  %v1190_v47 = vcombine.low %v809_v32, %v817_v38  ;;  %v1191_v48 = vcombine.low %v816_v33, %v818_v39  ;;  %4020 = vmatpush3.bf16.msra.mxu1 %v4240_v14  ;;  %v2557_v35 = vld [vmem:[#allocation8 + $0x8] sm:$0x7] }
 0x140   : > { %v842_v50 = vcombine.high %v840_v44, %v840_v44  ;;  %v850_v51 = vrot.slane %v425_v34, %v5015_v5  ;;  %v857_v52 = vrot.slane %v843_v45, %v5015_v5  ;;  %v1207_v53 = vcombine.low %v4277_v24, %v833_v41  ;;  %4021 = vmatprep.subr.bf16.mxu1 %v4241_v15 }
 0x141   : > { %4009 = vmatprep.mubr.msk.bf16.mxu0 %vm1299_vm0, %v1280_v42  ;;  %v1189_v54 = vcombine.low %v1181_v43, %v1188_v46  ;;  %v1198_v55 = vrot.slane %v1190_v47, %v5015_v5  ;;  %v1205_v56 = vrot.slane %v1191_v48, %v5015_v5  ;;  %v1208_v57 = vcombine.low %v841_v49, %v840_v44 }
 0x142   : > { %v858_v59 = vcombine.high %v850_v51, %v850_v51  ;;  %v1215_v60 = vrot.slane %v1207_v53, %v5015_v5  ;;  %v1224_v61 = vcombine.low %v842_v50, %v850_v51  ;;  %v859_v62 = vcombine.high %v857_v52, %v857_v52 }
 0x143   : > { %v1206_v63 = vcombine.low %v1198_v55, %v1205_v56  ;;  %v1222_v0 = vrot.slane %v1208_v57, %v5015_v5  ;;  %4022 = vmatpush3.bf16.msra.mxu1 %v4241_v15  ;;  %v5146_v19 = vadd.s32 16, %v5010_v3  ;;  %v2669_v20 = vsub.s32 1, %v5010_v3 }
 0x144   : > { %v1225_v1 = vcombine.low %v858_v59, %v857_v52  ;;  %v1232_v2 = vrot.slane %v1224_v61, %v5015_v5  ;;  %v1241_v4 = vcombine.low %v859_v62, %v3925_v58  ;;  %4023 = vmatprep.subr.bf16.mxu1 %v4242_v16  ;;  %v5149_v21 = vstv %s3922_s13  ;;  %s4476_s13 = scalar_lea.vmem %s6597_s19, 2048 }
 0x145   : > { %v1281_v6 = vpack.c.bf16 %v1206_v63, %v1189_v54  ;;  %v1223_v7 = vcombine.low %v1215_v60, %v1222_v0  ;;  %v3042_v23 = vsub.s32 2, %v5010_v3  ;;  %v2561_v24 = vsub.s32 0, %v5010_v3  ;;  %p4477_p5 = scmp.ne.s32.totalorder %s6597_s19, %s4476_s13  ;;  %p4484_p12 = scmp.lt.s32.totalorder %s4482_s4, %s4476_s13 }
 0x146   : > { %v1239_v8 = vrot.slane %v1225_v1, %v5015_v5  ;;  %v1248_v9 = vrot.slane %v1241_v4, %v5015_v5  ;;  %v5156_v26 = vadd.s32 1, %v5149_v21  ;;  %vm1929_vm1 = vcmp.ge.s32.totalorder %v5149_v21, 1 }
 0x147   : > { %4010 = vmatmul.mubr.msk.bf16.gmra.mrb[16].mxu0 %vm1299_vm0, %v1281_v6  ;;  %4024 = vmatpush3.bf16.msra.mxu1 %v4242_v16  ;;  %vm1939_vm2 = vcmp.le.s32.totalorder %v5149_v21, 16  ;;  %vm1994_vm3 = vcmp.le.s32.totalorder %v5146_v19, 16  ;;  %v5161_v29 = vrot.slane %v2555_v22, %v2669_v20  ;;  %v5164_v31 = vrot.slane %v2555_v22, %v3042_v23  ;;  %p4478_p6 = pnand %p4477_p5, %p6968_p13  ;;  %p4485_p0 = por %p4484_p12, %p4483_p11 }
 0x148   : > { %v1240_v10 = vcombine.low %v1232_v2, %v1239_v8  ;;  %v1283_v12 = vpack.c.bf16 %v1248_v9, %v1248_v9  ;;  %4025 = vmatprep.subr.bf16.mxu1 %v4243_v17  ;;  %v5166_v33 = vrot.slane %v2555_v22, %v2561_v24  ;;  %v5168_v34 = vrot.slane %v2556_v27, %v2561_v24  ;;  %vm5191_vm6 = vmand %vm1929_vm1, %vm1939_vm2 }
 0x149   : > { %vm1930_vm4 = vcmp.ge.s32.totalorder %v5156_v26, 1  ;;  %v5172_v38 = vrot.slane %v2556_v27, %v2669_v20  ;;  %v5174_v39 = vrot.slane %v2556_v27, %v3042_v23  ;;  %vm1940_vm5 = vcmp.le.s32.totalorder %v5156_v26, 16  ;;  %vm1997_vm8 = vmand %vm5191_vm6, %vm1994_vm3  ;;  %p4479_p9 = pneg %p4478_p6 }
 0x14a   : > { %v1282_v11 = vpack.c.bf16 %v1240_v10, %v1223_v7  ;;  %v5179_v43 = vadd.s32 2, %v5149_v21  ;;  %v5183_v46 = vadd.s32 3, %v5149_v21  ;;  %v5185_v47 = vrot.slane %v2557_v35, %v2669_v20  ;;  %vm5238_vm9 = vmand %vm1930_vm4, %vm1940_vm5 }
 0x14b   : > { %4026 = vmatpush3.bf16.msra.mxu1 %v4243_v17  ;;  %v5197_v51 = vadd.s32 4, %v5149_v21  ;;  %v5199_v52 = vrot.slane %v2557_v35, %v3042_v23  ;;  %v5202_v55 = vadd.s32 5, %v5149_v21  ;;  %v5205_v56 = vadd.s32 6, %v5149_v21  ;;  %vm1965_vm12 = vmand %vm5238_vm9, %vm1959_vm7  ;;  %p4486_p1 = pnand %p4485_p0, %p4479_p9 }
 0x14c   : > { %4013 = vmatprep.mubr.msk.bf16.mxu0 %vm1299_vm0, %v1282_v11  ;;  %4027 = vmatprep.subr.bf16.mxu1 %v4244_v18  ;;  %v5208_v60 = vrot.slane %v2557_v35, %v2561_v24  ;;  %v5216_v0 = vadd.s32 7, %v5149_v21  ;;  %vm1931_vm10 = vcmp.ge.s32.totalorder %v5179_v43, 1  ;;  %vm1941_vm11 = vcmp.le.s32.totalorder %v5179_v43, 16  ;;  %vm1962_vm13 = vmand %vm5191_vm6, %vm1959_vm7 }
 0x14d   : > { %v5248_v26 = vadd.s32 9, %v5149_v21  ;;  %vm5314_vm14 = vmand %vm1931_vm10, %vm1941_vm11  ;;  %vm2719_vm2 = vcmask 1046528   ;;  %vm1932_vm4 = vcmp.ge.s32.totalorder %v5183_v46, 1  ;;  %vm1942_vm5 = vcmp.le.s32.totalorder %v5183_v46, 16 }
 0x14e   : > { %vm2003_vm15 = vmand %vm5314_vm14, %vm1994_vm3 }
 0x14f   : > { %4014 = vmatmul.mubr.msk.bf16.gmra.mrb[20].mxu0 %vm1299_vm0, %v1283_v12  ;;  %4028 = vmatpush3.bf16.msra.mxu1 %v4244_v18  ;;  %v5229_v18 = vadd.s32 8, %v5149_v21  ;;  %vm2000_vm1 = vmand %vm5238_vm9, %vm1994_vm3 }
 0x1f0   : > { %v3995_v28 = vpop.f32.mrb[0].mxu0 }
 0x1f1   : > { %v1379_v30 = vadd.f32 %v3995_v28, %v5153_v25  ;;  %v1370_v32 = vpop.f32.mrb[1].mxu0 }
 0x1f2   : > { %v1371_v36 = vadd.f32 %v5153_v25, %v1370_v32  ;;  %v3996_v37 = vpop.f32.mrb[2].mxu0 }
 0x1f3   : > { %v1466_v40 = vmax.f32 %v1379_v30, 0.0  ;;  %v1382_v41 = vadd.f32 %v3996_v37, %v5153_v25  ;;  %v1373_v42 = vpop.f32.mrb[3].mxu0 }
 0x1f4   : > { %v1464_v44 = vmax.f32 %v1371_v36, 0.0  ;;  %v1374_v45 = vadd.f32 %v5153_v25, %v1373_v42 }
 0x1f5   : > { %v1489_v48 = vmin.f32 %v1466_v40, 6.0  ;;  %v1467_v50 = vmax.f32 %v1382_v41, 0.0 }
 0x1f6   : > { %v1487_v53 = vmin.f32 %v1464_v44, 6.0  ;;  %v1465_v54 = vmax.f32 %v1374_v45, 0.0 }
 0x1f7   : > { %v1567_v57 = vcombine.high %v1489_v48, %v1489_v48  ;;  %v1574_v58 = vrot.slane %v1489_v48, %v5015_v5  ;;  %v1490_v59 = vmin.f32 %v1467_v50, 6.0 }
 0x1f8   : > { %v1533_v61 = vcombine.high %v1487_v53, %v1487_v53  ;;  %v1540_v62 = vrot.slane %v1487_v53, %v5015_v5  ;;  %v1488_v63 = vmin.f32 %v1465_v54, 6.0 }
 0x1f9   : > { %v1581_v1 = vrot.slane %v1567_v57, %v5015_v5  ;;  %v1582_v2 = vcombine.high %v1574_v58, %v1574_v58  ;;  %v2125_v4 = vrot.slane %v1574_v58, %v5015_v5  ;;  %v1584_v6 = vcombine.high %v1490_v59, %v1490_v59 }
 0x1fa   : > { %v1547_v7 = vrot.slane %v1533_v61, %v5015_v5  ;;  %v1548_v8 = vcombine.high %v1540_v62, %v1540_v62  ;;  %v1591_v9 = vrot.slane %v1490_v59, %v5015_v5  ;;  %v1550_v10 = vcombine.high %v1488_v63, %v1488_v63 }
 0x1fb   : > { %v2126_v11 = vcombine.low %v1582_v2, %v1581_v1  ;;  %v2527_v12 = vsel %vm1997_vm8, %v2125_v4, 0.0  ;;  %v1583_v13 = vcombine.high %v1581_v1, %v1581_v1  ;;  %v5223_v14 = vrot.slane %v1584_v6, %v5015_v5 }
 0x1fc   : > { %v5226_v15 = vmul.f32 %v5161_v29, %v2527_v12  ;;  %v1549_v16 = vcombine.high %v1547_v7, %v1547_v7  ;;  %v2085_v17 = vcombine.low %v1540_v62, %v1548_v8  ;;  %v5232_v20 = vmul.f32 %v5164_v31, %v2527_v12  ;;  %v3999_v28 = vpop.f32.mrb[4].mxu0 }
 0x1fd   : > { %v1599_v22 = vcombine.high %v1591_v9, %v1591_v9  ;;  %v2127_v24 = vcombine.low %v1583_v13, %v1591_v9  ;;  %v1557_v27 = vrot.slane %v1488_v63, %v5015_v5  ;;  %v2134_v30 = vrot.slane %v2126_v11, %v5015_v5  ;;  %v1386_v36 = vpop.f32.mrb[5].mxu0 }
 0x1fe   : > { %6776 = vst [vmem:[#allocation25_spill] sm:$0xff] %v5232_v20  ;;  %v2086_v35 = vcombine.low %v1547_v7, %v1549_v16  ;;  %v1564_v41 = vrot.slane %v1550_v10, %v5015_v5  ;;  %v4000_v44 = vpop.f32.mrb[6].mxu0  ;;  %v2093_v45 = vrot.slane %v2085_v17, %v5015_v5  ;;  %v1395_v21 = vadd.f32 %v3999_v28, %v5153_v25 }
 0x1ff   : > { %v2141_v37 = vrot.slane %v2127_v24, %v5015_v5  ;;  %v5252_v40 = vcombine.low %v1599_v22, %v5223_v14  ;;  %v1565_v42 = vcombine.high %v1557_v27, %v1557_v27  ;;  %v1387_v50 = vadd.f32 %v5153_v25, %v1386_v36  ;;  %v1389_v53 = vpop.f32.mrb[7].mxu0 }
 0x200   : > { %v2100_v48 = vrot.slane %v2086_v35, %v5015_v5  ;;  %v1566_v58 = vcombine.high %v1564_v41, %v1564_v41  ;;  %v1470_v62 = vmax.f32 %v1395_v21, 0.0  ;;  %v1600_v1 = vcombine.high %v5223_v14, %v5223_v14 }
 0x201   : > { %v2142_v57 = vcombine.low %v2134_v30, %v2141_v37  ;;  %v2102_v59 = vcombine.low %v1557_v27, %v1565_v42  ;;  %v1468_v63 = vmax.f32 %v1387_v50, 0.0  ;;  %v2151_v2 = vrot.slane %v5252_v40, %v5015_v5 }
 0x202   : > { %v2101_v61 = vcombine.low %v2093_v45, %v2100_v48  ;;  %v2103_v6 = vcombine.low %v1564_v41, %v1566_v58  ;;  %v1398_v7 = vadd.f32 %v4000_v44, %v5153_v25  ;;  %v5281_v11 = vadd.f32 %v5153_v25, %v1389_v53 }
 0x203   : > { %v5272_v4 = vsel %vm1965_vm12, %v2142_v57, 0.0  ;;  %v2110_v10 = vrot.slane %v2102_v59, %v5015_v5  ;;  %v1493_v24 = vmin.f32 %v1470_v62, 6.0  ;;  %v1491_v27 = vmin.f32 %v1468_v63, 6.0  ;;  %vm5492_vm12 = vmand %vm5314_vm14, %vm1959_vm7 }
 0x204   : > { %v2525_v8 = vsel %vm1962_vm13, %v2101_v61, 0.0  ;;  %v5277_v9 = vmul.f32 %v5161_v29, %v5272_v4  ;;  %v5291_v14 = vmul.f32 %v5166_v33, %v5272_v4  ;;  %v5295_v16 = vmul.f32 %v5164_v31, %v5272_v4 }
 0x205   : > { %v5284_v12 = vmul.f32 %v5161_v29, %v2525_v8  ;;  %v5287_v13 = vmul.f32 %v5164_v31, %v2525_v8  ;;  %v5299_v17 = vmul.f32 %v5168_v34, %v5272_v4  ;;  %v2117_v22 = vrot.slane %v2103_v6, %v5015_v5  ;;  %v4003_v28 = vpop.f32.mrb[8].mxu0 }
 0x206   : > { %6779 = vst [vmem:[#allocation26_spill] sm:$0xff] %v5277_v9  ;;  %6781 = vst [vmem:[#allocation28_spill] sm:$0xff] %v5291_v14  ;;  %v5303_v30 = vmul.f32 %v5166_v33, %v2525_v8  ;;  %v1471_v37 = vmax.f32 %v1398_v7, 0.0  ;;  %v5307_v40 = vpop.f32.mrb[9].mxu0  ;;  %v1635_v42 = vcombine.high %v1493_v24, %v1493_v24  ;;  %v1642_v44 = vrot.slane %v1493_v24, %v5015_v5 }
 0x207   : > { %6780 = vst [vmem:[#allocation27_spill] sm:$0xff] %v5287_v13  ;;  %6782 = vst [vmem:[#allocation29_spill] sm:$0xff] %v5295_v16  ;;  %v2118_v41 = vcombine.low %v2110_v10, %v2117_v22  ;;  %v1601_v48 = vcombine.high %v1491_v27, %v1491_v27  ;;  %v5318_v21 = vpop.f32.mrb[10].mxu0  ;;  %v1608_v57 = vrot.slane %v1491_v27, %v5015_v5  ;;  %v1469_v49 = vmax.f32 %v5281_v11, 0.0 }
 0x208   : > { %v1494_v58 = vmin.f32 %v1471_v37, 6.0  ;;  %v5323_v59 = vpop.f32.mrb[11].mxu0  ;;  %v5328_v43 = vrot.slane %v1635_v42, %v5015_v5  ;;  %v1650_v62 = vcombine.high %v1642_v44, %v1642_v44  ;;  %v1411_v11 = vadd.f32 %v4003_v28, %v5153_v25 }
 0x209   : > { %v2526_v61 = vsel %vm5191_vm6, %v2118_v41, 0.0  ;;  %v1615_v63 = vrot.slane %v1601_v48, %v5015_v5  ;;  %v1616_v8 = vcombine.high %v1608_v57, %v1608_v57  ;;  %v2144_v27 = vcombine.low %v1600_v1, %v1608_v57 }
 0x20a   : > { %v5332_v6 = vmul.f32 %v5161_v29, %v2526_v61  ;;  %v5335_v7 = vmul.f32 %v5164_v31, %v2526_v61  ;;  %v5342_v10 = vcombine.low %v1642_v44, %v1650_v62  ;;  %v2207_v22 = vrot.slane %v5328_v43, %v5015_v5 }
 0x20b   : > { %v1617_v24 = vcombine.high %v1615_v63, %v1615_v63  ;;  %v5347_v37 = vmul.f32 %v5166_v33, %v2526_v61  ;;  %v2166_v42 = vrot.slane %v1616_v8, %v5015_v5  ;;  %v2158_v1 = vrot.slane %v2144_v27, %v5015_v5 }
 0x20c   : > { %6785 = vst [vmem:[#allocation30_spill] sm:$0xff] %v5335_v7  ;;  %v5357_v48 = vsel %vm2003_vm15, %v2207_v22, 0.0  ;;  %v1651_v27 = vcombine.high %v5328_v43, %v5328_v43  ;;  %v1652_v50 = vcombine.high %v1494_v58, %v1494_v58  ;;  %vm1933_vm6 = vcmp.ge.s32.totalorder %v5197_v51, 1 }
 0x20d   : > { %6786 = vst [vmem:[#allocation31_spill] sm:$0xff] %v5357_v48  ;;  %v5360_v57 = vcombine.low %v1615_v63, %v1617_v24  ;;  %v5364_v61 = vmul.f32 %v5161_v29, %v5357_v48  ;;  %v5368_v62 = vmul.f32 %v5172_v38, %v5357_v48  ;;  %v5372_v28 = vmul.f32 %v5164_v31, %v5357_v48 }
 0x20e   : > { %v5376_v8 = vmul.f32 %v5174_v39, %v5357_v48  ;;  %v2159_v22 = vcombine.low %v2151_v2, %v2158_v1  ;;  %v2530_v24 = vsel %vm2000_vm1, %v2166_v42, 0.0  ;;  %vm1943_vm8 = vcmp.le.s32.totalorder %v5197_v51, 16 }
 0x20f   : > { %6787 = vst [vmem:[#allocation32_spill] sm:$0xff] %v5364_v61  ;;  %6788 = vst [vmem:[#allocation33_spill] sm:$0xff] %v5368_v62  ;;  %v5388_v44 = vpop.f32.mrb[12].mxu0  ;;  %v2676_v43 = vmul.f32 %v5161_v29, %v2530_v24  ;;  %v5396_v42 = vmul.f32 %v5172_v38, %v2530_v24  ;;  %v5399_v1 = vmul.f32 %v5164_v31, %v2530_v24  ;;  %v1492_v62 = vmin.f32 %v1469_v49, 6.0 }
 0x210   : > { %6789 = vst [vmem:[#allocation34_spill] sm:$0xff] %v5372_v28  ;;  %6790 = vst [vmem:[#allocation35_spill] sm:$0xff] %v5376_v8  ;;  %v5392_v2 = vsel %vm5238_vm9, %v2159_v22, 0.0  ;;  %v5401_v53 = vpop.f32.mrb[13].mxu0  ;;  %v1659_v8 = vrot.slane %v1494_v58, %v5015_v5  ;;  %v1474_v54 = vmax.f32 %v1411_v11, 0.0  ;;  %v1403_v16 = vadd.f32 %v5153_v25, %v5307_v40 }
 0x211   : > { %6791 = vst [vmem:[#allocation36_spill] sm:$0xff] %v5396_v42  ;;  %6792 = vst [vmem:[#allocation37_spill] sm:$0xff] %v5399_v1  ;;  %v5407_v35 = vmul.f32 %v5166_v33, %v5392_v2  ;;  %v5411_v23 = vmul.f32 %v5161_v29, %v5392_v2  ;;  %v5413_v22 = vpop.f32.mrb[14].mxu0  ;;  %v5417_v41 = vmul.f32 %v5168_v34, %v5392_v2  ;;  %v2728_v63 = vrot.slane %v2676_v43, 1 }
 0x212   : > { %v5422_v36 = vmul.f32 %v5164_v31, %v5392_v2  ;;  %v5426_v32 = vpop.f32.mrb[15].mxu0  ;;  %v1666_v43 = vrot.slane %v1652_v50, %v5015_v5  ;;  %v5442_v9 = vmul.f32 %v5174_v39, %v2530_v24  ;;  %v1667_v61 = vcombine.high %v1659_v8, %v1659_v8  ;;  %vm5452_vm9 = vmand %vm1932_vm4, %vm1942_vm5 }
 0x213   : > { %6793 = vst [vmem:[#allocation38_spill] sm:$0xff] %v5407_v35  ;;  %6794 = vst [vmem:[#allocation39_spill] sm:$0xff] %v5411_v23  ;;  %v6697_v28 = vrot.slane %v5411_v23, 1  ;;  %v1414_v35 = vadd.f32 %v5318_v21, %v5153_v25  ;;  %v2208_v58 = vcombine.low %v1651_v27, %v1659_v8  ;;  %v1618_v1 = vcombine.high %v1492_v62, %v1492_v62 }
 0x214   : > { %6795 = vst [vmem:[#allocation40_spill] sm:$0xff] %v5422_v36  ;;  %6797 = vst [vmem:[#allocation42_spill] sm:$0xff] %v5442_v9  ;;  %v1625_v50 = vrot.slane %v1492_v62, %v5015_v5  ;;  %v1497_v49 = vmin.f32 %v1474_v54, 6.0  ;;  %v1472_v11 = vmax.f32 %v1403_v16, 0.0  ;;  %v2209_v20 = vcombine.low %v1667_v61, %v1666_v43 }
 0x215   : > { %v5439_v14 = vsel %vm2719_vm2, %v6697_v28, %v2728_v63  ;;  %v2216_v40 = vrot.slane %v2208_v58, %v5015_v5  ;;  %v1668_v13 = vcombine.high %v1666_v43, %v1666_v43  ;;  %v1475_v21 = vmax.f32 %v1414_v35, 0.0  ;;  %vm5469_vm10 = vmand %vm5452_vm9, %vm1959_vm7 }
 0x216   : > { %6796 = vst [vmem:[#allocation41_spill] sm:$0xff] %v5439_v14  ;;  %v1632_v23 = vrot.slane %v1618_v1, %v5015_v5  ;;  %v1633_v7 = vcombine.high %v1625_v50, %v1625_v50  ;;  %v1703_v63 = vcombine.high %v1497_v49, %v1497_v49  ;;  %v1710_v28 = vrot.slane %v1497_v49, %v5015_v5  ;;  %vm5482_vm11 = vmand %vm1933_vm6, %vm1943_vm8 }
 0x217   : > { %v2223_v54 = vrot.slane %v2209_v20, %v5015_v5  ;;  %v1495_v16 = vmin.f32 %v1472_v11, 6.0  ;;  %v1498_v61 = vmin.f32 %v1475_v21, 6.0  ;;  %v1406_v35 = vadd.f32 %v5153_v25, %v5323_v59  ;;  %vm5505_vm13 = vmand %vm5452_vm9, %vm1994_vm3 }
 0x218   : > { %v1634_v62 = vcombine.high %v1632_v23, %v1632_v23  ;;  %v2168_v24 = vcombine.low %v1625_v50, %v1633_v7  ;;  %v1717_v27 = vrot.slane %v1703_v63, %v5015_v5  ;;  %v1718_v1 = vcombine.high %v1710_v28, %v1710_v28  ;;  %vm2009_vm15 = vmand %vm5482_vm11, %vm1994_vm3 }
 0x219   : > { %v2224_v58 = vcombine.low %v2216_v40, %v2223_v54  ;;  %v1669_v46 = vcombine.high %v1495_v16, %v1495_v16  ;;  %v1676_v49 = vrot.slane %v1495_v16, %v5015_v5  ;;  %v1720_v14 = vcombine.high %v1498_v61, %v1498_v61  ;;  %vm5636_vm6 = vmand %vm5482_vm11, %vm1959_vm7 }
 0x21a   : > { %v5460_v43 = vpop.f32.mrb[16].mxu0  ;;  %v2182_v59 = vrot.slane %v2168_v24, %v5015_v5  ;;  %v2184_v7 = vcombine.low %v1632_v23, %v1634_v62  ;;  %v1719_v50 = vcombine.high %v1717_v27, %v1717_v27  ;;  %v2266_v11 = vcombine.low %v1710_v28, %v1718_v1 }
 0x21b   : > { %v5463_v9 = vpop.f32.mrb[17].mxu0  ;;  %v1683_v63 = vrot.slane %v1669_v46, %v5015_v5  ;;  %v1684_v54 = vcombine.high %v1676_v49, %v1676_v49  ;;  %v2225_v16 = vcombine.low %v1668_v13, %v1676_v49  ;;  %v6806_v13 = vrot.slane %v5360_v57, %v5015_v5 }
 0x21c   : > { %v5474_v40 = vpop.f32.mrb[18].mxu0  ;;  %v2192_v51 = vrot.slane %v2184_v7, %v5015_v5  ;;  %v2267_v62 = vcombine.low %v1717_v27, %v1719_v50  ;;  %v1473_v1 = vmax.f32 %v1406_v35, 0.0  ;;  %v2274_v46 = vrot.slane %v2266_v11, %v5015_v5 }
 0x21d   : > { %v5486_v24 = vpop.f32.mrb[19].mxu0  ;;  %v2183_v23 = vcombine.low %v6806_v13, %v2182_v59  ;;  %v1685_v49 = vcombine.high %v1683_v63, %v1683_v63  ;;  %v2226_v36 = vcombine.low %v1684_v54, %v1683_v63  ;;  %v1727_v42 = vrot.slane %v1498_v61, %v5015_v5 }
 0x21e   : > { %v6809_v57 = vrot.slane %v5342_v10, %v5015_v5  ;;  %v2281_v35 = vrot.slane %v2267_v62, %v5015_v5  ;;  %v2233_v27 = vrot.slane %v2225_v16, %v5015_v5  ;;  %v5516_v7 = vrot.slane %v1720_v14, %v5015_v5 }
 0x21f   : > { %v2240_v50 = vrot.slane %v2226_v36, %v5015_v5  ;;  %v2248_v61 = vrot.slane %v1685_v49, %v5015_v5  ;;  %v1735_v11 = vcombine.high %v1727_v42, %v1727_v42  ;;  %v2289_v10 = vrot.slane %v1727_v42, %v5015_v5 }
 0x220   : > { %v2200_v59 = vcombine.low %v2192_v51, %v6809_v57  ;;  %v5527_v63 = vsel %vm5469_vm10, %v2224_v58, 0.0  ;;  %v5531_v14 = vsel %vm5492_vm12, %v2183_v23, 0.0  ;;  %v2282_v54 = vcombine.low %v2274_v46, %v2281_v35 }
 0x221   : > { %v1496_v16 = vmin.f32 %v1473_v1, 6.0  ;;  %v2241_v51 = vcombine.low %v2233_v27, %v2240_v50  ;;  %v5537_v36 = vsel %vm5505_vm13, %v2248_v61, 0.0  ;;  %v5540_v62 = vcombine.low %v1735_v11, %v5516_v7 }
 0x222   : > { %v5533_v13 = vpop.f32.mrb[20].mxu0  ;;  %6810 = vst [vmem:[#allocation43_spill] sm:$0xff] %v5537_v36  ;;  %v2539_v42 = vsel %vm2009_vm15, %v2289_v10, 0.0  ;;  %v5546_v58 = vmul.f32 %v5161_v29, %v5537_v36  ;;  %v5550_v28 = vmul.f32 %v5172_v38, %v5537_v36  ;;  %v5554_v23 = vmul.f32 %v5185_v47, %v5537_v36 }
 0x223   : > { %v5542_v20 = vpop.f32.mrb[21].mxu0  ;;  %v5558_v21 = vmul.f32 %v5164_v31, %v5537_v36  ;;  %v5562_v46 = vsel %vm5314_vm14, %v2200_v59, 0.0  ;;  %v5566_v49 = vsel %vm5482_vm11, %v2282_v54, 0.0  ;;  %v2685_v57 = vmul.f32 %v5161_v29, %v2539_v42 }
 0x224   : > { %6811 = vst [vmem:[#allocation44_spill] sm:$0xff] %v5546_v58  ;;  %6812 = vst [vmem:[#allocation45_spill] sm:$0xff] %v5550_v28  ;;  %v4016_v1 = vpop.f32.mrb[22].mxu0  ;;  %v1427_v35 = vadd.f32 %v5388_v44, %v5153_v25  ;;  %v5575_v50 = vsel %vm5452_vm9, %v2241_v51, 0.0  ;;  %v5584_v10 = vmul.f32 %v5161_v29, %v5566_v49  ;;  %v5587_v44 = vmul.f32 %v5172_v38, %v2539_v42 }
 0x225   : > { %6813 = vst [vmem:[#allocation46_spill] sm:$0xff] %v5554_v23  ;;  %6814 = vst [vmem:[#allocation47_spill] sm:$0xff] %v5558_v21  ;;  %v5571_v27 = vpop.f32.mrb[23].mxu0  ;;  %v5590_v8 = vmul.f32 %v5185_v47, %v2539_v42  ;;  %vm1935_vm14 = vcmp.ge.s32.totalorder %v5205_v56, 1  ;;  %vm1945_vm1 = vcmp.le.s32.totalorder %v5205_v56, 16  ;;  %v5596_v51 = vmul.f32 %v5164_v31, %v2539_v42 }
 0x226   : > { %6815 = vst [vmem:[#allocation48_spill] sm:$0xff] %v5566_v49  ;;  %6816 = vst [vmem:[#allocation49_spill] sm:$0xff] %v5575_v50  ;;  %v5599_v1 = vmul.f32 %v5174_v39, %v2539_v42  ;;  %v1686_v61 = vcombine.high %v1496_v16, %v1496_v16  ;;  %v6713_v45 = vrot.slane %v5584_v10, 1  ;;  %v2743_v11 = vrot.slane %v2685_v57, 1 }
 0x227   : > { %6817 = vst [vmem:[#allocation50_spill] sm:$0xff] %v5584_v10  ;;  %6818 = vst [vmem:[#allocation51_spill] sm:$0xff] %v5587_v44  ;;  %v5603_v59 = vmul.f32 %v5199_v52, %v2539_v42  ;;  %v1693_v58 = vrot.slane %v1496_v16, %v5015_v5  ;;  %vm1934_vm4 = vcmp.ge.s32.totalorder %v5202_v55, 1  ;;  %vm1944_vm5 = vcmp.le.s32.totalorder %v5202_v55, 16 }
 0x228   : > { %6819 = vst [vmem:[#allocation52_spill] sm:$0xff] %v5596_v51  ;;  %6820 = vst [vmem:[#allocation53_spill] sm:$0xff] %v5599_v1  ;;  %v1700_v49 = vrot.slane %v1686_v61, %v5015_v5  ;;  %v5615_v57 = vsel %vm2719_vm2, %v6713_v45, %v2743_v11  ;;  %v1478_v36 = vmax.f32 %v1427_v35, 0.0  ;;  %v1419_v16 = vadd.f32 %v5153_v25, %v5401_v53 }
 0x229   : > { %6821 = vst [vmem:[#allocation54_spill] sm:$0xff] %v5603_v59  ;;  %6822 = vst [vmem:[#allocation55_spill] sm:$0xff] %v5615_v57  ;;  %v1701_v42 = vcombine.high %v1693_v58, %v1693_v58  ;;  %v1430_v54 = vadd.f32 %v5413_v22, %v5153_v25  ;;  %v1422_v28 = vadd.f32 %v5153_v25, %v5426_v32  ;;  %vm1937_vm13 = vcmp.ge.s32.totalorder %v5229_v18, 1 }
 0x22a   : > { %v1702_v50 = vcombine.high %v1700_v49, %v1700_v49  ;;  %v1501_v51 = vmin.f32 %v1478_v36, 6.0  ;;  %v1476_v11 = vmax.f32 %v1419_v16, 0.0  ;;  %v1443_v53 = vadd.f32 %v5460_v43, %v5153_v25  ;;  %vm5647_vm8 = vmand %vm1935_vm14, %vm1945_vm1 }
 0x22b   : > { %v2249_v21 = vcombine.low %v1693_v58, %v1701_v42  ;;  %v1479_v10 = vmax.f32 %v1430_v54, 0.0  ;;  %v1477_v35 = vmax.f32 %v1422_v28, 0.0  ;;  %v1736_v22 = vcombine.high %v5516_v7, %v5516_v7  ;;  %vm5656_vm9 = vmand %vm1934_vm4, %vm1944_vm5 }
 0x22c   : > { %v2250_v45 = vcombine.low %v1700_v49, %v1702_v50  ;;  %v1771_v57 = vcombine.high %v1501_v51, %v1501_v51  ;;  %v1778_v23 = vrot.slane %v1501_v51, %v5015_v5  ;;  %v1499_v1 = vmin.f32 %v1476_v11, 6.0  ;;  %vm2015_vm10 = vmand %vm5647_vm8, %vm1994_vm3 }
 0x22d   : > { %v2257_v32 = vrot.slane %v2249_v21, %v5015_v5  ;;  %v1502_v58 = vmin.f32 %v1479_v10, 6.0  ;;  %v1500_v36 = vmin.f32 %v1477_v35, 6.0  ;;  %v1482_v10 = vmax.f32 %v1443_v53, 0.0  ;;  %vm1977_vm11 = vmand %vm5656_vm9, %vm1959_vm7 }
 0x22e   : > { %v2264_v61 = vrot.slane %v2250_v45, %v5015_v5  ;;  %v1785_v43 = vrot.slane %v1771_v57, %v5015_v5  ;;  %v1786_v49 = vcombine.high %v1778_v23, %v1778_v23  ;;  %v1737_v50 = vcombine.high %v1499_v1, %v1499_v1  ;;  %vm2012_vm12 = vmand %vm5656_vm9, %vm1994_vm3 }
 0x22f   : > { %v1744_v7 = vrot.slane %v1499_v1, %v5015_v5  ;;  %v1788_v21 = vcombine.high %v1502_v58, %v1502_v58  ;;  %v1795_v45 = vrot.slane %v1502_v58, %v5015_v5  ;;  %v1754_v16 = vcombine.high %v1500_v36, %v1500_v36 }
 0x230   : > { %v2265_v54 = vcombine.low %v2257_v32, %v2264_v61  ;;  %v1787_v51 = vcombine.high %v1785_v43, %v1785_v43  ;;  %v1751_v57 = vrot.slane %v1737_v50, %v5015_v5  ;;  %v5665_v35 = vadd.f32 %v5153_v25, %v5463_v9 }
 0x231   : > { %v1752_v42 = vcombine.high %v1744_v7, %v1744_v7  ;;  %v2291_v61 = vcombine.low %v1736_v22, %v1744_v7  ;;  %v5661_v56 = vrot.slane %v1788_v21, %v5015_v5  ;;  %v1803_v11 = vcombine.high %v1795_v45, %v1795_v45 }
 0x232   : > { %v5669_v53 = vsel %vm5636_vm6, %v2265_v54, 0.0  ;;  %v2332_v32 = vcombine.low %v1778_v23, %v1786_v49  ;;  %v2348_v58 = vcombine.low %v1785_v43, %v1787_v51  ;;  %v1761_v9 = vrot.slane %v1500_v36, %v5015_v5  ;;  %vm5788_vm6 = vmand %vm5647_vm8, %vm1959_vm7 }
 0x233   : > { %v2307_v55 = vcombine.low %v1752_v42, %v1751_v57  ;;  %v2305_v22 = vrot.slane %v2291_v61, %v5015_v5  ;;  %v2349_v50 = vcombine.low %v1795_v45, %v1803_v11  ;;  %v2371_v7 = vrot.slane %v5661_v56, %v5015_v5 }
 0x234   : > { %v2356_v28 = vrot.slane %v2348_v58, %v5015_v5  ;;  %v1753_v54 = vcombine.high %v1751_v57, %v1751_v57  ;;  %v1768_v23 = vrot.slane %v1754_v16, %v5015_v5  ;;  %v1505_v43 = vmin.f32 %v1482_v10, 6.0 }
 0x235   : > { %v6829_v49 = vrot.slane %v5540_v62, %v5015_v5  ;;  %v2363_v45 = vrot.slane %v2349_v50, %v5015_v5  ;;  %v5689_v51 = vsel %vm2015_vm10, %v2371_v7, 0.0  ;;  %v1769_v36 = vcombine.high %v1761_v9, %v1761_v9 }
 0x236   : > { %6830 = vst [vmem:[#allocation56_spill] sm:$0xff] %v5689_v51  ;;  %v5693_v57 = vmul.f32 %v5161_v29, %v5689_v51  ;;  %v5697_v10 = vmul.f32 %v5172_v38, %v5689_v51  ;;  %v5701_v42 = vmul.f32 %v5185_v47, %v5689_v51  ;;  %v5705_v62 = vmul.f32 %v5164_v31, %v5689_v51 }
 0x237   : > { %v2306_v21 = vcombine.low %v6829_v49, %v2305_v22  ;;  %v2346_v16 = vrot.slane %v2332_v32, %v5015_v5  ;;  %v2315_v61 = vrot.slane %v2307_v55, %v5015_v5  ;;  %v2364_v11 = vcombine.low %v2356_v28, %v2363_v45 }
 0x238   : > { %6831 = vst [vmem:[#allocation57_spill] sm:$0xff] %v5697_v10  ;;  %6832 = vst [vmem:[#allocation58_spill] sm:$0xff] %v5701_v42  ;;  %v1770_v58 = vcombine.high %v1768_v23, %v1768_v23  ;;  %v5715_v49 = vmul.f32 %v5174_v39, %v5689_v51  ;;  %v2308_v28 = vcombine.low %v1753_v54, %v1761_v9  ;;  %v1480_v59 = vmax.f32 %v5665_v35, 0.0 }
 0x239   : > { %6833 = vst [vmem:[#allocation59_spill] sm:$0xff] %v5705_v62  ;;  %v5709_v22 = vsel %vm1977_vm11, %v2306_v21, 0.0  ;;  %v2330_v21 = vrot.slane %v1769_v36, %v5015_v5  ;;  %v5726_v45 = vsel %vm5647_vm8, %v2364_v11, 0.0  ;;  %v1839_v50 = vcombine.high %v1505_v43, %v1505_v43 }
 0x23a   : > { %6834 = vst [vmem:[#allocation60_spill] sm:$0xff] %v5715_v49  ;;  %v2331_v7 = vcombine.low %v1768_v23, %v1770_v58  ;;  %v1846_v10 = vrot.slane %v1505_v43, %v5015_v5  ;;  %v2322_v51 = vrot.slane %v2308_v28, %v5015_v5  ;;  %v1446_v55 = vadd.f32 %v5474_v40, %v5153_v25 }
 0x23b   : > { %v5730_v44 = vsel %vm2012_vm12, %v2330_v21, 0.0  ;;  %vm1947_vm15 = vcmp.le.s32.totalorder %v5229_v18, 16  ;;  %vm1936_vm14 = vcmp.ge.s32.totalorder %v5216_v0, 1  ;;  %vm1946_vm1 = vcmp.le.s32.totalorder %v5216_v0, 16 }
 0x23c   : > { %v2339_v9 = vrot.slane %v2331_v7, %v5015_v5  ;;  %v5740_v54 = vmul.f32 %v5161_v29, %v5730_v44  ;;  %v5744_v23 = vmul.f32 %v5172_v38, %v5730_v44  ;;  %v5748_v35 = vmul.f32 %v5185_v47, %v5730_v44  ;;  %vm5806_vm8 = vmand %vm1936_vm14, %vm1946_vm1 }
 0x23d   : > { %v2323_v43 = vcombine.low %v2315_v61, %v2322_v51  ;;  %v5755_v36 = vmul.f32 %v5164_v31, %v5730_v44  ;;  %v1853_v11 = vrot.slane %v1839_v50, %v5015_v5  ;;  %vm1938_vm4 = vcmp.ge.s32.totalorder %v5248_v26, 1 }
 0x23e   : > { %6835 = vst [vmem:[#allocation61_spill] sm:$0xff] %v5740_v54  ;;  %6836 = vst [vmem:[#allocation62_spill] sm:$0xff] %v5744_v23  ;;  %vm1948_vm5 = vcmp.le.s32.totalorder %v5248_v26, 16  ;;  %v2347_v58 = vcombine.low %v2339_v9, %v2346_v16  ;;  %v5763_v28 = vmul.f32 %v5174_v39, %v5730_v44  ;;  %v1804_v51 = vcombine.high %v5661_v56, %v5661_v56 }
 0x23f   : > { %6837 = vst [vmem:[#allocation63_spill] sm:$0xff] %v5755_v36  ;;  %v5769_v61 = vsel %vm5656_vm9, %v2323_v43, 0.0  ;;  %v1854_v40 = vcombine.high %v1846_v10, %v1846_v10  ;;  %v1855_v9 = vcombine.high %v1853_v11, %v1853_v11  ;;  %v1503_v7 = vmin.f32 %v1480_v59, 6.0  ;;  %vm5798_vm9 = vmand %vm1937_vm13, %vm1947_vm15 }
 0x240   : > { %6838 = vst [vmem:[#allocation64_spill] sm:$0xff] %v5763_v28  ;;  %v1483_v32 = vmax.f32 %v1446_v55, 0.0  ;;  %v1438_v49 = vadd.f32 %v5153_v25, %v5486_v24  ;;  %v1459_v56 = vadd.f32 %v5533_v13, %v5153_v25  ;;  %v1451_v1 = vadd.f32 %v5153_v25, %v5542_v20  ;;  %vm5821_vm10 = vmand %vm1938_vm4, %vm1948_vm5 }
 0x241   : > { %v2413_v62 = vcombine.low %v1846_v10, %v1854_v40  ;;  %v2414_v43 = vcombine.low %v1853_v11, %v1855_v9  ;;  %v1805_v50 = vcombine.high %v1503_v7, %v1503_v7  ;;  %v1812_v21 = vrot.slane %v1503_v7, %v5015_v5  ;;  %vm1986_vm11 = vmand %vm5798_vm9, %vm1959_vm7 }
 0x242   : > { %v1506_v54 = vmin.f32 %v1483_v32, 6.0  ;;  %v1481_v36 = vmax.f32 %v1438_v49, 0.0  ;;  %v1486_v59 = vmax.f32 %v1459_v56, 0.0  ;;  %v1484_v55 = vmax.f32 %v1451_v1, 0.0  ;;  %vm2024_vm12 = vmand %vm5821_vm10, %vm1994_vm3 }
 0x243   : > { %v2421_v16 = vrot.slane %v2413_v62, %v5015_v5  ;;  %v2428_v10 = vrot.slane %v2414_v43, %v5015_v5  ;;  %v1819_v24 = vrot.slane %v1805_v50, %v5015_v5  ;;  %v1820_v40 = vcombine.high %v1812_v21, %v1812_v21  ;;  %vm5844_vm13 = vmand %vm5806_vm8, %vm1994_vm3 }
 0x244   : > { %v2372_v42 = vcombine.low %v1804_v51, %v1812_v21  ;;  %v1856_v13 = vcombine.high %v1506_v54, %v1506_v54  ;;  %v1863_v20 = vrot.slane %v1506_v54, %v5015_v5  ;;  %v1504_v62 = vmin.f32 %v1481_v36, 6.0  ;;  %vm1983_vm15 = vmand %vm5806_vm8, %vm1959_vm7 }
 0x245   : > { %v1509_v49 = vmin.f32 %v1486_v59, 6.0  ;;  %v2429_v11 = vcombine.low %v2421_v16, %v2428_v10  ;;  %v2373_v7 = vcombine.low %v1820_v40, %v1819_v24  ;;  %v1821_v50 = vcombine.high %v1819_v24, %v1819_v24  ;;  %vm2021_vm14 = vmand %vm5798_vm9, %vm1994_vm3 }
 0x246   : > { %v1870_v36 = vrot.slane %v1856_v13, %v5015_v5  ;;  %v1871_v51 = vcombine.high %v1863_v20, %v1863_v20  ;;  %v1822_v21 = vcombine.high %v1504_v62, %v1504_v62  ;;  %v1829_v16 = vrot.slane %v1504_v62, %v5015_v5  ;;  %vm1989_vm1 = vmand %vm5821_vm10, %vm1959_vm7 }
 0x247   : > { %v2380_v18 = vrot.slane %v2372_v42, %v5015_v5  ;;  %v2387_v9 = vrot.slane %v2373_v7, %v5015_v5  ;;  %v5815_v56 = vrot.slane %v1509_v49, %v5015_v5  ;;  %v1507_v1 = vmin.f32 %v1484_v55, 6.0 }
 0x248   : > { %v1872_v43 = vcombine.high %v1870_v36, %v1870_v36  ;;  %v2430_v59 = vcombine.low %v1863_v20, %v1871_v51  ;;  %v1836_v10 = vrot.slane %v1822_v21, %v5015_v5  ;;  %v1837_v24 = vcombine.high %v1829_v16, %v1829_v16 }
 0x249   : > { %v2388_v42 = vcombine.low %v2380_v18, %v2387_v9  ;;  %v2389_v40 = vcombine.low %v1821_v50, %v1829_v16  ;;  %v1914_v26 = vcombine.high %v5815_v56, %v5815_v56  ;;  %v1873_v13 = vcombine.high %v1507_v1, %v1507_v1 }
 0x24a   : > { %v5834_v62 = vsel %vm5788_vm6, %v2347_v58, 0.0  ;;  %v2431_v55 = vcombine.low %v1870_v36, %v1872_v43  ;;  %v1838_v20 = vcombine.high %v1836_v10, %v1836_v10  ;;  %v2390_v49 = vcombine.low %v1837_v24, %v1836_v10 }
 0x24b   : > { %v2397_v25 = vrot.slane %v2389_v40, %v5015_v5  ;;  %v2494_v58 = vrot.slane %v1914_v26, %v5015_v5  ;;  %v1880_v50 = vrot.slane %v1507_v1, %v5015_v5  ;;  %v5851_v36 = vsel %vm1986_vm11, %v2429_v11, 0.0 }
 0x24c   : > { %v2438_v51 = vrot.slane %v2430_v59, %v5015_v5  ;;  %v2445_v21 = vrot.slane %v2431_v55, %v5015_v5  ;;  %v2404_v16 = vrot.slane %v2390_v49, %v5015_v5  ;;  %v2412_v18 = vrot.slane %v1838_v20, %v5015_v5 }
 0x24d   : > { %v2554_v9 = vsel %vm2024_vm12, %v2494_v58, 0.0  ;;  %v5862_v43 = vrot.slane %v1873_v13, %v5015_v5  ;;  %v1888_v1 = vcombine.high %v1880_v50, %v1880_v50  ;;  %v2453_v11 = vrot.slane %v1880_v50, %v5015_v5 }
 0x24e   : > { %v2446_v10 = vcombine.low %v2438_v51, %v2445_v21  ;;  %v2405_v59 = vcombine.low %v2397_v25, %v2404_v16  ;;  %v5867_v24 = vsel %vm5844_vm13, %v2412_v18, 0.0  ;;  %v5870_v40 = vmul.f32 %v5185_v47, %v2554_v9 }
 0x24f   : > { %6849 = vst [vmem:[#allocation65_spill] sm:$0xff] %v5867_v24  ;;  %v5874_v26 = vmul.f32 %v5161_v29, %v5867_v24  ;;  %v2816_v13 = vmul.f32 %v5172_v38, %v5867_v24  ;;  %v5880_v55 = vmul.f32 %v5185_v47, %v5867_v24  ;;  %v5884_v20 = vmul.f32 %v5164_v31, %v5867_v24 }
 0x250   : > { %6850 = vst [vmem:[#allocation66_spill] sm:$0xff] %v5870_v40  ;;  %v5890_v49 = vsel %vm1983_vm15, %v2388_v42, 0.0  ;;  %v5894_v7 = vsel %vm5806_vm8, %v2405_v59, 0.0  ;;  %v5897_v25 = vmul.f32 %v5199_v52, %v2554_v9  ;;  %v2576_v58 = vmul.f32 %v5166_v33, %v5726_v45 }
 0x251   : > { %6851 = vst [vmem:[#allocation67_spill] sm:$0xff] %v5880_v55  ;;  %6852 = vst [vmem:[#allocation68_spill] sm:$0xff] %v5884_v20  ;;  %v2877_v51 = vrot.slane %v2816_v13, 1  ;;  %v5904_v21 = vcombine.low %v1888_v1, %v5862_v43  ;;  %v5910_v16 = vsel %vm5798_vm9, %v2446_v10, 0.0  ;;  %v2551_v18 = vsel %vm2021_vm14, %v2453_v11, 0.0 }
 0x252   : > { %6853 = vst [vmem:[#allocation69_spill] sm:$0xff] %v5897_v25  ;;  %6854 = vst [vmem:[#allocation70_spill] sm:$0xff] %v5910_v16  ;;  %v2612_v59 = vmul.f32 %v5168_v34, %v5894_v7  ;;  %v2648_v13 = vmul.f32 %v5208_v60, %v5910_v16  ;;  %v5919_v1 = vmul.f32 %v5161_v29, %v5726_v45  ;;  %v6857_v19 = vrot.slane %v5693_v57, 1 }
 0x253   : > { %v5923_v54 = vmul.f32 %v5172_v38, %v5894_v7  ;;  %v2817_v48 = vmul.f32 %v5172_v38, %v5851_v36  ;;  %v2818_v11 = vmul.f32 %v5172_v38, %v5910_v16  ;;  %v2819_v10 = vmul.f32 %v5172_v38, %v2551_v18 }
 0x254   : > { %6855 = vst [vmem:[#allocation71_spill] sm:$0xff] %v5919_v1  ;;  %v2628_v9 = vadd.f32 %v2612_v59, %v2576_v58  ;;  %v5933_v42 = vmul.f32 %v5185_v47, %v5851_v36  ;;  %v5937_v32 = vmul.f32 %v5185_v47, %v5910_v16  ;;  %v5944_v58 = vmul.f32 %v5208_v60, %v5851_v36 }
 0x255   : > { %v6734_v20 = vrot.slane %v5923_v54, 1  ;;  %v2880_v25 = vrot.slane %v2818_v11, 1  ;;  %v2882_v40 = vrot.slane %v2819_v10, 1  ;;  %v6858_v24 = vrot.slane %v5919_v1, 1 }
 0x256   : > { %6856 = vst [vmem:[#allocation72_spill] sm:$0xff] %v5944_v58  ;;  %v2664_v59 = vadd.f32 %v2648_v13, %v2628_v9  ;;  %v2940_v28 = vmul.f32 %v5185_v47, %v2551_v18  ;;  %v2879_v23 = vrot.slane %v2817_v48, 1  ;;  %v6735_v10 = vrot.slane %v5937_v32, 1  ;;  %v4245_v13 = vld [vmem:[#allocation7] ss:$0 sm:$0xff] }
 0x257   : > { %v2754_v55 = vsel %vm2719_vm2, %v6858_v24, %v6857_v19  ;;  %v2878_v50 = vsel %vm2719_vm2, %v6734_v20, %v2877_v51  ;;  %v5956_v11 = vsel %vm2719_vm2, %v2880_v25, %v2882_v40  ;;  %v1454_v1 = vadd.f32 %v4245_v13, %v5571_v27 }
 0x258   : > { %6859 = vst [vmem:[#allocation73_spill] sm:$0xff] %v5956_v11  ;;  %v2789_v58 = vadd.f32 %v2754_v55, %v2664_v59  ;;  %v3001_v57 = vrot.slane %v2940_v28, 1  ;;  %v5962_v24 = vmul.f32 %v5174_v39, %v2551_v18  ;;  %v5965_v19 = vmul.f32 %v5199_v52, %v2551_v18 }
 0x259   : > { %v2577_v51 = vmul.f32 %v5166_v33, %v5890_v49  ;;  %v2578_v40 = vmul.f32 %v5166_v33, %v5894_v7  ;;  %v1485_v55 = vmax.f32 %v1454_v1, 0.0  ;;  %v1889_v27 = vcombine.high %v5862_v43, %v5862_v43 }
 0x25a   : > { %6860 = vst [vmem:[#allocation74_spill] sm:$0xff] %v5962_v24  ;;  %v2913_v48 = vadd.f32 %v2878_v50, %v2789_v58  ;;  %v3002_v28 = vsel %vm2719_vm2, %v6735_v10, %v3001_v57  ;;  %v2613_v59 = vmul.f32 %v5168_v34, %v5851_v36  ;;  %v2614_v18 = vmul.f32 %v5168_v34, %v5910_v16 }
 0x25b   : > { %v2692_v13 = vmul.f32 %v5161_v29, %v5890_v49  ;;  %v2693_v50 = vmul.f32 %v5161_v29, %v5894_v7  ;;  %v1508_v20 = vmin.f32 %v1485_v55, 6.0  ;;  %v5987_v1 = vsel %vm2719_vm2, %v2879_v23, %v2880_v25 }
 0x25c   : > { %v5984_v58 = vadd.f32 %v3002_v28, %v2913_v48  ;;  %v2615_v43 = vadd.f32 %v5299_v17, %v5303_v30  ;;  %v2629_v57 = vadd.f32 %v2613_v59, %v2577_v51  ;;  %v5991_v9 = vadd.f32 %v2614_v18, %v2578_v40 }
 0x25d   : > { %v2755_v10 = vrot.slane %v2692_v13, 1  ;;  %v2756_v24 = vrot.slane %v2693_v50, 1  ;;  %vm3092_vm3 = vcmask 1045504   ;;  %v1890_v11 = vcombine.high %v1508_v20, %v1508_v20 }
 0x25e   : > { %v1897_v16 = vrot.slane %v1508_v20, %v5015_v5  ;;  %v2616_v48 = vadd.f32 %v5417_v41, %v5347_v37  ;;  %v2635_v28 = vmul.f32 %v5208_v60, %v5531_v14  ;;  %v6861_v25 = vrot.slane %v5874_v26, 1 }
 0x25f   : > { %v2757_v23 = vsel %vm2719_vm2, %v2755_v10, %v2756_v24  ;;  %v2636_v30 = vmul.f32 %v5208_v60, %v5562_v46  ;;  %v6862_v51 = vrot.slane %v5332_v6, 1  ;;  %v6863_v20 = vrot.slane %v5284_v12, 1 }
 0x260   : > { %v6002_v17 = vsel %vm2719_vm2, %v2756_v24, %v6861_v25  ;;  %v1904_v37 = vrot.slane %v1890_v11, %v5015_v5  ;;  %v1905_v41 = vcombine.high %v1897_v16, %v1897_v16  ;;  %v2455_v55 = vcombine.low %v1889_v27, %v1897_v16 }
 0x261   : > { %v2722_v40 = vsel %vm2719_vm2, %v6863_v20, %v6862_v51  ;;  %v2651_v59 = vadd.f32 %v2635_v28, %v2615_v43  ;;  %v2652_v10 = vadd.f32 %v2636_v30, %v2616_v48  ;;  %v6864_v26 = vrot.slane %v5226_v15, 1 }
 0x262   : > { %v6865_v24 = vmov %v6862_v51  ;;  %v2796_v13 = vmul.f32 %v5172_v38, %v5272_v4  ;;  %v2797_v12 = vmul.f32 %v5172_v38, %v5392_v2  ;;  %v1906_v50 = vcombine.high %v1904_v37, %v1904_v37 }
 0x263   : > { %v2724_v18 = vsel %vm2719_vm2, %v6865_v24, %v6864_v26  ;;  %v2469_v25 = vrot.slane %v2455_v55, %v5015_v5  ;;  %v2471_v11 = vcombine.low %v1905_v41, %v1904_v37  ;;  %v2776_v51 = vadd.f32 %v2722_v40, %v2651_v59  ;;  %v6867_v40 = vld [vmem:[#allocation36_spill] sm:$0xff]  ;;  %v6869_v55 = vld [vmem:[#allocation31_spill] sm:$0xff] }
 0x264   : > { %v2777_v15 = vadd.f32 %v2724_v18, %v2652_v10  ;;  %v2844_v6 = vrot.slane %v2796_v13, 1  ;;  %v2845_v16 = vrot.slane %v2797_v12, 1  ;;  %v2920_v27 = vmul.f32 %v5185_v47, %v5531_v14 }
 0x265   : > { %v6866_v43 = vrot.slane %v5904_v21, %v5015_v5  ;;  %v2472_v28 = vcombine.low %v1906_v50, %v5815_v56  ;;  %v2479_v30 = vrot.slane %v2471_v11, %v5015_v5  ;;  %v2921_v3 = vmul.f32 %v5185_v47, %v5562_v46 }
 0x266   : > { %v2846_v20 = vsel %vm2719_vm2, %v2844_v6, %v2845_v16  ;;  %v6868_v37 = vrot.slane %v6867_v40, 1  ;;  %v2922_v59 = vmul.f32 %v5185_v47, %v6869_v55  ;;  %v2968_v10 = vrot.slane %v2920_v27, 1  ;;  %v6871_v6 = vld [vmem:[#allocation30_spill] sm:$0xff] }
 0x267   : > { %v2470_v48 = vcombine.low %v6866_v43, %v2469_v25  ;;  %v2486_v21 = vrot.slane %v2472_v28, %v5015_v5  ;;  %v2900_v24 = vadd.f32 %v2846_v20, %v2776_v51  ;;  %v2969_v50 = vrot.slane %v2921_v3, 1  ;;  %v6873_v43 = vld [vmem:[#allocation27_spill] sm:$0xff]  ;;  %v6875_v5 = vld [vmem:[#allocation25_spill] sm:$0xff] }
 0x268   : > { %v2848_v41 = vsel %vm2719_vm2, %v2845_v16, %v6868_v37  ;;  %v2971_v11 = vrot.slane %v2922_v59, 1  ;;  %v6872_v16 = vrot.slane %v6871_v6, 2  ;;  %v6874_v40 = vrot.slane %v6873_v43, 2  ;;  %v6878_v43 = vld [vmem:[#allocation42_spill] sm:$0xff]  ;;  %v6890_v28 = vld [vmem:[#allocation41_spill] sm:$0xff] }
 0x269   : > { %v2552_v26 = vsel %vm1989_vm1, %v2470_v48, 0.0  ;;  %v2901_v56 = vadd.f32 %v2848_v41, %v2777_v15  ;;  %v2487_v25 = vcombine.low %v2479_v30, %v2486_v21  ;;  %v6876_v48 = vrot.slane %v6875_v5, 2 }
 0x26a   : > { %v2649_v18 = vmul.f32 %v5208_v60, %v2552_v26  ;;  %v2941_v13 = vmul.f32 %v5185_v47, %v2552_v26  ;;  %v6045_v12 = vmul.f32 %v5199_v52, %v2552_v26  ;;  %v3095_v27 = vsel %vm3092_vm3, %v6874_v40, %v6872_v16 }
 0x26b   : > { %v6877_v51 = vmov %v6872_v16  ;;  %v2970_v3 = vsel %vm2719_vm2, %v2968_v10, %v2969_v50  ;;  %v2553_v30 = vsel %vm5821_vm10, %v2487_v25, 0.0  ;;  %v2972_v41 = vsel %vm2719_vm2, %v2969_v50, %v2971_v11 }
 0x26c   : > { %6870 = vst [vmem:[#allocation36_spill] sm:$0xff] %v6045_v12  ;;  %v3097_v15 = vsel %vm3092_vm3, %v6877_v51, %v6876_v48  ;;  %v2665_v20 = vadd.f32 %v2649_v18, %v2629_v57  ;;  %v3003_v37 = vrot.slane %v2941_v13, 1  ;;  %v3024_v59 = vadd.f32 %v2970_v3, %v2900_v24  ;;  %v6891_v12 = vld [vmem:[#allocation33_spill] sm:$0xff] }
 0x26d   : > { %v3169_v21 = vmul.f32 %v5174_v39, %v5272_v4  ;;  %v2650_v26 = vmul.f32 %v5208_v60, %v2553_v30  ;;  %v6066_v16 = vmul.f32 %v5185_v47, %v2553_v30  ;;  %v6070_v18 = vmul.f32 %v5199_v52, %v2553_v30 }
 0x26e   : > { %v2790_v6 = vadd.f32 %v2757_v23, %v2665_v20  ;;  %v3025_v10 = vadd.f32 %v2972_v41, %v2901_v56  ;;  %v3149_v0 = vadd.f32 %v3095_v27, %v3024_v59  ;;  %v3170_v13 = vmul.f32 %v5174_v39, %v5392_v2  ;;  %v6879_v59 = vld [vmem:[#allocation49_spill] sm:$0xff] }
 0x26f   : > { %v2666_v24 = vadd.f32 %v2650_v26, %v5991_v9  ;;  %v6738_v23 = vrot.slane %v6066_v16, 1  ;;  %v3217_v50 = vrot.slane %v3169_v21, 2  ;;  %v3220_v40 = vrot.slane %v6878_v43, 2  ;;  %v6105_v26 = vld [vmem:[#allocation10] ss:$0 sm:$0xff] }
 0x270   : > { %v6076_v4 = vadd.f32 %v5987_v1, %v2790_v6  ;;  %v3150_v25 = vadd.f32 %v3097_v15, %v3025_v10  ;;  %v3218_v11 = vrot.slane %v3170_v13, 2  ;;  %v3293_v5 = vmul.f32 %v5199_v52, %v5531_v14 }
 0x271   : > { %v6083_v56 = vadd.f32 %v6002_v17, %v2666_v24  ;;  %v6088_v2 = vsel %vm2719_vm2, %v3003_v37, %v6738_v23  ;;  %v3294_v9 = vmul.f32 %v5199_v52, %v5562_v46  ;;  %v3295_v1 = vmul.f32 %v5199_v52, %v6869_v55  ;;  %v6882_v24 = vld [vmem:[#allocation26_spill] sm:$0xff] }
 0x272   : > { %v3219_v48 = vsel %vm3092_vm3, %v3217_v50, %v3218_v11  ;;  %v3221_v51 = vsel %vm3092_vm3, %v3218_v11, %v3220_v40  ;;  %v3341_v15 = vrot.slane %v3293_v5, 2  ;;  %v2601_v37 = vmul.f32 %v5168_v34, %v5531_v14  ;;  %v6884_v5 = vld [vmem:[#allocation28_spill] sm:$0xff] }
 0x273   : > { %v3273_v17 = vadd.f32 %v3219_v48, %v3149_v0  ;;  %v3274_v20 = vadd.f32 %v3221_v51, %v3150_v25  ;;  %v3342_v3 = vrot.slane %v3294_v9, 2  ;;  %v3344_v30 = vrot.slane %v3295_v1, 2  ;;  %v6880_v0 = vld [vmem:[#allocation39_spill] sm:$0xff]  ;;  %v6885_v1 = vld [vmem:[#allocation38_spill] sm:$0xff] }
 0x274   : > { %v2602_v41 = vmul.f32 %v5168_v34, %v5562_v46  ;;  %v2637_v55 = vmul.f32 %v5208_v60, %v5527_v63  ;;  %v2638_v21 = vmul.f32 %v5208_v60, %v6879_v59  ;;  %vm3530_vm7 = vcmask 785408  }
 0x275   : > { %v3343_v6 = vsel %vm3092_vm3, %v3341_v15, %v3342_v3  ;;  %v3345_v10 = vsel %vm3092_vm3, %v3342_v3, %v3344_v30  ;;  %v6881_v13 = vrot.slane %v6880_v0, 1  ;;  %v6883_v50 = vrot.slane %v6882_v24, 1 }
 0x276   : > { %v2799_v11 = vmul.f32 %v5172_v38, %v5531_v14  ;;  %v3397_v43 = vadd.f32 %v3343_v6, %v3273_v17  ;;  %v3398_v40 = vadd.f32 %v3345_v10, %v3274_v20  ;;  %v2617_v9 = vadd.f32 %v2601_v37, %v6884_v5 }
 0x277   : > { %v2727_v25 = vsel %vm2719_vm2, %v6883_v50, %v6881_v13  ;;  %v2618_v48 = vadd.f32 %v2602_v41, %v6885_v1  ;;  %v2800_v51 = vmul.f32 %v5172_v38, %v5562_v46  ;;  %v2923_v3 = vmul.f32 %v5185_v47, %v5527_v63  ;;  %v6886_v41 = vld [vmem:[#allocation40_spill] sm:$0xff]  ;;  %v6888_v50 = vld [vmem:[#allocation29_spill] sm:$0xff] }
 0x278   : > { %v2849_v15 = vrot.slane %v2799_v11, 1  ;;  %v2924_v30 = vmul.f32 %v5185_v47, %v6879_v59  ;;  %v3419_v0 = vadd.f32 %v6105_v26, %v3397_v43  ;;  %v3420_v13 = vadd.f32 %v6105_v26, %v3398_v40 }
 0x279   : > { %v2653_v17 = vadd.f32 %v2637_v55, %v2617_v9  ;;  %v2654_v20 = vadd.f32 %v2638_v21, %v2618_v48  ;;  %v2850_v6 = vrot.slane %v2800_v51, 1  ;;  %v2973_v37 = vrot.slane %v2923_v3, 1  ;;  %v6893_v9 = vld [vmem:[#allocation46_spill] sm:$0xff] }
 0x27a   : > { %v2974_v10 = vrot.slane %v2924_v30, 1  ;;  %v6887_v24 = vrot.slane %v6886_v41, 2  ;;  %v6889_v5 = vrot.slane %v6888_v50, 2  ;;  %v3435_v1 = vmax.f32 %v3419_v0, 0.0 }
 0x27b   : > { %v3436_v57 = vmax.f32 %v3420_v13, 0.0  ;;  %v2778_v27 = vadd.f32 %v2727_v25, %v2653_v17  ;;  %v2779_v23 = vadd.f32 %v6890_v28, %v2654_v20  ;;  %v2851_v43 = vsel %vm2719_vm2, %v2849_v15, %v2850_v6  ;;  %v6895_v13 = vld [vmem:[#allocation37_spill] sm:$0xff] }
 0x27c   : > { %v3100_v11 = vsel %vm3092_vm3, %v6889_v5, %v6887_v24  ;;  %v6892_v40 = vrot.slane %v6891_v12, 1  ;;  %v2975_v21 = vsel %vm2719_vm2, %v2973_v37, %v2974_v10  ;;  %v6894_v48 = vrot.slane %v6893_v9, 1  ;;  %v6899_v9 = vld [vmem:[#allocation35_spill] sm:$0xff] }
 0x27d   : > { %v3451_v3 = vmin.f32 %v3435_v1, 6.0  ;;  %v3452_v30 = vmin.f32 %v3436_v57, 6.0  ;;  %v2902_v24 = vadd.f32 %v2851_v43, %v2778_v27  ;;  %v6896_v25 = vrot.slane %v6895_v13, 2 }
 0x27e   : > { %v2853_v55 = vsel %vm2719_vm2, %v2850_v6, %v6892_v40  ;;  %v2977_v51 = vsel %vm2719_vm2, %v2974_v10, %v6894_v48  ;;  %v6897_v28 = vrot.slane %v6886_v41, 2  ;;  %v3172_v12 = vmul.f32 %v5174_v39, %v5531_v14  ;;  %v6898_v41 = vld [vmem:[#allocation43_spill] sm:$0xff] }
 0x27f   : > { %v2903_v0 = vadd.f32 %v2853_v55, %v2779_v23  ;;  %v3173_v17 = vmul.f32 %v5174_v39, %v5562_v46  ;;  %v3296_v20 = vmul.f32 %v5199_v52, %v5527_v63  ;;  %v3467_v6 = vpack.c.bf16 %v3452_v30, %v3451_v3 }
 0x280   : > { %v3102_v15 = vsel %vm3092_vm3, %v6897_v28, %v6896_v25  ;;  %v3026_v37 = vadd.f32 %v2975_v21, %v2902_v24  ;;  %v3297_v23 = vmul.f32 %v5199_v52, %v6879_v59  ;;  %v3222_v27 = vrot.slane %v3172_v12, 2  ;;  %v6901_v12 = vld [vmem:[#allocation48_spill] sm:$0xff] }
 0x281   : > { %v3027_v57 = vadd.f32 %v2977_v51, %v2903_v0  ;;  %v3223_v10 = vrot.slane %v3173_v17, 2  ;;  %v3298_v50 = vmul.f32 %v5199_v52, %v6898_v41  ;;  %v3346_v5 = vrot.slane %v3296_v20, 2  ;;  %4029 = vmatprep.mubr.msk.bf16.mxu1 %vm3530_vm7, %v3467_v6 }
 0x282   : > { %v3151_v1 = vadd.f32 %v3100_v11, %v3026_v37  ;;  %v3347_v40 = vrot.slane %v3297_v23, 2  ;;  %v2567_v55 = vmul.f32 %v5166_v33, %v5531_v14  ;;  %v6900_v48 = vrot.slane %v6899_v9, 2 }
 0x283   : > { %v3152_v43 = vadd.f32 %v3102_v15, %v3027_v57  ;;  %v3224_v21 = vsel %vm3092_vm3, %v3222_v27, %v3223_v10  ;;  %v3349_v3 = vrot.slane %v3298_v50, 2  ;;  %v2568_v30 = vmul.f32 %v5166_v33, %v5562_v46 }
 0x284   : > { %v3226_v51 = vsel %vm3092_vm3, %v3223_v10, %v6900_v48  ;;  %v3275_v24 = vadd.f32 %v3224_v21, %v3151_v1  ;;  %v3348_v13 = vsel %vm3092_vm3, %v3346_v5, %v3347_v40  ;;  %v2603_v11 = vmul.f32 %v5168_v34, %v5527_v63 }
 0x285   : > { %v3276_v0 = vadd.f32 %v3226_v51, %v3152_v43  ;;  %v3350_v25 = vsel %vm3092_vm3, %v3347_v40, %v3349_v3  ;;  %v2604_v28 = vmul.f32 %v5168_v34, %v6879_v59  ;;  %v2639_v15 = vmul.f32 %v5208_v60, %v5669_v53 }
 0x286   : > { %v2640_v17 = vmul.f32 %v5208_v60, %v6901_v12  ;;  %v3399_v20 = vadd.f32 %v3348_v13, %v3275_v24  ;;  %v2619_v37 = vadd.f32 %v2603_v11, %v2567_v55  ;;  %v2677_v57 = vmul.f32 %v5161_v29, %v5531_v14  ;;  %v6902_v13 = vld [vmem:[#allocation32_spill] sm:$0xff] }
 0x287   : > { %v3400_v6 = vadd.f32 %v3350_v25, %v3276_v0  ;;  %v2620_v23 = vadd.f32 %v2604_v28, %v2568_v30  ;;  %v2678_v27 = vmul.f32 %v5161_v29, %v5562_v46  ;;  %v2802_v10 = vmul.f32 %v5172_v38, %v5527_v63 }
 0x288   : > { %v2803_v50 = vmul.f32 %v5172_v38, %v6879_v59  ;;  %v3421_v5 = vadd.f32 %v6105_v26, %v3399_v20  ;;  %v2655_v43 = vadd.f32 %v2639_v15, %v2619_v37  ;;  %v2730_v40 = vrot.slane %v2677_v57, 1  ;;  %v6904_v15 = vld [vmem:[#allocation45_spill] sm:$0xff] }
 0x289   : > { %v3422_v1 = vadd.f32 %v6105_v26, %v3400_v6  ;;  %v2656_v55 = vadd.f32 %v2640_v17, %v2620_v23  ;;  %v2731_v21 = vrot.slane %v2678_v27, 1  ;;  %v2854_v9 = vrot.slane %v2802_v10, 1 }
 0x28a   : > { %v2855_v48 = vrot.slane %v2803_v50, 1  ;;  %v3437_v51 = vmax.f32 %v3421_v5, 0.0  ;;  %v2926_v30 = vmul.f32 %v5185_v47, %v5669_v53  ;;  %v2927_v24 = vmul.f32 %v5185_v47, %v6901_v12 }
 0x28b   : > { %v3438_v3 = vmax.f32 %v3422_v1, 0.0  ;;  %v2732_v0 = vsel %vm2719_vm2, %v2730_v40, %v2731_v21  ;;  %v6903_v11 = vrot.slane %v6902_v13, 1  ;;  %v6905_v17 = vrot.slane %v6904_v15, 1  ;;  %v6907_v13 = vld [vmem:[#allocation34_spill] sm:$0xff] }
 0x28c   : > { %v2856_v28 = vsel %vm2719_vm2, %v2854_v9, %v2855_v48  ;;  %v3453_v6 = vmin.f32 %v3437_v51, 6.0  ;;  %v2780_v57 = vadd.f32 %v2732_v0, %v2655_v43  ;;  %v2978_v27 = vrot.slane %v2926_v30, 1 }
 0x28d   : > { %v2734_v25 = vsel %vm2719_vm2, %v2731_v21, %v6903_v11  ;;  %v2858_v20 = vsel %vm2719_vm2, %v2855_v48, %v6905_v17  ;;  %v3454_v37 = vmin.f32 %v3438_v3, 6.0  ;;  %v2979_v10 = vrot.slane %v2927_v24, 1 }
 0x28e   : > { %v2781_v23 = vadd.f32 %v2734_v25, %v2656_v55  ;;  %v3050_v50 = vmul.f32 %v5164_v31, %v5531_v14  ;;  %v3051_v5 = vmul.f32 %v5164_v31, %v5562_v46  ;;  %v2904_v40 = vadd.f32 %v2856_v28, %v2780_v57 }
 0x28f   : > { %v3468_v1 = vpack.c.bf16 %v3454_v37, %v3453_v6  ;;  %v3175_v9 = vmul.f32 %v5174_v39, %v5527_v63  ;;  %v2980_v48 = vsel %vm2719_vm2, %v2978_v27, %v2979_v10  ;;  %v6906_v51 = vrot.slane %v5590_v8, 1 }
 0x290   : > { %v2905_v21 = vadd.f32 %v2858_v20, %v2781_v23  ;;  %v3103_v55 = vrot.slane %v3050_v50, 2  ;;  %v3104_v3 = vrot.slane %v3051_v5, 2  ;;  %v3028_v14 = vadd.f32 %v2980_v48, %v2904_v40 }
 0x291   : > { %v2982_v43 = vsel %vm2719_vm2, %v2979_v10, %v6906_v51  ;;  %4030 = vmatmul.mubr.msk.bf16.vlgmr.msra.gmra.mrb[0].mxu1 %vm3530_vm7, %v3468_v1  ;;  %v3176_v46 = vmul.f32 %v5174_v39, %v6879_v59  ;;  %v3177_v24 = vmul.f32 %v5174_v39, %v6898_v41  ;;  %v6908_v11 = vrot.slane %v6907_v13, 2 }
 0x292   : > { %v3029_v30 = vadd.f32 %v2982_v43, %v2905_v21  ;;  %v3105_v0 = vsel %vm3092_vm3, %v3103_v55, %v3104_v3  ;;  %v3227_v25 = vrot.slane %v3175_v9, 2  ;;  %v3299_v28 = vmul.f32 %v5199_v52, %v5669_v53 }
 0x293   : > { %v3107_v8 = vsel %vm3092_vm3, %v3104_v3, %v6908_v11  ;;  %v3153_v15 = vadd.f32 %v3105_v0, %v3028_v14  ;;  %v3228_v20 = vrot.slane %v3176_v46, 2  ;;  %v3230_v6 = vrot.slane %v3177_v24, 2  ;;  %v6909_v14 = vld [vmem:[#allocation54_spill] sm:$0xff] }
 0x294   : > { %v3154_v17 = vadd.f32 %v3107_v8, %v3029_v30  ;;  %v3300_v37 = vmul.f32 %v5199_v52, %v6901_v12  ;;  %v3351_v57 = vrot.slane %v3299_v28, 2  ;;  %v2569_v41 = vmul.f32 %v5166_v33, %v5527_v63 }
 0x295   : > { %v2570_v23 = vmul.f32 %v5166_v33, %v6879_v59  ;;  %v3229_v27 = vsel %vm3092_vm3, %v3227_v25, %v3228_v20  ;;  %v3231_v10 = vsel %vm3092_vm3, %v3228_v20, %v3230_v6  ;;  %v2605_v50 = vmul.f32 %v5168_v34, %v5669_v53 }
 0x296   : > { %v2606_v5 = vmul.f32 %v5168_v34, %v6901_v12  ;;  %v3277_v1 = vadd.f32 %v3229_v27, %v3153_v15  ;;  %v3278_v40 = vadd.f32 %v3231_v10, %v3154_v17  ;;  %v3352_v21 = vrot.slane %v3300_v37, 2  ;;  %v6911_v27 = vld [vmem:[#allocation44_spill] sm:$0xff] }
 0x297   : > { %v2641_v9 = vmul.f32 %v5208_v60, %v5709_v22  ;;  %v2621_v48 = vadd.f32 %v2605_v50, %v2569_v41  ;;  %v2642_v43 = vmul.f32 %v5208_v60, %v5769_v61  ;;  %v2680_v55 = vmul.f32 %v5161_v29, %v5527_v63 }
 0x298   : > { %v2622_v51 = vadd.f32 %v2606_v5, %v2570_v23  ;;  %v3353_v3 = vsel %vm3092_vm3, %v3351_v57, %v3352_v21  ;;  %v6910_v30 = vrot.slane %v6909_v14, 2  ;;  %v2681_v24 = vmul.f32 %v5161_v29, %v6879_v59 }
 0x299   : > { %v2805_v0 = vmul.f32 %v5172_v38, %v5669_v53  ;;  %v3401_v13 = vadd.f32 %v3353_v3, %v3277_v1  ;;  %v2657_v8 = vadd.f32 %v2641_v9, %v2621_v48  ;;  %v2735_v28 = vrot.slane %v2680_v55, 1 }
 0x29a   : > { %v3355_v46 = vsel %vm3092_vm3, %v3352_v21, %v6910_v30  ;;  %v2658_v25 = vadd.f32 %v2642_v43, %v2622_v51  ;;  %v2736_v15 = vrot.slane %v2681_v24, 1  ;;  %v2806_v17 = vmul.f32 %v5172_v38, %v6901_v12  ;;  %v6913_v43 = vld [vmem:[#allocation51_spill] sm:$0xff] }
 0x29b   : > { %v3402_v11 = vadd.f32 %v3355_v46, %v3278_v40  ;;  %v2859_v20 = vrot.slane %v2805_v0, 1  ;;  %v3423_v6 = vadd.f32 %v6105_v26, %v3401_v13  ;;  %v2929_v57 = vmul.f32 %v5185_v47, %v5709_v22 }
 0x29c   : > { %v2930_v41 = vmul.f32 %v5185_v47, %v5769_v61  ;;  %v2737_v23 = vsel %vm2719_vm2, %v2735_v28, %v2736_v15  ;;  %v6912_v10 = vrot.slane %v6911_v27, 1  ;;  %v2860_v5 = vrot.slane %v2806_v17, 1 }
 0x29d   : > { %v3424_v37 = vadd.f32 %v6105_v26, %v3402_v11  ;;  %v3053_v1 = vmul.f32 %v5164_v31, %v5527_v63  ;;  %v3439_v40 = vmax.f32 %v3423_v6, 0.0  ;;  %v2782_v9 = vadd.f32 %v2737_v23, %v2657_v8 }
 0x29e   : > { %v2739_v50 = vsel %vm2719_vm2, %v2736_v15, %v6912_v10  ;;  %v2861_v51 = vsel %vm2719_vm2, %v2859_v20, %v2860_v5  ;;  %v6914_v55 = vrot.slane %v6913_v43, 1  ;;  %v2983_v14 = vrot.slane %v2929_v57, 1 }
 0x29f   : > { %v3440_v21 = vmax.f32 %v3424_v37, 0.0  ;;  %v2783_v48 = vadd.f32 %v2739_v50, %v2658_v25  ;;  %v2984_v30 = vrot.slane %v2930_v41, 1  ;;  %v3455_v46 = vmin.f32 %v3439_v40, 6.0 }
 0x2a0   : > { %v2863_v3 = vsel %vm2719_vm2, %v2860_v5, %v6914_v55  ;;  %v2906_v0 = vadd.f32 %v2861_v51, %v2782_v9  ;;  %v6915_v63 = vrot.slane %v5748_v35, 1  ;;  %v3054_v8 = vmul.f32 %v5164_v31, %v6879_v59  ;;  %v6916_v5 = vld [vmem:[#allocation47_spill] sm:$0xff] }
 0x2a1   : > { %v3456_v24 = vmin.f32 %v3440_v21, 6.0  ;;  %v2907_v13 = vadd.f32 %v2863_v3, %v2783_v48  ;;  %v2985_v11 = vsel %vm2719_vm2, %v2983_v14, %v2984_v30  ;;  %v3108_v25 = vrot.slane %v3053_v1, 2  ;;  %v6918_v3 = vld [vmem:[#allocation53_spill] sm:$0xff] }
 0x2a2   : > { %v2987_v28 = vsel %vm2719_vm2, %v2984_v30, %v6915_v63  ;;  %v3030_v17 = vadd.f32 %v2985_v11, %v2906_v0  ;;  %v3178_v6 = vmul.f32 %v5174_v39, %v5669_v53  ;;  %v3109_v37 = vrot.slane %v3054_v8, 2 }
 0x2a3   : > { %v3469_v15 = vpack.c.bf16 %v3456_v24, %v3455_v46  ;;  %v3031_v20 = vadd.f32 %v2987_v28, %v2907_v13  ;;  %v3179_v57 = vmul.f32 %v5174_v39, %v6901_v12  ;;  %v3302_v41 = vmul.f32 %v5199_v52, %v5709_v22 }
 0x2a4   : > { %v3303_v35 = vmul.f32 %v5199_v52, %v5769_v61  ;;  %v3232_v59 = vrot.slane %v3178_v6, 2  ;;  %v3304_v23 = vmul.f32 %v5199_v52, %v5730_v44  ;;  %v2571_v27 = vmul.f32 %v5166_v33, %v5669_v53 }
 0x2a5   : > { %4033 = vmatprep.mubr.msk.bf16.mxu1 %vm3530_vm7, %v3469_v15  ;;  %v2572_v10 = vmul.f32 %v5166_v33, %v6901_v12  ;;  %v3110_v50 = vsel %vm3092_vm3, %v3108_v25, %v3109_v37  ;;  %v6917_v1 = vrot.slane %v6916_v5, 2  ;;  %v3233_v21 = vrot.slane %v3179_v57, 2  ;;  %v6920_v5 = vld [vmem:[#allocation55_spill] sm:$0xff] }
 0x2a6   : > { %v3356_v9 = vrot.slane %v3302_v41, 2  ;;  %v3155_v48 = vadd.f32 %v3110_v50, %v3030_v17  ;;  %v3357_v43 = vrot.slane %v3303_v35, 2  ;;  %v3359_v55 = vrot.slane %v3304_v23, 2 }
 0x2a7   : > { %v3112_v40 = vsel %vm3092_vm3, %v3109_v37, %v6917_v1  ;;  %v3234_v44 = vsel %vm3092_vm3, %v3232_v59, %v3233_v21  ;;  %v6919_v14 = vrot.slane %v6918_v3, 2  ;;  %v2607_v46 = vmul.f32 %v5168_v34, %v5709_v22 }
 0x2a8   : > { %v3156_v51 = vadd.f32 %v3112_v40, %v3031_v20  ;;  %v2608_v24 = vmul.f32 %v5168_v34, %v5769_v61  ;;  %v3279_v0 = vadd.f32 %v3234_v44, %v3155_v48  ;;  %v3358_v11 = vsel %vm3092_vm3, %v3356_v9, %v3357_v43 }
 0x2a9   : > { %v3236_v30 = vsel %vm3092_vm3, %v3233_v21, %v6919_v14  ;;  %v3360_v63 = vsel %vm3092_vm3, %v3357_v43, %v3359_v55  ;;  %v2623_v28 = vadd.f32 %v2607_v46, %v2571_v27  ;;  %v2643_v25 = vmul.f32 %v5208_v60, %v5834_v62  ;;  %v6921_v43 = vld [vmem:[#allocation50_spill] sm:$0xff] }
 0x2aa   : > { %v3280_v13 = vadd.f32 %v3236_v30, %v3156_v51  ;;  %v2624_v8 = vadd.f32 %v2608_v24, %v2572_v10  ;;  %v2644_v15 = vmul.f32 %v5208_v60, %v5726_v45  ;;  %v3403_v17 = vadd.f32 %v3358_v11, %v3279_v0  ;;  %v6923_v46 = vld [vmem:[#allocation62_spill] sm:$0xff] }
 0x2ab   : > { %v2683_v6 = vmul.f32 %v5161_v29, %v5669_v53  ;;  %v2808_v37 = vmul.f32 %v5172_v38, %v5709_v22  ;;  %v2659_v57 = vadd.f32 %v2643_v25, %v2623_v28  ;;  %v2809_v35 = vmul.f32 %v5172_v38, %v5769_v61 }
 0x2ac   : > { %v3404_v20 = vadd.f32 %v3360_v63, %v3280_v13  ;;  %v2660_v41 = vadd.f32 %v2644_v15, %v2624_v8  ;;  %v2932_v59 = vmul.f32 %v5185_v47, %v5834_v62  ;;  %v3425_v23 = vadd.f32 %v6105_v26, %v3403_v17  ;;  %v6925_v17 = vld [vmem:[#allocation58_spill] sm:$0xff] }
 0x2ad   : > { %v2740_v10 = vrot.slane %v2683_v6, 1  ;;  %v2864_v50 = vrot.slane %v2808_v37, 1  ;;  %v2865_v40 = vrot.slane %v2809_v35, 1  ;;  %v2933_v21 = vmul.f32 %v5185_v47, %v5726_v45 }
 0x2ae   : > { %v3426_v27 = vadd.f32 %v6105_v26, %v3404_v20  ;;  %v2785_v1 = vadd.f32 %v6920_v5, %v2660_v41  ;;  %v2988_v9 = vrot.slane %v2932_v59, 1  ;;  %v3441_v48 = vmax.f32 %v3425_v23, 0.0 }
 0x2af   : > { %v6922_v55 = vrot.slane %v6921_v43, 1  ;;  %v3056_v3 = vmul.f32 %v5164_v31, %v5669_v53  ;;  %v2866_v30 = vsel %vm2719_vm2, %v2864_v50, %v2865_v40  ;;  %v6924_v24 = vrot.slane %v6923_v46, 1  ;;  %v6927_v50 = vld [vmem:[#allocation52_spill] sm:$0xff] }
 0x2b0   : > { %v3442_v51 = vmax.f32 %v3426_v27, 0.0  ;;  %v2989_v13 = vrot.slane %v2933_v21, 1  ;;  %v3457_v11 = vmin.f32 %v3441_v48, 6.0  ;;  %v3057_v8 = vmul.f32 %v5164_v31, %v6901_v12  ;;  %v6929_v21 = vld [vmem:[#allocation56_spill] sm:$0xff] }
 0x2b1   : > { %v2742_v44 = vsel %vm2719_vm2, %v2740_v10, %v6922_v55  ;;  %v2868_v0 = vsel %vm2719_vm2, %v2865_v40, %v6924_v24  ;;  %v6926_v20 = vrot.slane %v6925_v17, 1  ;;  %v3113_v6 = vrot.slane %v3056_v3, 2  ;;  %v6930_v24 = vld [vmem:[#allocation64_spill] sm:$0xff] }
 0x2b2   : > { %v2784_v14 = vadd.f32 %v2742_v44, %v2659_v57  ;;  %v3458_v63 = vmin.f32 %v3442_v51, 6.0  ;;  %v2909_v28 = vadd.f32 %v2868_v0, %v2785_v1  ;;  %v2990_v15 = vsel %vm2719_vm2, %v2988_v9, %v2989_v13 }
 0x2b3   : > { %v2992_v53 = vsel %vm2719_vm2, %v2989_v13, %v6926_v20  ;;  %v3114_v41 = vrot.slane %v3057_v8, 2  ;;  %v3181_v35 = vmul.f32 %v5174_v39, %v5709_v22  ;;  %v3182_v23 = vmul.f32 %v5174_v39, %v5769_v61 }
 0x2b4   : > { %v2908_v25 = vadd.f32 %v2866_v30, %v2784_v14  ;;  %v3470_v37 = vpack.c.bf16 %v3458_v63, %v3457_v11  ;;  %v3033_v57 = vadd.f32 %v2992_v53, %v2909_v28  ;;  %v3305_v12 = vmul.f32 %v5199_v52, %v5834_v62 }
 0x2b5   : > { %v3306_v27 = vmul.f32 %v5199_v52, %v5726_v45  ;;  %v3115_v10 = vsel %vm3092_vm3, %v3113_v6, %v3114_v41  ;;  %v6928_v5 = vrot.slane %v6927_v50, 2  ;;  %v3237_v40 = vrot.slane %v3181_v35, 2 }
 0x2b6   : > { %v3032_v59 = vadd.f32 %v2990_v15, %v2908_v25  ;;  %4034 = vmatmul.mubr.msk.bf16.gmra.mrb[4].mxu1 %vm3530_vm7, %v3470_v37  ;;  %v3307_v9 = vmul.f32 %v5199_v52, %v6929_v21  ;;  %v3238_v43 = vrot.slane %v3182_v23, 2  ;;  %v3361_v55 = vrot.slane %v3305_v12, 2 }
 0x2b7   : > { %v3117_v1 = vsel %vm3092_vm3, %v3114_v41, %v6928_v5  ;;  %v3362_v44 = vrot.slane %v3306_v27, 2  ;;  %v2573_v14 = vmul.f32 %v5166_v33, %v5709_v22  ;;  %v2574_v30 = vmul.f32 %v5166_v33, %v5769_v61 }
 0x2b8   : > { %v3157_v48 = vadd.f32 %v3115_v10, %v3032_v59  ;;  %v3158_v51 = vadd.f32 %v3117_v1, %v3033_v57  ;;  %v3364_v3 = vrot.slane %v3307_v9, 2  ;;  %v3239_v46 = vsel %vm3092_vm3, %v3237_v40, %v3238_v43 }
 0x2b9   : > { %v6931_v0 = vrot.slane %v6930_v24, 2  ;;  %v2609_v11 = vmul.f32 %v5168_v34, %v5834_v62  ;;  %v2610_v63 = vmul.f32 %v5168_v34, %v5726_v45  ;;  %v3363_v25 = vsel %vm3092_vm3, %v3361_v55, %v3362_v44  ;;  %v6932_v55 = vld [vmem:[#allocation61_spill] sm:$0xff] }
 0x2ba   : > { %v3281_v28 = vadd.f32 %v3239_v46, %v3157_v48  ;;  %v3365_v15 = vsel %vm3092_vm3, %v3362_v44, %v3364_v3  ;;  %v2645_v53 = vmul.f32 %v5208_v60, %v5890_v49  ;;  %v2646_v6 = vmul.f32 %v5208_v60, %v5894_v7  ;;  %v6934_v24 = vld [vmem:[#allocation57_spill] sm:$0xff] }
 0x2bb   : > { %v3241_v13 = vsel %vm3092_vm3, %v3238_v43, %v6931_v0  ;;  %v2625_v17 = vadd.f32 %v2609_v11, %v2573_v14  ;;  %v2626_v20 = vadd.f32 %v2610_v63, %v2574_v30  ;;  %v2686_v41 = vmul.f32 %v5161_v29, %v5709_v22 }
 0x2bc   : > { %v3282_v8 = vadd.f32 %v3241_v13, %v3158_v51  ;;  %v3405_v37 = vadd.f32 %v3363_v25, %v3281_v28  ;;  %v2687_v35 = vmul.f32 %v5161_v29, %v5769_v61  ;;  %v2811_v12 = vmul.f32 %v5172_v38, %v5834_v62 }
 0x2bd   : > { %v2661_v59 = vadd.f32 %v2645_v53, %v2625_v17  ;;  %v2662_v23 = vadd.f32 %v2646_v6, %v2626_v20  ;;  %v2812_v27 = vmul.f32 %v5172_v38, %v5726_v45  ;;  %v2745_v50 = vrot.slane %v2686_v41, 1  ;;  %v6936_v6 = vld [vmem:[#allocation67_spill] sm:$0xff] }
 0x2be   : > { %v3406_v57 = vadd.f32 %v3365_v15, %v3282_v8  ;;  %v3427_v10 = vadd.f32 %v6105_v26, %v3405_v37  ;;  %v2746_v5 = vrot.slane %v2687_v35, 1  ;;  %v2869_v1 = vrot.slane %v2811_v12, 1 }
 0x2bf   : > { %v2870_v40 = vrot.slane %v2812_v27, 1  ;;  %v2935_v21 = vmul.f32 %v5185_v47, %v5890_v49  ;;  %v2936_v9 = vmul.f32 %v5185_v47, %v5894_v7  ;;  %v6933_v44 = vrot.slane %v6932_v55, 1 }
 0x2c0   : > { %v3428_v60 = vadd.f32 %v6105_v26, %v3406_v57  ;;  %v3443_v48 = vmax.f32 %v3427_v10, 0.0  ;;  %v2747_v43 = vsel %vm2719_vm2, %v2745_v50, %v2746_v5  ;;  %v6935_v0 = vrot.slane %v6934_v24, 1  ;;  %v6938_v50 = vld [vmem:[#allocation63_spill] sm:$0xff]  ;;  %v6941_v24 = vld [vmem:[#allocation60_spill] sm:$0xff] }
 0x2c1   : > { %v2749_v3 = vsel %vm2719_vm2, %v2746_v5, %v6933_v44  ;;  %v2786_v14 = vadd.f32 %v2747_v43, %v2661_v59  ;;  %v2871_v46 = vsel %vm2719_vm2, %v2869_v1, %v2870_v40  ;;  %v2993_v28 = vrot.slane %v2935_v21, 1 }
 0x2c2   : > { %v3444_v51 = vmax.f32 %v3428_v60, 0.0  ;;  %v2787_v30 = vadd.f32 %v2749_v3, %v2662_v23  ;;  %v2873_v13 = vsel %vm2719_vm2, %v2870_v40, %v6935_v0  ;;  %v3459_v11 = vmin.f32 %v3443_v48, 6.0  ;;  %v6940_v40 = vld [vmem:[#allocation65_spill] sm:$0xff] }
 0x2c3   : > { %v2994_v47 = vrot.slane %v2936_v9, 1  ;;  %v2910_v8 = vadd.f32 %v2871_v46, %v2786_v14  ;;  %v3059_v15 = vmul.f32 %v5164_v31, %v5709_v22  ;;  %v3060_v17 = vmul.f32 %v5164_v31, %v5769_v61 }
 0x2c4   : > { %v3460_v63 = vmin.f32 %v3444_v51, 6.0  ;;  %v2911_v25 = vadd.f32 %v2873_v13, %v2787_v30  ;;  %v6937_v37 = vrot.slane %v6936_v6, 1  ;;  %v3184_v41 = vmul.f32 %v5174_v39, %v5834_v62  ;;  %v6945_v6 = vld [vmem:[#allocation72_spill] sm:$0xff] }
 0x2c5   : > { %v2995_v53 = vsel %vm2719_vm2, %v2993_v28, %v2994_v47  ;;  %v3118_v23 = vrot.slane %v3059_v15, 2  ;;  %v3119_v12 = vrot.slane %v3060_v17, 2  ;;  %v3185_v22 = vmul.f32 %v5174_v39, %v5726_v45 }
 0x2c6   : > { %v3471_v20 = vpack.c.bf16 %v3460_v63, %v3459_v11  ;;  %v2997_v57 = vsel %vm2719_vm2, %v2994_v47, %v6937_v37  ;;  %v3034_v35 = vadd.f32 %v2995_v53, %v2910_v8  ;;  %v3242_v61 = vrot.slane %v3184_v41, 2 }
 0x2c7   : > { %v3035_v59 = vadd.f32 %v2997_v57, %v2911_v25  ;;  %v3308_v27 = vmul.f32 %v5199_v52, %v5890_v49  ;;  %v3309_v10 = vmul.f32 %v5199_v52, %v5894_v7  ;;  %v3120_v60 = vsel %vm3092_vm3, %v3118_v23, %v3119_v12  ;;  %v6946_v57 = vld [vmem:[#allocation71_spill] sm:$0xff] }
 0x2c8   : > { %4037 = vmatprep.mubr.msk.bf16.mxu1 %vm3530_vm7, %v3471_v20  ;;  %v6939_v5 = vrot.slane %v6938_v50, 2  ;;  %v3310_v21 = vmul.f32 %v5199_v52, %v6940_v40  ;;  %v2575_v9 = vmul.f32 %v5166_v33, %v5834_v62  ;;  %v3159_v48 = vadd.f32 %v3120_v60, %v3034_v35 }
 0x2c9   : > { %v3243_v43 = vrot.slane %v3185_v22, 2  ;;  %v3366_v55 = vrot.slane %v3308_v27, 2  ;;  %v3367_v44 = vrot.slane %v3309_v10, 2  ;;  %v2611_v14 = vmul.f32 %v5168_v34, %v5890_v49 }
 0x2ca   : > { %v3122_v1 = vsel %vm3092_vm3, %v3119_v12, %v6939_v5  ;;  %v3369_v3 = vrot.slane %v3310_v21, 2  ;;  %v2689_v30 = vmul.f32 %v5161_v29, %v5834_v62  ;;  %v6942_v0 = vrot.slane %v6941_v24, 2  ;;  %v6949_v21 = vld [vmem:[#allocation59_spill] sm:$0xff] }
 0x2cb   : > { %v3160_v51 = vadd.f32 %v3122_v1, %v3035_v59  ;;  %v3244_v46 = vsel %vm3092_vm3, %v3242_v61, %v3243_v43  ;;  %v2814_v33 = vmul.f32 %v5172_v38, %v5890_v49  ;;  %v6943_v11 = vrot.slane %v5937_v32, 1 }
 0x2cc   : > { %v3246_v13 = vsel %vm3092_vm3, %v3243_v43, %v6942_v0  ;;  %v6944_v63 = vrot.slane %v5933_v42, 1  ;;  %v3283_v47 = vadd.f32 %v3244_v46, %v3159_v48  ;;  %v3368_v8 = vsel %vm3092_vm3, %v3366_v55, %v3367_v44 }
 0x2cd   : > { %v3284_v34 = vadd.f32 %v3246_v13, %v3160_v51  ;;  %v3370_v29 = vsel %vm3092_vm3, %v3367_v44, %v3369_v3  ;;  %v2627_v25 = vadd.f32 %v2611_v14, %v2575_v9  ;;  %v2750_v15 = vrot.slane %v2689_v30, 1 }
 0x2ce   : > { %v3000_v28 = vsel %vm2719_vm2, %v6944_v63, %v6943_v11  ;;  %v2874_v17 = vrot.slane %v2814_v33, 1  ;;  %v3062_v20 = vmul.f32 %v5164_v31, %v5834_v62  ;;  %v3407_v53 = vadd.f32 %v3368_v8, %v3283_v47  ;;  %v6952_v33 = vld [vmem:[#allocation73_spill] sm:$0xff] }
 0x2cf   : > { %v3408_v38 = vadd.f32 %v3370_v29, %v3284_v34  ;;  %v3063_v32 = vmul.f32 %v5164_v31, %v5726_v45  ;;  %v3187_v42 = vmul.f32 %v5174_v39, %v5890_v49  ;;  %v2663_v37 = vadd.f32 %v6945_v6, %v2627_v25 }
 0x2d0   : > { %v6947_v41 = vrot.slane %v6946_v57, 1  ;;  %v6948_v59 = vrot.slane %v5923_v54, 1  ;;  %v3123_v12 = vrot.slane %v3062_v20, 2  ;;  %v3429_v62 = vadd.f32 %v6105_v26, %v3407_v53 }
 0x2d1   : > { %v3430_v22 = vadd.f32 %v6105_v26, %v3408_v38  ;;  %v3124_v61 = vrot.slane %v3063_v32, 2  ;;  %v3188_v45 = vmul.f32 %v5174_v39, %v5894_v7  ;;  %v3189_v10 = vmul.f32 %v5174_v39, %v6940_v40  ;;  %v6951_v40 = vld [vmem:[#allocation70_spill] sm:$0xff] }
 0x2d2   : > { %v2752_v35 = vsel %vm2719_vm2, %v2750_v15, %v6947_v41  ;;  %v2876_v23 = vsel %vm2719_vm2, %v2874_v17, %v6948_v59  ;;  %v3247_v60 = vrot.slane %v3187_v42, 2  ;;  %v3311_v50 = vmul.f32 %v5199_v52, %v5851_v36  ;;  %v6957_v32 = vld [vmem:[#allocation74_spill] sm:$0xff]  ;;  %v6961_v59 = vld [vmem:[#allocation69_spill] sm:$0xff] }
 0x2d3   : > { %v2788_v27 = vadd.f32 %v2752_v35, %v2663_v37  ;;  %v3445_v54 = vmax.f32 %v3429_v62, 0.0  ;;  %v3446_v5 = vmax.f32 %v3430_v22, 0.0  ;;  %v3125_v1 = vsel %vm3092_vm3, %v3123_v12, %v3124_v61  ;;  %v6964_v22 = vld [vmem:[#allocation68_spill] sm:$0xff] }
 0x2d4   : > { %v6950_v9 = vrot.slane %v6949_v21, 2  ;;  %v3248_v55 = vrot.slane %v3188_v45, 2  ;;  %v3250_v44 = vrot.slane %v3189_v10, 2  ;;  %v3312_v30 = vmul.f32 %v5199_v52, %v6951_v40 }
 0x2d5   : > { %v2912_v51 = vadd.f32 %v2876_v23, %v2788_v27  ;;  %v3461_v3 = vmin.f32 %v3445_v54, 6.0  ;;  %v3462_v14 = vmin.f32 %v3446_v5, 6.0  ;;  %v3371_v46 = vrot.slane %v3311_v50, 2 }
 0x2d6   : > { %v3127_v48 = vsel %vm3092_vm3, %v3124_v61, %v6950_v9  ;;  %v3249_v0 = vsel %vm3092_vm3, %v3247_v60, %v3248_v55  ;;  %v3251_v13 = vsel %vm3092_vm3, %v3248_v55, %v3250_v44  ;;  %v2915_v11 = vadd.f32 %v6952_v33, %v6083_v56 }
 0x2d7   : > { %v3162_v43 = vadd.f32 %v3127_v48, %v5984_v58  ;;  %v3036_v24 = vadd.f32 %v3000_v28, %v2912_v51  ;;  %v3472_v63 = vpack.c.bf16 %v3462_v14, %v3461_v3  ;;  %v3372_v34 = vrot.slane %v3312_v30, 2  ;;  %v6953_v58 = vld [vmem:[#allocation66_spill] sm:$0xff] }
 0x2d8   : > { %v6954_v8 = vrot.slane %v6953_v58, 1  ;;  %v6955_v29 = vrot.slane %v6066_v16, 1  ;;  %v3038_v52 = vadd.f32 %v6088_v2, %v6076_v4  ;;  %v3065_v17 = vmul.f32 %v5164_v31, %v5890_v49 }
 0x2d9   : > { %v3286_v47 = vadd.f32 %v3251_v13, %v3162_v43  ;;  %v3161_v15 = vadd.f32 %v3125_v1, %v3036_v24  ;;  %4038 = vmatmul.mubr.msk.bf16.gmra.mrb[8].mxu1 %vm3530_vm7, %v3472_v63  ;;  %v3373_v56 = vsel %vm3092_vm3, %v3371_v46, %v3372_v34  ;;  %v6956_v20 = vrot.slane %v5965_v19, 2  ;;  %v6959_v19 = vld [vmem:[#allocation36_spill] sm:$0xff]  ;;  %v4246_v13 = vld [vmem:[%s5012_s16 + $0x30] sm:$0xff] }
 0x2da   : > { %v3007_v25 = vsel %vm2719_vm2, %v6955_v29, %v6954_v8  ;;  %v3066_v16 = vmul.f32 %v5164_v31, %v5894_v7  ;;  %v3190_v38 = vmul.f32 %v5174_v39, %v5851_v36  ;;  %v3255_v4 = vrot.slane %v6957_v32, 2  ;;  %v6505_v8 = vld [vmem:[#allocation13] ss:$0 sm:$0xff]  ;;  %v4250_v29 = vld [vmem:[%s5012_s16 + $0x40] sm:$0x3] }
 0x2db   : > { %v3039_v28 = vadd.f32 %v3007_v25, %v2915_v11  ;;  %v3375_v53 = vsel %vm3092_vm3, %v3372_v34, %v6956_v20  ;;  %v3285_v2 = vadd.f32 %v3249_v0, %v3161_v15  ;;  %v3191_v49 = vmul.f32 %v5174_v39, %v6951_v40  ;;  %v4247_v11 = vld [vmem:[%s5012_s16 + $0x38] sm:$0xff]  ;;  %v4251_v15 = vld [vmem:[%s5012_s16 + $0x28] sm:$0x3] }
 0x2dc   : > { %v3410_v42 = vadd.f32 %v3375_v53, %v3286_v47  ;;  %v3128_v6 = vrot.slane %v3065_v17, 2  ;;  %v3129_v37 = vrot.slane %v3066_v16, 2  ;;  %v6958_v57 = vrot.slane %v6070_v18, 2  ;;  %v4248_v47 = vld [vmem:[%s5012_s16 + $0x18] sm:$0xff] }
 0x2dd   : > { %v6960_v41 = vrot.slane %v6959_v19, 2  ;;  %v6962_v31 = vrot.slane %v6961_v59, 2  ;;  %v3409_v23 = vadd.f32 %v3373_v56, %v3285_v2  ;;  %v3253_v62 = vrot.slane %v3191_v49, 2  ;;  %v4253_v59 = vld [vmem:[%s5012_s16 + $0x68] sm:$0xff] }
 0x2de   : > { %v6963_v7 = vmov %v6958_v57  ;;  %v3432_v12 = vadd.f32 %v6105_v26, %v3410_v42  ;;  %v3130_v39 = vsel %vm3092_vm3, %v3128_v6, %v3129_v37  ;;  %v6965_v61 = vrot.slane %v6964_v22, 2  ;;  %v4257_v22 = vld [vmem:[%s5012_s16 + $0x58] sm:$0x3] }
 0x2df   : > { %v3378_v35 = vsel %vm3092_vm3, %v6960_v41, %v6958_v57  ;;  %v3380_v36 = vsel %vm3092_vm3, %v6963_v7, %v6962_v31  ;;  %v3252_v27 = vrot.slane %v3190_v38, 2  ;;  %v3431_v10 = vadd.f32 %v6105_v26, %v3409_v23  ;;  %v4252_v41 = vld [vmem:[%s5012_s16 + $0x60] sm:$0xff]  ;;  %v4254_v7 = vld [vmem:[%s5012_s16 + $0x48] sm:$0xff]  ;;  %v4255_v23 = vld [vmem:[%s5012_s16 + $0x50] sm:$0xff] }
 0x2e0   : > { %v3132_v45 = vsel %vm3092_vm3, %v3129_v37, %v6965_v61  ;;  %v3448_v60 = vmax.f32 %v3432_v12, 0.0  ;;  %v3163_v50 = vadd.f32 %v3130_v39, %v3038_v52  ;;  %v3256_v5 = vsel %vm3092_vm3, %v3253_v62, %v3255_v4 }
 0x2e1   : > { %v3164_v54 = vadd.f32 %v3132_v45, %v3039_v28  ;;  %v3254_v18 = vsel %vm3092_vm3, %v3252_v27, %v3253_v62  ;;  %v3447_v1 = vmax.f32 %v3431_v10, 0.0  ;;  %v3657_v33 = vrot.slane %v4246_v13, 1  ;;  %v4256_v62 = vld [vmem:[%s5012_s16 + $0x70] sm:$0x3] }
 0x2e2   : > { %v3464_v21 = vmin.f32 %v3448_v60, 6.0  ;;  %v3287_v9 = vadd.f32 %v3254_v18, %v3163_v50  ;;  %v3658_v63 = vrot.slane %v4247_v11, 1  ;;  %v3652_v34 = vrot.slane %v4248_v47, 1 }
 0x2e3   : > { %v3288_v48 = vadd.f32 %v3256_v5, %v3164_v54  ;;  %v3463_v51 = vmin.f32 %v3447_v1, 6.0  ;;  %v3660_v25 = vrot.slane %v4250_v29, 1  ;;  %v3655_v52 = vrot.slane %v4251_v15, 1 }
 0x2e4   : > { %v3411_v43 = vadd.f32 %v3378_v35, %v3287_v9  ;;  %v3659_v17 = vsel %vm2719_vm2, %v3657_v33, %v3658_v63  ;;  %v3667_v35 = vrot.slane %v4252_v41, 1  ;;  %v3668_v31 = vrot.slane %v4253_v59, 1  ;;  %v4262_v33 = vld [vmem:[%s5012_s16 + $0xa0] sm:$0x3] }
 0x2e5   : > { %v3412_v55 = vadd.f32 %v3380_v36, %v3288_v48  ;;  %v3473_v44 = vpack.c.bf16 %v3464_v21, %v3463_v51  ;;  %v3661_v32 = vsel %vm2719_vm2, %v3658_v63, %v3660_v25  ;;  %v3662_v36 = vrot.slane %v4254_v7, 1  ;;  %v4263_v63 = vld [vmem:[%s5012_s16 + $0x88] sm:$0x3] }
 0x2e6   : > { %v3433_v3 = vadd.f32 %v6105_v26, %v3411_v43  ;;  %v3663_v12 = vrot.slane %v4255_v23, 1  ;;  %v3670_v39 = vrot.slane %v4256_v62, 1  ;;  %v3665_v61 = vrot.slane %v4257_v22, 1 }
 0x2e7   : > { %v3434_v14 = vadd.f32 %v6105_v26, %v3412_v55  ;;  %4041 = vmatprep.mubr.msk.bf16.mxu1 %vm3530_vm7, %v3473_v44  ;;  %v4249_v26 = vld [vmem:[%s5012_s16 + $0x20] sm:$0xff]  ;;  %v3669_v27 = vsel %vm2719_vm2, %v3667_v35, %v3668_v31  ;;  %v3680_v11 = vrot.slane %v4262_v33, 1  ;;  %v3675_v47 = vrot.slane %v4263_v63, 1  ;;  %v4268_v35 = vld [vmem:[%s5012_s16 + $0xd0] sm:$0x3] }
 0x2e8   : > { %v3449_v40 = vmax.f32 %v3433_v3, 0.0  ;;  %v3653_v58 = vrot.slane %v4249_v26, 1  ;;  %v3664_v50 = vsel %vm2719_vm2, %v3662_v36, %v3663_v12  ;;  %v3671_v5 = vsel %vm2719_vm2, %v3668_v31, %v3670_v39  ;;  %v4258_v3 = vld [vmem:[%s5012_s16 + $0x90] sm:$0xff]  ;;  %v4269_v31 = vld [vmem:[%s5012_s16 + $0xb8] sm:$0x3] }
 0x2e9   : > { %v3450_v30 = vmax.f32 %v3434_v14, 0.0  ;;  %v3666_v48 = vsel %vm2719_vm2, %v3663_v12, %v3665_v61  ;;  %v3677_v14 = vrot.slane %v4258_v3, 1  ;;  %v3690_v59 = vrot.slane %v4268_v35, 1 }
 0x2ea   : > { %v3465_v46 = vmin.f32 %v3449_v40, 6.0  ;;  %v3654_v53 = vsel %vm2719_vm2, %v3652_v34, %v3653_v58  ;;  %v3656_v49 = vsel %vm2719_vm2, %v3653_v58, %v3655_v52  ;;  %v4259_v40 = vld [vmem:[%s5012_s16 + $0x98] sm:$0xff]  ;;  %v3685_v7 = vrot.slane %v4269_v31, 1 }
 0x2eb   : > { %v3466_v24 = vmin.f32 %v3450_v30, 6.0  ;;  %v3678_v30 = vrot.slane %v4259_v40, 1 }
 0x2ed   : > { %v3474_v0 = vpack.c.bf16 %v3466_v24, %v3465_v46  ;;  %v4260_v46 = vld [vmem:[%s5012_s16 + $0x78] sm:$0xff]  ;;  %v3679_v26 = vsel %vm2719_vm2, %v3677_v14, %v3678_v30 }
 0x2ee   : > { %v3672_v24 = vrot.slane %v4260_v46, 1 }
 0x2ef   : > { %4042 = vmatmul.mubr.msk.bf16.gmra.mrb[12].mxu1 %vm3530_vm7, %v3474_v0  ;;  %v4261_v0 = vld [vmem:[%s5012_s16 + $0x80] sm:$0xff] }
 0x2f0   : > { %v3673_v13 = vrot.slane %v4261_v0, 1 }
 0x2f2   : > { %v3674_v25 = vsel %vm2719_vm2, %v3672_v24, %v3673_v13 }
 0x364   : > { %v4031_v28 = vpop.f32.mrb[0].mxu1 }
 0x365   : > { %v3598_v56 = vadd.f32 %v4031_v28, %v6505_v8  ;;  %v3589_v20 = vpop.f32.mrb[1].mxu1  ;;  %v3681_v28 = vsel %vm2719_vm2, %v3678_v30, %v3680_v11 }
 0x366   : > { %v3590_v16 = vadd.f32 %v6505_v8, %v3589_v20  ;;  %v4032_v38 = vpop.f32.mrb[2].mxu1 }
 0x367   : > { %v3710_v4 = vadd.f32 %v3659_v17, %v3598_v56  ;;  %v3601_v2 = vadd.f32 %v4032_v38, %v6505_v8  ;;  %v3592_v42 = vpop.f32.mrb[3].mxu1 }
 0x368   : > { %v3708_v6 = vadd.f32 %v3654_v53, %v3590_v16  ;;  %v3593_v37 = vadd.f32 %v6505_v8, %v3592_v42  ;;  %v3676_v53 = vsel %vm2719_vm2, %v3673_v13, %v3675_v47 }
 0x369   : > { %3726 = vst.msk [vmem:[%s6519_s7 + $0x10] sm:$0xff] %vm1299_vm0, %v3710_v4  ;;  %v3711_v57 = vadd.f32 %v3661_v32, %v3601_v2  ;;  %v4264_v2 = vld [vmem:[%s5012_s16 + $0xc0] sm:$0xff] }
 0x36a   : > { %3724 = vst.msk [vmem:[%s6519_s7] sm:$0xff] %vm1299_vm0, %v3708_v6  ;;  %v3709_v19 = vadd.f32 %v3656_v49, %v3593_v37  ;;  %v3687_v42 = vrot.slane %v4264_v2, 1  ;;  %v4265_v49 = vld [vmem:[%s5012_s16 + $0xc8] sm:$0xff] }
 0x36b   : > { %3727 = vst.msk [vmem:[%s6519_s7 + $0x18] sm:$0xff] %vm1299_vm0, %v3711_v57  ;;  %v3688_v6 = vrot.slane %v4265_v49, 1  ;;  %v4266_v37 = vld [vmem:[%s5012_s16 + $0xa8] sm:$0xff] }
 0x36c   : > { %3725 = vst.msk [vmem:[%s6519_s7 + $0x8] sm:$0xff] %vm1299_vm0, %v3709_v19  ;;  %v3682_v57 = vrot.slane %v4266_v37, 1  ;;  %v4267_v19 = vld [vmem:[%s5012_s16 + $0xb0] sm:$0xff]  ;;  %s6607_s16 = scalar_lea.sflag [#allocation4], %s389_s15 }
 0x36d   : > { %v3683_v41 = vrot.slane %v4267_v19, 1  ;;  %v3689_v23 = vsel %vm2719_vm2, %v3687_v42, %v3688_v6 }
 0x36f   : > { %v3684_v39 = vsel %vm2719_vm2, %v3682_v57, %v3683_v41 }
 0x389   : > { %v4035_v45 = vpop.f32.mrb[4].mxu1 }
 0x38a   : > { %v3614_v10 = vadd.f32 %v4035_v45, %v6505_v8  ;;  %v3605_v60 = vpop.f32.mrb[5].mxu1  ;;  %v3691_v45 = vsel %vm2719_vm2, %v3688_v6, %v3690_v59 }
 0x38b   : > { %v3606_v54 = vadd.f32 %v6505_v8, %v3605_v60  ;;  %v4036_v18 = vpop.f32.mrb[6].mxu1 }
 0x38c   : > { %v3714_v1 = vadd.f32 %v3669_v27, %v3614_v10  ;;  %v3617_v21 = vadd.f32 %v4036_v18, %v6505_v8  ;;  %v3608_v9 = vpop.f32.mrb[7].mxu1 }
 0x38d   : > { %v3712_v51 = vadd.f32 %v3664_v50, %v3606_v54  ;;  %v3609_v43 = vadd.f32 %v6505_v8, %v3608_v9  ;;  %v3686_v50 = vsel %vm2719_vm2, %v3683_v41, %v3685_v7 }
 0x38e   : > { %3730 = vst.msk [vmem:[%s6519_s7 + $0x30] sm:$0xff] %vm1299_vm0, %v3714_v1  ;;  %v3715_v55 = vadd.f32 %v3671_v5, %v3617_v21 }
 0x38f   : > { %3728 = vst.msk [vmem:[%s6519_s7 + $0x20] sm:$0xff] %vm1299_vm0, %v3712_v51  ;;  %v3713_v44 = vadd.f32 %v3666_v48, %v3609_v43 }
 0x390   : > { %3731 = vst.msk [vmem:[%s6519_s7 + $0x38] sm:$0xff] %vm1299_vm0, %v3715_v55 }
 0x391   : > { %3729 = vst.msk [vmem:[%s6519_s7 + $0x28] sm:$0xff] %vm1299_vm0, %v3713_v44 }
 0x3ac   : > { %v4039_v34 = vpop.f32.mrb[8].mxu1 }
 0x3ad   : > { %v3630_v58 = vadd.f32 %v4039_v34, %v6505_v8  ;;  %v3621_v29 = vpop.f32.mrb[9].mxu1 }
 0x3ae   : > { %v3622_v15 = vadd.f32 %v6505_v8, %v3621_v29  ;;  %v4040_v52 = vpop.f32.mrb[10].mxu1 }
 0x3af   : > { %v3718_v17 = vadd.f32 %v3679_v26, %v3630_v58  ;;  %v3633_v56 = vadd.f32 %v4040_v52, %v6505_v8  ;;  %v3624_v20 = vpop.f32.mrb[11].mxu1 }
 0x3b0   : > { %v3716_v16 = vadd.f32 %v3674_v25, %v3622_v15  ;;  %v3625_v38 = vadd.f32 %v6505_v8, %v3624_v20 }
 0x3b1   : > { %3734 = vst.msk [vmem:[%s6519_s7 + $0x50] sm:$0xff] %vm1299_vm0, %v3718_v17  ;;  %v3719_v32 = vadd.f32 %v3681_v28, %v3633_v56 }
 0x3b2   : > { %3732 = vst.msk [vmem:[%s6519_s7 + $0x40] sm:$0xff] %vm1299_vm0, %v3716_v16  ;;  %v3717_v4 = vadd.f32 %v3676_v53, %v3625_v38 }
 0x3b3   : > { %3735 = vst.msk [vmem:[%s6519_s7 + $0x58] sm:$0xff] %vm1299_vm0, %v3719_v32 }
 0x3b4   : > { %3733 = vst.msk [vmem:[%s6519_s7 + $0x48] sm:$0xff] %vm1299_vm0, %v3717_v4 }
 0x3c2   : > { %v4043_v36 = vpop.f32.mrb[12].mxu1 }
 0x3c3   : > { %v3646_v12 = vadd.f32 %v4043_v36, %v6505_v8  ;;  %v3637_v62 = vpop.f32.mrb[13].mxu1 }
 0x3c4   : > { %v3638_v22 = vadd.f32 %v6505_v8, %v3637_v62  ;;  %v4044_v61 = vpop.f32.mrb[14].mxu1 }
 0x3c5   : > { %v3722_v27 = vadd.f32 %v3689_v23, %v3646_v12  ;;  %v3649_v10 = vadd.f32 %v4044_v61, %v6505_v8  ;;  %v3640_v60 = vpop.f32.mrb[15].mxu1 }
 0x3c6   : > { %v3720_v54 = vadd.f32 %v3684_v39, %v3638_v22  ;;  %v3641_v18 = vadd.f32 %v6505_v8, %v3640_v60 }
 0x3c7   : > { %3738 = vst.msk [vmem:[%s6519_s7 + $0x70] sm:$0xff] %vm1299_vm0, %v3722_v27  ;;  %v3723_v5 = vadd.f32 %v3691_v45, %v3649_v10 }
 0x3c8   : > { %3736 = vst.msk [vmem:[%s6519_s7 + $0x60] sm:$0xff] %vm1299_vm0, %v3720_v54  ;;  %v3721_v1 = vadd.f32 %v3686_v50, %v3641_v18 }
 0x3c9   : > { %3739 = vst.msk [vmem:[%s6519_s7 + $0x78] sm:$0xff] %vm1299_vm0, %v3723_v5 }
 0x3ca   : > { %3737 = vst.msk [vmem:[%s6519_s7 + $0x68] sm:$0xff] %vm1299_vm0, %v3721_v1 }
 0x3cb   : > { %4489 = shalt.err (!%p4486_p1)
}
 0x3cc   : > { %s4490_s15 = scalar_lea.hbm %s6595_s21, 2048  ;;  %s4494_s24 = scalar_lea.hbm %s6967_s2, 8192 }
 0x3cd   : > { %p4491_p7 = scmp.ne.s32.totalorder %s6595_s21, %s4490_s15  ;;  %p4495_p10 = scmp.lt.u32.totalorder %s6595_s21, %s6967_s2 }
 0x3ce   : > { %p4496_p2 = scmp.lt.u32.totalorder %s4494_s24, %s4490_s15  ;;  %p4498_p5 = scmp.lt.u32.totalorder %s4490_s15, %s6595_s21 }
 0x3cf   : > { %p4492_p3 = pnand %p4491_p7, %p6968_p13 }
 0x3d0   : > { %p4497_p8 = por %p4496_p2, %p4495_p10 }
 0x3d1   : > { %p4493_p4 = pneg %p4492_p3 }
 0x3d2   : > { %p4499_p6 = por %p4498_p5, %p4497_p8 }
 0x3d4   : > { %p4500_p9 = pnand %p4499_p6, %p4493_p4 }
 0x3d6   : > { %4503 = shalt.err (!%p4500_p9)
}
 0x3d7   : > { %s4625_s8 = smov 128   ;;  %s4626_s13 = smov 8  }
 0x3d8   : > { %4074 = dma.vmem_to_hbm [thread:$0]  (%p6968_p13), %s6597_s19, 2048, %s6595_s21, %s6607_s16, %s4625_s8, %s4625_s8, %s4626_s13  }
 0x3d9 PF: > { %s6969_s27 = sld [smem:[#allocation20_spill]]  ;;  %p4116_p11 = scmp.ge.s32.totalorder %s4610_s11, 2 }
 0x3da   : > { %p6970_p12 = scmp.ne.s32.totalorder %s6767_s22, 0 }
 0x3dc   : > { %p4100_p0 = pnand %p4116_p11, %p6970_p12 }
 0x3df   : > { %s3772_s3 = sand.u32 1, %s6969_s27  }
 0x3e0   : > { %s3773_s4 = scalar_lea.sflag [#allocation4], %s3772_s3 }
 0x3e1   : > { %4565 = dma.done.wait (!%p4100_p0), %s3773_s4, 2048  }
 0x3e2   : > { %4567 = vsyncadd (!%p4100_p0), %s3773_s4, 4294965248  ;;  %s26_s11 = sadd.s32 1, %s4610_s11   ;;  %s6971_s24 = smov %s4574_s25 }
 0x3e3   : > { %p23_p1 = scmp.ge.s32.totalorder %s26_s11, 6   ;;  %s6972_s25 = smov %s4578_s26 }
 0x3e4   : > { %s6973_s26 = smov %s4940_s14  ;;  %s6974_s27 = smov %s4586_s28 }
 0x3e5   : > { %s6975_s28 = smov %s4590_s29  ;;  %s6976_s29 = smov %s4937_s12 }
 0x3e6   : > { %s6977_s30 = smov %s4602_s9  ;;  %s6978_s8 = smov %s4606_s10 }
 0x3e7   : > { %s6979_s9 = smov %s6982_s18  ;;  %s6980_s10 = smov %s6986_s0 }
 0x3e8   :  { %25 = sbr.rel (!%p23_p1) target bundleno = 19 (0x13), region = 118 }
 0x3ef   :  { %3778 = vsyncpa [#allocation3], 1 }
 0x3f0   :  { %3780 = vsyncpa [#allocation3 + $0x1], 1 }
 0x3f1   :  { %3781 = vsyncpa [#allocation6], 1 }
 0x3f2   :  { %3782 = vsyncpa [#allocation9], 1 }
 0x3f3   :  { %3783 = vsyncpa [#allocation12], 1 }
 0x3f4   :  { %3784 = vsyncpa [#allocation4], 1 }
 0x3f5   :  { %3786 = vsyncpa [#allocation4 + $0x1], 1 }

</bundles_post_ra>
